<compile_context>
chip_gen: v7x
topology: tpu7x:2x2x1
jax: 0.10.0
libtpu: 0.0.40
codegen_flags: <defaults>
</compile_context>

<pallas_src>
import functools
import math

import jax
import jax.numpy as jnp
from jax.experimental import pallas as pl
from jax.experimental.pallas import tpu as pltpu

M = 16              # latent dimensionality
HIDDEN = 64         # hidden width of scale / translation nets (PyTorch default)
NUM_TRANSFORMS = 4  # number of coupling layers
BATCH = 512         # example batch
_LOG_2PI = math.log(2.0 * math.pi)


# --------------------- generation detection (trace-time) ------------------- #

def _device_kind():
    try:
        return jax.devices()[0].device_kind.lower()
    except Exception:
        return ""


_KIND = _device_kind()
_SINGLE_TC = ("v5" in _KIND) or ("v6" in _KIND)          # one TensorCore per chip
_HIDDEN_DTYPE = jnp.float32 if "v5" in _KIND else jnp.bfloat16  # no bf16 VPU on v5e


def _round_up(x, n):
    return ((x + n - 1) // n) * n


# ----------------------------- Pallas kernel ------------------------------ #

def _flow_kernel(x_ref, w1_ref, b1_ref, w2_ref, b2_ref, w3_ref, b3_ref,
                 out_ref, lp_ref, *, num_transforms, m, inverse, hidden_dtype):
    """Run the full coupling flow on one (features, batch-tile) slab.

    inverse=True  : x -> z,      lp = log p(x)            (Flow.log_prob path)
    inverse=False : z -> x,      lp = log p(x) of samples (Flow.sample path)
    """
    x = x_ref[...].astype(jnp.float32)                  # (M, TB)
    x0 = x                                              # base-space point if fwd
    s_acc = jnp.zeros_like(x)                           # accumulated log-scales

    layer_order = (range(num_transforms - 1, -1, -1) if inverse
                   else range(num_transforms))
    for l in layer_order:                               # statically unrolled
        # Fused scale/translation MLP: Linear-ReLU-Linear-ReLU-Linear-Tanh.
        # Masks are already folded into w1 (cols) and w3/b3 (rows), so the
        # input is the raw activation and s=t=0 exactly on masked features.
        xb = x.astype(jnp.bfloat16)                                     # (M, TB)
        h = jnp.maximum(
            jnp.dot(w1_ref[l], xb, preferred_element_type=jnp.float32)
            .astype(hidden_dtype) + b1_ref[l], 0.0).astype(jnp.bfloat16)  # (2H,TB)
        h = jnp.maximum(
            jnp.dot(w2_ref[l], h, preferred_element_type=jnp.float32)
            .astype(hidden_dtype) + b2_ref[l], 0.0).astype(jnp.bfloat16)  # (2H,TB)
        st = jnp.tanh(jnp.dot(w3_ref[l], h,
                              preferred_element_type=jnp.float32)
                      + b3_ref[l])                                       # (2M,TB)
        s = st[:m]                                                       # scale
        t = st[m:]                                                       # transl.

        if inverse:
            x = (x - t) * jnp.exp(-s)        # exact on masked features (s=t=0)
        else:
            x = x * jnp.exp(s) + t
        s_acc = s_acc + s

    out_ref[...] = x.astype(out_ref.dtype)

    # Single fused reduction: log p = N(z;0,I) + signed log-det.
    #   inverse: z = final x,  log p(x)      = base_lp(z) - sum(s_acc)
    #   forward: z = initial x, log p(T(z))  = base_lp(z) - sum(s_acc)
    z = x if inverse else x0
    lp_ref[...] = (jnp.sum(-0.5 * z * z - s_acc, axis=0, keepdims=True)
                   - 0.5 * m * _LOG_2PI)


@functools.partial(jax.jit, static_argnames=("inverse",))
def _flow_pallas(x, params, *, inverse):
    w1, b1, w2, b2, w3, b3 = params
    B, m = x.shape
    L, h2, _ = w1.shape
    m2 = w3.shape[1]

    # Generation-aware tiling: full-batch tile on single-TC chips; an even,
    # lane-aligned split on dual-TC chips (v7x). Pad batch if needed.
    if _SINGLE_TC:
        tile_b = B
        b_pad = B
    else:
        tile_b = max(128, _round_up((B + 1) // 2, 128))
        b_pad = _round_up(B, tile_b)

    xT = x.T                                  # (M, B): batch on lanes
    if b_pad != B:
        xT = jnp.pad(xT, ((0, 0), (0, b_pad - B)))

    hidden_dtype = b1.dtype
    kernel = functools.partial(_flow_kernel, num_transforms=L, m=m,
                               inverse=inverse, hidden_dtype=hidden_dtype)

    def full_spec(a):
        nd = a.ndim
        return pl.BlockSpec(a.shape, lambda i, _nd=nd: (0,) * _nd)

    flops = 2 * L * b_pad * (h2 * m + h2 * h2 + m2 * h2)
    transcendentals = L * b_pad * (m2 + m)                 # tanh(2M) + exp(M)
    bytes_accessed = (2 * m * b_pad * 4 + b_pad * 4
                      + 2 * (w1.size + w2.size + w3.size)
                      + 4 * (b1.size + b2.size + b3.size))

    outT, lp = pl.pallas_call(
        kernel,
        grid=(b_pad // tile_b,),
        in_specs=[
            pl.BlockSpec((m, tile_b), lambda i: (0, i)),
            full_spec(w1), full_spec(b1),
            full_spec(w2), full_spec(b2),
            full_spec(w3), full_spec(b3),
        ],
        out_specs=[
            pl.BlockSpec((m, tile_b), lambda i: (0, i)),
            pl.BlockSpec((1, tile_b), lambda i: (0, i)),   # lane-dense log-prob
        ],
        out_shape=[
            jax.ShapeDtypeStruct((m, b_pad), jnp.float32),
            jax.ShapeDtypeStruct((1, b_pad), jnp.float32),
        ],
        compiler_params=pltpu.CompilerParams(dimension_semantics=("parallel",)),
        cost_estimate=pl.CostEstimate(flops=int(flops),
                                      transcendentals=int(transcendentals),
                                      bytes_accessed=int(bytes_accessed)),
    )(xT, w1, b1, w2, b2, w3, b3)
    return outT[:, :B].T, lp[0, :B]


# ------------------------- parameter construction ------------------------- #

def _linear_init(key, fan_in, fan_out):
    # mimics torch.nn.Linear default init: U(-1/sqrt(fan_in), 1/sqrt(fan_in))
    k1, k2 = jax.random.split(key)
    bound = 1.0 / math.sqrt(fan_in)
    w = jax.random.uniform(k1, (fan_in, fan_out), jnp.float32, -bound, bound)
    b = jax.random.uniform(k2, (fan_out,), jnp.float32, -bound, bound)
    return w, b


def make_flow_prior_params(key, m=M, num_transforms=NUM_TRANSFORMS, hidden=HIDDEN,
                           hidden_dtype=None):
    """Build stacked, mask-folded, fused-net parameters.

    Returns (params, masks). `params` is what the kernel consumes; `masks` is
    kept only for the plain-JAX reference / debugging (the kernel never sees it).
    """
    if hidden_dtype is None:
        hidden_dtype = _HIDDEN_DTYPE
    h2, m2 = 2 * hidden, 2 * m
    w1 = jnp.zeros((num_transforms, h2, m), jnp.float32)
    b1 = jnp.zeros((num_transforms, h2, 1), jnp.float32)
    w2 = jnp.zeros((num_transforms, h2, h2), jnp.float32)   # block-diagonal
    b2 = jnp.zeros((num_transforms, h2, 1), jnp.float32)
    w3 = jnp.zeros((num_transforms, m2, h2), jnp.float32)   # block-diagonal
    b3 = jnp.zeros((num_transforms, m2, 1), jnp.float32)

    base_mask = jnp.array([1.0 if i % 2 == 0 else 0.0 for i in range(m)],
                          jnp.float32)
    masks = jnp.stack([base_mask if l % 2 == 0 else 1.0 - base_mask
                       for l in range(num_transforms)])      # (L, M)

    for l in range(num_transforms):
        bm = masks[l]                                         # (M,)
        om = 1.0 - bm
        for n in range(2):  # 0 = scale net, 1 = translation net
            key, k1, k2, k3 = jax.random.split(key, 4)
            wa, ba = _linear_init(k1, m, hidden)
            wb, bb = _linear_init(k2, hidden, hidden)
            wc, bc = _linear_init(k3, hidden, m)
            hs = slice(n * hidden, (n + 1) * hidden)
            ms = slice(n * m, (n + 1) * m)
            # Fold input mask into W1 columns: W1 @ (x*b) == W1_folded @ x.
            w1 = w1.at[l, hs, :].set(wa.T * bm[None, :])
            b1 = b1.at[l, hs, 0].set(ba)
            w2 = w2.at[l, hs, hs].set(wb.T)
            b2 = b2.at[l, hs, 0].set(bb)
            # Fold (1-mask) into W3/b3 rows: s = t = 0 exactly where mask==1.
            w3 = w3.at[l, ms, hs].set(wc.T * om[:, None])
            b3 = b3.at[l, ms, 0].set(bc * om)

    # bf16 matmul operands (MXU-native); hidden biases in the hidden-epilogue
    # dtype (bf16 on v6e/v7x, f32 on v5e); tanh/exp/coupling path stays f32.
    w1, w2, w3 = (w.astype(jnp.bfloat16) for w in (w1, w2, w3))
    b1, b2 = (b.astype(hidden_dtype) for b in (b1, b2))
    params = (w1, b1, w2, b2, w3, b3)
    return params, masks


# ------------------- FlowPrior / FlowDistribution wrapper ----------------- #

class FlowDistribution:
    """JAX analogue of the torch FlowDistribution wrapper."""
    # TODO(synk): torch.distributions.Distribution base-class plumbing
    # (validate_args, batch_shape bookkeeping) has no Pallas equivalent;
    # only sample()/log_prob() are implemented.

    def __init__(self, params):
        self.params = params

    def log_prob(self, value):
        _, lp = _flow_pallas(value, self.params, inverse=True)
        return lp

    def sample(self, key, sample_shape=(BATCH,)):
        m = self.params[0].shape[2]
        z = jax.random.normal(key, tuple(sample_shape) + (m,), jnp.float32)
        x, _ = _flow_pallas(z, self.params, inverse=False)
        return x


class FlowPrior:
    def __init__(self, key, m=M, num_transforms=NUM_TRANSFORMS, hidden_dim=HIDDEN):
        self.params, self.masks = make_flow_prior_params(
            key, m, num_transforms, hidden_dim)

    def forward(self):
        return FlowDistribution(self.params)

    __call__ = forward


# ------------------------- pure-JAX reference check ----------------------- #

def _ref_log_prob(x, params, masks):
    """Plain-JAX reference using the ORIGINAL explicit-mask coupling math.

    It masks the net input and the coupling update explicitly, so it only
    matches the (mask-free) kernel if the mask folding into w1/w3/b3 is exact.
    """
    w1, b1, w2, b2, w3, b3 = params
    m = x.shape[1]
    hdt = b1.dtype

    def mm(a_bf16, w_bf16):   # emulate MXU: bf16 operands, f32 accumulation
        return a_bf16.astype(jnp.float32) @ w_bf16.astype(jnp.float32).T

    log_det = jnp.zeros((x.shape[0],), jnp.float32)
    for l in range(masks.shape[0] - 1, -1, -1):
        bm = masks[l]
        om = 1.0 - bm
        xin = (x * bm).astype(jnp.bfloat16)                  # explicit input mask
        h = jnp.maximum(mm(xin, w1[l]).astype(hdt) + b1[l, :, 0], 0.0
                        ).astype(jnp.bfloat16)
        h = jnp.maximum(mm(h, w2[l]).astype(hdt) + b2[l, :, 0], 0.0
                        ).astype(jnp.bfloat16)
        st = jnp.tanh(mm(h, w3[l]) + b3[l, :, 0])
        s, t = st[:, :m], st[:, m:]
        x = bm * x + om * ((x - t) * jnp.exp(-s))            # explicit coupling mask
        log_det = log_det - jnp.sum(om * s, axis=-1)
    base_lp = -0.5 * jnp.sum(x * x, axis=-1) - 0.5 * m * _LOG_2PI
    return base_lp + log_det


# ---------------------------------- main ----------------------------------- #

if __name__ == "__main__":
    key = jax.random.PRNGKey(0)
    k_params, k_x, k_sample = jax.random.split(key, 3)

    prior = FlowPrior(k_params, m=M, num_transforms=NUM_TRANSFORMS,
                      hidden_dim=HIDDEN)
    dist = prior()                               # FlowPrior.forward()

    x = jax.random.normal(k_x, (BATCH, M), jnp.float32)

    logp = dist.log_prob(x)                      # Pallas kernel (inverse flow)
    samples = dist.sample(k_sample, (BATCH,))    # Pallas kernel (forward flow)

    jax.block_until_ready(logp)
    jax.block_until_ready(samples)

    ref = _ref_log_prob(x, prior.params, prior.masks)
    assert logp.shape == (BATCH,) and samples.shape == (BATCH, M)
    assert jnp.allclose(logp, ref, atol=2e-3, rtol=2e-3), (
        float(jnp.max(jnp.abs(logp - ref))))

    print("KERNEL_OK")
</pallas_src>

<mosaic_0001>
module attributes {stable_mosaic.version = 11 : i64} {
  func.func @_flow_kernel(%arg0: i32, %arg1: memref<16x256xf32, #tpu.memory_space<vmem>>, %arg2: memref<4x128x16xbf16, #tpu.memory_space<vmem>>, %arg3: memref<4x128x1xbf16, #tpu.memory_space<vmem>>, %arg4: memref<4x128x128xbf16, #tpu.memory_space<vmem>>, %arg5: memref<4x128x1xbf16, #tpu.memory_space<vmem>>, %arg6: memref<4x32x128xbf16, #tpu.memory_space<vmem>>, %arg7: memref<4x32x1xf32, #tpu.memory_space<vmem>>, %arg8: memref<16x256xf32, #tpu.memory_space<vmem>>, %arg9: memref<1x256xf32, #tpu.memory_space<vmem>>) attributes {dimension_semantics = [#tpu.dimension_semantics<parallel>], iteration_bounds = array<i64: 2>, scalar_prefetch = 0 : i64, scratch_operands = 0 : i64, tpu.core_type = #tpu.core_type<tc>, window_params = [{transform_indices = @transform_0, window_bounds = array<i64: 16, 256>}, {pipeline_mode = #tpu.pipeline_mode<synchronous>, transform_indices = @transform_1, window_bounds = array<i64: 4, 128, 16>}, {pipeline_mode = #tpu.pipeline_mode<synchronous>, transform_indices = @transform_2, window_bounds = array<i64: 4, 128, 1>}, {pipeline_mode = #tpu.pipeline_mode<synchronous>, transform_indices = @transform_3, window_bounds = array<i64: 4, 128, 128>}, {pipeline_mode = #tpu.pipeline_mode<synchronous>, transform_indices = @transform_4, window_bounds = array<i64: 4, 128, 1>}, {pipeline_mode = #tpu.pipeline_mode<synchronous>, transform_indices = @transform_5, window_bounds = array<i64: 4, 32, 128>}, {pipeline_mode = #tpu.pipeline_mode<synchronous>, transform_indices = @transform_6, window_bounds = array<i64: 4, 32, 1>}, {transform_indices = @transform_7, window_bounds = array<i64: 16, 256>}, {transform_indices = @transform_8, window_bounds = array<i64: 1, 256>}]} {
    %c0 = arith.constant 0 : index
    %c0_0 = arith.constant 0 : index
    %0 = vector.load %arg1[%c0, %c0_0] : memref<16x256xf32, #tpu.memory_space<vmem>>, vector<16x256xf32>
    %cst = arith.constant 0.000000e+00 : f32
    %1 = vector.broadcast %cst : f32 to vector<16x256xf32>
    %2 = arith.truncf %0 : vector<16x256xf32> to vector<16x256xbf16>
    %c3 = arith.constant 3 : index
    %c0_1 = arith.constant 0 : index
    %c0_2 = arith.constant 0 : index
    %3 = vector.load %arg2[%c3, %c0_1, %c0_2] : memref<4x128x16xbf16, #tpu.memory_space<vmem>>, vector<1x128x16xbf16>
    %4 = vector.shape_cast %3 : vector<1x128x16xbf16> to vector<128x16xbf16>
    %cst_3 = arith.constant dense<0.000000e+00> : vector<128x256xf32>
    %5 = tpu.matmul %4, %2, %cst_3 {dimension_numbers = #tpu.dot_dimension_numbers<[1], [0], [0], [1], [0, 0, 1, 1], [], []>} : vector<128x16xbf16>, vector<16x256xbf16>, vector<128x256xf32> -> vector<128x256xf32>
    %6 = arith.truncf %5 : vector<128x256xf32> to vector<128x256xbf16>
    %c3_4 = arith.constant 3 : index
    %c0_5 = arith.constant 0 : index
    %c0_6 = arith.constant 0 : index
    %7 = vector.load %arg3[%c3_4, %c0_5, %c0_6] : memref<4x128x1xbf16, #tpu.memory_space<vmem>>, vector<1x128x1xbf16>
    %8 = vector.shape_cast %7 : vector<1x128x1xbf16> to vector<128x1xbf16>
    %9 = vector.broadcast %8 : vector<128x1xbf16> to vector<128x256xbf16>
    %10 = arith.addf %6, %9 : vector<128x256xbf16>
    %cst_7 = arith.constant 0.000000e+00 : bf16
    %11 = vector.broadcast %cst_7 : bf16 to vector<128x256xbf16>
    %12 = arith.maximumf %10, %11 : vector<128x256xbf16>
    %c3_8 = arith.constant 3 : index
    %c0_9 = arith.constant 0 : index
    %c0_10 = arith.constant 0 : index
    %13 = vector.load %arg4[%c3_8, %c0_9, %c0_10] : memref<4x128x128xbf16, #tpu.memory_space<vmem>>, vector<1x128x128xbf16>
    %14 = vector.shape_cast %13 : vector<1x128x128xbf16> to vector<128x128xbf16>
    %cst_11 = arith.constant dense<0.000000e+00> : vector<128x256xf32>
    %15 = tpu.matmul %14, %12, %cst_11 {dimension_numbers = #tpu.dot_dimension_numbers<[1], [0], [0], [1], [0, 0, 1, 1], [], []>} : vector<128x128xbf16>, vector<128x256xbf16>, vector<128x256xf32> -> vector<128x256xf32>
    %16 = arith.truncf %15 : vector<128x256xf32> to vector<128x256xbf16>
    %c3_12 = arith.constant 3 : index
    %c0_13 = arith.constant 0 : index
    %c0_14 = arith.constant 0 : index
    %17 = vector.load %arg5[%c3_12, %c0_13, %c0_14] : memref<4x128x1xbf16, #tpu.memory_space<vmem>>, vector<1x128x1xbf16>
    %18 = vector.shape_cast %17 : vector<1x128x1xbf16> to vector<128x1xbf16>
    %19 = vector.broadcast %18 : vector<128x1xbf16> to vector<128x256xbf16>
    %20 = arith.addf %16, %19 : vector<128x256xbf16>
    %cst_15 = arith.constant 0.000000e+00 : bf16
    %21 = vector.broadcast %cst_15 : bf16 to vector<128x256xbf16>
    %22 = arith.maximumf %20, %21 : vector<128x256xbf16>
    %c3_16 = arith.constant 3 : index
    %c0_17 = arith.constant 0 : index
    %c0_18 = arith.constant 0 : index
    %23 = vector.load %arg6[%c3_16, %c0_17, %c0_18] : memref<4x32x128xbf16, #tpu.memory_space<vmem>>, vector<1x32x128xbf16>
    %24 = vector.shape_cast %23 : vector<1x32x128xbf16> to vector<32x128xbf16>
    %cst_19 = arith.constant dense<0.000000e+00> : vector<32x256xf32>
    %25 = tpu.matmul %24, %22, %cst_19 {dimension_numbers = #tpu.dot_dimension_numbers<[1], [0], [0], [1], [0, 0, 1, 1], [], []>} : vector<32x128xbf16>, vector<128x256xbf16>, vector<32x256xf32> -> vector<32x256xf32>
    %c3_20 = arith.constant 3 : index
    %c0_21 = arith.constant 0 : index
    %c0_22 = arith.constant 0 : index
    %26 = vector.load %arg7[%c3_20, %c0_21, %c0_22] : memref<4x32x1xf32, #tpu.memory_space<vmem>>, vector<1x32x1xf32>
    %27 = vector.shape_cast %26 : vector<1x32x1xf32> to vector<32x1xf32>
    %28 = vector.broadcast %27 : vector<32x1xf32> to vector<32x256xf32>
    %29 = arith.addf %25, %28 : vector<32x256xf32>
    %30 = math.tanh %29 : vector<32x256xf32>
    %31 = vector.extract_strided_slice %30 {offsets = [0, 0], sizes = [16, 256], strides = [1, 1]} : vector<32x256xf32> to vector<16x256xf32>
    %32 = vector.extract_strided_slice %30 {offsets = [16, 0], sizes = [16, 256], strides = [1, 1]} : vector<32x256xf32> to vector<16x256xf32>
    %33 = arith.subf %0, %32 : vector<16x256xf32>
    %cst_23 = arith.constant 0.000000e+00 : f32
    %34 = vector.broadcast %cst_23 : f32 to vector<16x256xf32>
    %35 = arith.subf %34, %31 : vector<16x256xf32>
    %36 = math.exp %35 : vector<16x256xf32>
    %37 = arith.mulf %33, %36 : vector<16x256xf32>
    %38 = arith.addf %1, %31 : vector<16x256xf32>
    %39 = arith.truncf %37 : vector<16x256xf32> to vector<16x256xbf16>
    %c2 = arith.constant 2 : index
    %c0_24 = arith.constant 0 : index
    %c0_25 = arith.constant 0 : index
    %40 = vector.load %arg2[%c2, %c0_24, %c0_25] : memref<4x128x16xbf16, #tpu.memory_space<vmem>>, vector<1x128x16xbf16>
    %41 = vector.shape_cast %40 : vector<1x128x16xbf16> to vector<128x16xbf16>
    %cst_26 = arith.constant dense<0.000000e+00> : vector<128x256xf32>
    %42 = tpu.matmul %41, %39, %cst_26 {dimension_numbers = #tpu.dot_dimension_numbers<[1], [0], [0], [1], [0, 0, 1, 1], [], []>} : vector<128x16xbf16>, vector<16x256xbf16>, vector<128x256xf32> -> vector<128x256xf32>
    %43 = arith.truncf %42 : vector<128x256xf32> to vector<128x256xbf16>
    %c2_27 = arith.constant 2 : index
    %c0_28 = arith.constant 0 : index
    %c0_29 = arith.constant 0 : index
    %44 = vector.load %arg3[%c2_27, %c0_28, %c0_29] : memref<4x128x1xbf16, #tpu.memory_space<vmem>>, vector<1x128x1xbf16>
    %45 = vector.shape_cast %44 : vector<1x128x1xbf16> to vector<128x1xbf16>
    %46 = vector.broadcast %45 : vector<128x1xbf16> to vector<128x256xbf16>
    %47 = arith.addf %43, %46 : vector<128x256xbf16>
    %cst_30 = arith.constant 0.000000e+00 : bf16
    %48 = vector.broadcast %cst_30 : bf16 to vector<128x256xbf16>
    %49 = arith.maximumf %47, %48 : vector<128x256xbf16>
    %c2_31 = arith.constant 2 : index
    %c0_32 = arith.constant 0 : index
    %c0_33 = arith.constant 0 : index
    %50 = vector.load %arg4[%c2_31, %c0_32, %c0_33] : memref<4x128x128xbf16, #tpu.memory_space<vmem>>, vector<1x128x128xbf16>
    %51 = vector.shape_cast %50 : vector<1x128x128xbf16> to vector<128x128xbf16>
    %cst_34 = arith.constant dense<0.000000e+00> : vector<128x256xf32>
    %52 = tpu.matmul %51, %49, %cst_34 {dimension_numbers = #tpu.dot_dimension_numbers<[1], [0], [0], [1], [0, 0, 1, 1], [], []>} : vector<128x128xbf16>, vector<128x256xbf16>, vector<128x256xf32> -> vector<128x256xf32>
    %53 = arith.truncf %52 : vector<128x256xf32> to vector<128x256xbf16>
    %c2_35 = arith.constant 2 : index
    %c0_36 = arith.constant 0 : index
    %c0_37 = arith.constant 0 : index
    %54 = vector.load %arg5[%c2_35, %c0_36, %c0_37] : memref<4x128x1xbf16, #tpu.memory_space<vmem>>, vector<1x128x1xbf16>
    %55 = vector.shape_cast %54 : vector<1x128x1xbf16> to vector<128x1xbf16>
    %56 = vector.broadcast %55 : vector<128x1xbf16> to vector<128x256xbf16>
    %57 = arith.addf %53, %56 : vector<128x256xbf16>
    %cst_38 = arith.constant 0.000000e+00 : bf16
    %58 = vector.broadcast %cst_38 : bf16 to vector<128x256xbf16>
    %59 = arith.maximumf %57, %58 : vector<128x256xbf16>
    %c2_39 = arith.constant 2 : index
    %c0_40 = arith.constant 0 : index
    %c0_41 = arith.constant 0 : index
    %60 = vector.load %arg6[%c2_39, %c0_40, %c0_41] : memref<4x32x128xbf16, #tpu.memory_space<vmem>>, vector<1x32x128xbf16>
    %61 = vector.shape_cast %60 : vector<1x32x128xbf16> to vector<32x128xbf16>
    %cst_42 = arith.constant dense<0.000000e+00> : vector<32x256xf32>
    %62 = tpu.matmul %61, %59, %cst_42 {dimension_numbers = #tpu.dot_dimension_numbers<[1], [0], [0], [1], [0, 0, 1, 1], [], []>} : vector<32x128xbf16>, vector<128x256xbf16>, vector<32x256xf32> -> vector<32x256xf32>
    %c2_43 = arith.constant 2 : index
    %c0_44 = arith.constant 0 : index
    %c0_45 = arith.constant 0 : index
    %63 = vector.load %arg7[%c2_43, %c0_44, %c0_45] : memref<4x32x1xf32, #tpu.memory_space<vmem>>, vector<1x32x1xf32>
    %64 = vector.shape_cast %63 : vector<1x32x1xf32> to vector<32x1xf32>
    %65 = vector.broadcast %64 : vector<32x1xf32> to vector<32x256xf32>
    %66 = arith.addf %62, %65 : vector<32x256xf32>
    %67 = math.tanh %66 : vector<32x256xf32>
    %68 = vector.extract_strided_slice %67 {offsets = [0, 0], sizes = [16, 256], strides = [1, 1]} : vector<32x256xf32> to vector<16x256xf32>
    %69 = vector.extract_strided_slice %67 {offsets = [16, 0], sizes = [16, 256], strides = [1, 1]} : vector<32x256xf32> to vector<16x256xf32>
    %70 = arith.subf %37, %69 : vector<16x256xf32>
    %cst_46 = arith.constant 0.000000e+00 : f32
    %71 = vector.broadcast %cst_46 : f32 to vector<16x256xf32>
    %72 = arith.subf %71, %68 : vector<16x256xf32>
    %73 = math.exp %72 : vector<16x256xf32>
    %74 = arith.mulf %70, %73 : vector<16x256xf32>
    %75 = arith.addf %38, %68 : vector<16x256xf32>
    %76 = arith.truncf %74 : vector<16x256xf32> to vector<16x256xbf16>
    %c1 = arith.constant 1 : index
    %c0_47 = arith.constant 0 : index
    %c0_48 = arith.constant 0 : index
    %77 = vector.load %arg2[%c1, %c0_47, %c0_48] : memref<4x128x16xbf16, #tpu.memory_space<vmem>>, vector<1x128x16xbf16>
    %78 = vector.shape_cast %77 : vector<1x128x16xbf16> to vector<128x16xbf16>
    %cst_49 = arith.constant dense<0.000000e+00> : vector<128x256xf32>
    %79 = tpu.matmul %78, %76, %cst_49 {dimension_numbers = #tpu.dot_dimension_numbers<[1], [0], [0], [1], [0, 0, 1, 1], [], []>} : vector<128x16xbf16>, vector<16x256xbf16>, vector<128x256xf32> -> vector<128x256xf32>
    %80 = arith.truncf %79 : vector<128x256xf32> to vector<128x256xbf16>
    %c1_50 = arith.constant 1 : index
    %c0_51 = arith.constant 0 : index
    %c0_52 = arith.constant 0 : index
    %81 = vector.load %arg3[%c1_50, %c0_51, %c0_52] : memref<4x128x1xbf16, #tpu.memory_space<vmem>>, vector<1x128x1xbf16>
    %82 = vector.shape_cast %81 : vector<1x128x1xbf16> to vector<128x1xbf16>
    %83 = vector.broadcast %82 : vector<128x1xbf16> to vector<128x256xbf16>
    %84 = arith.addf %80, %83 : vector<128x256xbf16>
    %cst_53 = arith.constant 0.000000e+00 : bf16
    %85 = vector.broadcast %cst_53 : bf16 to vector<128x256xbf16>
    %86 = arith.maximumf %84, %85 : vector<128x256xbf16>
    %c1_54 = arith.constant 1 : index
    %c0_55 = arith.constant 0 : index
    %c0_56 = arith.constant 0 : index
    %87 = vector.load %arg4[%c1_54, %c0_55, %c0_56] : memref<4x128x128xbf16, #tpu.memory_space<vmem>>, vector<1x128x128xbf16>
    %88 = vector.shape_cast %87 : vector<1x128x128xbf16> to vector<128x128xbf16>
    %cst_57 = arith.constant dense<0.000000e+00> : vector<128x256xf32>
    %89 = tpu.matmul %88, %86, %cst_57 {dimension_numbers = #tpu.dot_dimension_numbers<[1], [0], [0], [1], [0, 0, 1, 1], [], []>} : vector<128x128xbf16>, vector<128x256xbf16>, vector<128x256xf32> -> vector<128x256xf32>
    %90 = arith.truncf %89 : vector<128x256xf32> to vector<128x256xbf16>
    %c1_58 = arith.constant 1 : index
    %c0_59 = arith.constant 0 : index
    %c0_60 = arith.constant 0 : index
    %91 = vector.load %arg5[%c1_58, %c0_59, %c0_60] : memref<4x128x1xbf16, #tpu.memory_space<vmem>>, vector<1x128x1xbf16>
    %92 = vector.shape_cast %91 : vector<1x128x1xbf16> to vector<128x1xbf16>
    %93 = vector.broadcast %92 : vector<128x1xbf16> to vector<128x256xbf16>
    %94 = arith.addf %90, %93 : vector<128x256xbf16>
    %cst_61 = arith.constant 0.000000e+00 : bf16
    %95 = vector.broadcast %cst_61 : bf16 to vector<128x256xbf16>
    %96 = arith.maximumf %94, %95 : vector<128x256xbf16>
    %c1_62 = arith.constant 1 : index
    %c0_63 = arith.constant 0 : index
    %c0_64 = arith.constant 0 : index
    %97 = vector.load %arg6[%c1_62, %c0_63, %c0_64] : memref<4x32x128xbf16, #tpu.memory_space<vmem>>, vector<1x32x128xbf16>
    %98 = vector.shape_cast %97 : vector<1x32x128xbf16> to vector<32x128xbf16>
    %cst_65 = arith.constant dense<0.000000e+00> : vector<32x256xf32>
    %99 = tpu.matmul %98, %96, %cst_65 {dimension_numbers = #tpu.dot_dimension_numbers<[1], [0], [0], [1], [0, 0, 1, 1], [], []>} : vector<32x128xbf16>, vector<128x256xbf16>, vector<32x256xf32> -> vector<32x256xf32>
    %c1_66 = arith.constant 1 : index
    %c0_67 = arith.constant 0 : index
    %c0_68 = arith.constant 0 : index
    %100 = vector.load %arg7[%c1_66, %c0_67, %c0_68] : memref<4x32x1xf32, #tpu.memory_space<vmem>>, vector<1x32x1xf32>
    %101 = vector.shape_cast %100 : vector<1x32x1xf32> to vector<32x1xf32>
    %102 = vector.broadcast %101 : vector<32x1xf32> to vector<32x256xf32>
    %103 = arith.addf %99, %102 : vector<32x256xf32>
    %104 = math.tanh %103 : vector<32x256xf32>
    %105 = vector.extract_strided_slice %104 {offsets = [0, 0], sizes = [16, 256], strides = [1, 1]} : vector<32x256xf32> to vector<16x256xf32>
    %106 = vector.extract_strided_slice %104 {offsets = [16, 0], sizes = [16, 256], strides = [1, 1]} : vector<32x256xf32> to vector<16x256xf32>
    %107 = arith.subf %74, %106 : vector<16x256xf32>
    %cst_69 = arith.constant 0.000000e+00 : f32
    %108 = vector.broadcast %cst_69 : f32 to vector<16x256xf32>
    %109 = arith.subf %108, %105 : vector<16x256xf32>
    %110 = math.exp %109 : vector<16x256xf32>
    %111 = arith.mulf %107, %110 : vector<16x256xf32>
    %112 = arith.addf %75, %105 : vector<16x256xf32>
    %113 = arith.truncf %111 : vector<16x256xf32> to vector<16x256xbf16>
    %c0_70 = arith.constant 0 : index
    %c0_71 = arith.constant 0 : index
    %c0_72 = arith.constant 0 : index
    %114 = vector.load %arg2[%c0_70, %c0_71, %c0_72] : memref<4x128x16xbf16, #tpu.memory_space<vmem>>, vector<1x128x16xbf16>
    %115 = vector.shape_cast %114 : vector<1x128x16xbf16> to vector<128x16xbf16>
    %cst_73 = arith.constant dense<0.000000e+00> : vector<128x256xf32>
    %116 = tpu.matmul %115, %113, %cst_73 {dimension_numbers = #tpu.dot_dimension_numbers<[1], [0], [0], [1], [0, 0, 1, 1], [], []>} : vector<128x16xbf16>, vector<16x256xbf16>, vector<128x256xf32> -> vector<128x256xf32>
    %117 = arith.truncf %116 : vector<128x256xf32> to vector<128x256xbf16>
    %c0_74 = arith.constant 0 : index
    %c0_75 = arith.constant 0 : index
    %c0_76 = arith.constant 0 : index
    %118 = vector.load %arg3[%c0_74, %c0_75, %c0_76] : memref<4x128x1xbf16, #tpu.memory_space<vmem>>, vector<1x128x1xbf16>
    %119 = vector.shape_cast %118 : vector<1x128x1xbf16> to vector<128x1xbf16>
    %120 = vector.broadcast %119 : vector<128x1xbf16> to vector<128x256xbf16>
    %121 = arith.addf %117, %120 : vector<128x256xbf16>
    %cst_77 = arith.constant 0.000000e+00 : bf16
    %122 = vector.broadcast %cst_77 : bf16 to vector<128x256xbf16>
    %123 = arith.maximumf %121, %122 : vector<128x256xbf16>
    %c0_78 = arith.constant 0 : index
    %c0_79 = arith.constant 0 : index
    %c0_80 = arith.constant 0 : index
    %124 = vector.load %arg4[%c0_78, %c0_79, %c0_80] : memref<4x128x128xbf16, #tpu.memory_space<vmem>>, vector<1x128x128xbf16>
    %125 = vector.shape_cast %124 : vector<1x128x128xbf16> to vector<128x128xbf16>
    %cst_81 = arith.constant dense<0.000000e+00> : vector<128x256xf32>
    %126 = tpu.matmul %125, %123, %cst_81 {dimension_numbers = #tpu.dot_dimension_numbers<[1], [0], [0], [1], [0, 0, 1, 1], [], []>} : vector<128x128xbf16>, vector<128x256xbf16>, vector<128x256xf32> -> vector<128x256xf32>
    %127 = arith.truncf %126 : vector<128x256xf32> to vector<128x256xbf16>
    %c0_82 = arith.constant 0 : index
    %c0_83 = arith.constant 0 : index
    %c0_84 = arith.constant 0 : index
    %128 = vector.load %arg5[%c0_82, %c0_83, %c0_84] : memref<4x128x1xbf16, #tpu.memory_space<vmem>>, vector<1x128x1xbf16>
    %129 = vector.shape_cast %128 : vector<1x128x1xbf16> to vector<128x1xbf16>
    %130 = vector.broadcast %129 : vector<128x1xbf16> to vector<128x256xbf16>
    %131 = arith.addf %127, %130 : vector<128x256xbf16>
    %cst_85 = arith.constant 0.000000e+00 : bf16
    %132 = vector.broadcast %cst_85 : bf16 to vector<128x256xbf16>
    %133 = arith.maximumf %131, %132 : vector<128x256xbf16>
    %c0_86 = arith.constant 0 : index
    %c0_87 = arith.constant 0 : index
    %c0_88 = arith.constant 0 : index
    %134 = vector.load %arg6[%c0_86, %c0_87, %c0_88] : memref<4x32x128xbf16, #tpu.memory_space<vmem>>, vector<1x32x128xbf16>
    %135 = vector.shape_cast %134 : vector<1x32x128xbf16> to vector<32x128xbf16>
    %cst_89 = arith.constant dense<0.000000e+00> : vector<32x256xf32>
    %136 = tpu.matmul %135, %133, %cst_89 {dimension_numbers = #tpu.dot_dimension_numbers<[1], [0], [0], [1], [0, 0, 1, 1], [], []>} : vector<32x128xbf16>, vector<128x256xbf16>, vector<32x256xf32> -> vector<32x256xf32>
    %c0_90 = arith.constant 0 : index
    %c0_91 = arith.constant 0 : index
    %c0_92 = arith.constant 0 : index
    %137 = vector.load %arg7[%c0_90, %c0_91, %c0_92] : memref<4x32x1xf32, #tpu.memory_space<vmem>>, vector<1x32x1xf32>
    %138 = vector.shape_cast %137 : vector<1x32x1xf32> to vector<32x1xf32>
    %139 = vector.broadcast %138 : vector<32x1xf32> to vector<32x256xf32>
    %140 = arith.addf %136, %139 : vector<32x256xf32>
    %141 = math.tanh %140 : vector<32x256xf32>
    %142 = vector.extract_strided_slice %141 {offsets = [0, 0], sizes = [16, 256], strides = [1, 1]} : vector<32x256xf32> to vector<16x256xf32>
    %143 = vector.extract_strided_slice %141 {offsets = [16, 0], sizes = [16, 256], strides = [1, 1]} : vector<32x256xf32> to vector<16x256xf32>
    %144 = arith.subf %111, %143 : vector<16x256xf32>
    %cst_93 = arith.constant 0.000000e+00 : f32
    %145 = vector.broadcast %cst_93 : f32 to vector<16x256xf32>
    %146 = arith.subf %145, %142 : vector<16x256xf32>
    %147 = math.exp %146 : vector<16x256xf32>
    %148 = arith.mulf %144, %147 : vector<16x256xf32>
    %149 = arith.addf %112, %142 : vector<16x256xf32>
    %c0_94 = arith.constant 0 : index
    %c0_95 = arith.constant 0 : index
    %150 = vector.load %arg8[%c0_94, %c0_95] : memref<16x256xf32, #tpu.memory_space<vmem>>, vector<16x256xf32>
    tpu.vector_store %arg8[%c0_94, %c0_95], %148 {strides = array<i32>} : memref<16x256xf32, #tpu.memory_space<vmem>>, vector<16x256xf32>,
    %cst_96 = arith.constant -5.000000e-01 : f32
    %151 = vector.broadcast %cst_96 : f32 to vector<16x256xf32>
    %152 = arith.mulf %151, %148 : vector<16x256xf32>
    %153 = arith.mulf %152, %148 : vector<16x256xf32>
    %154 = arith.subf %153, %149 : vector<16x256xf32>
    %cst_97 = arith.constant dense<0.000000e+00> : vector<256xf32>
    %155 = vector.multi_reduction <add>, %154, %cst_97 [0] : vector<16x256xf32> to vector<256xf32>
    %156 = vector.shape_cast %155 : vector<256xf32> to vector<1x256xf32>
    %cst_98 = arith.constant 14.7030163 : f32
    %157 = vector.broadcast %cst_98 : f32 to vector<1x256xf32>
    %158 = arith.subf %156, %157 : vector<1x256xf32>
    %c0_99 = arith.constant 0 : index
    %c0_100 = arith.constant 0 : index
    %159 = vector.load %arg9[%c0_99, %c0_100] : memref<1x256xf32, #tpu.memory_space<vmem>>, vector<1x256xf32>
    tpu.vector_store %arg9[%c0_99, %c0_100], %158 {strides = array<i32>} : memref<1x256xf32, #tpu.memory_space<vmem>>, vector<1x256xf32>,
    return
  }
  func.func @transform_0(%arg0: i32) -> (i32, i32) {
    %c0_i32 = arith.constant 0 : i32
    %c0_i32_0 = arith.constant 0 : i32
    return %c0_i32, %arg0 : i32, i32
  }
  func.func @transform_1(%arg0: i32) -> (i32, i32, i32) {
    %c0_i32 = arith.constant 0 : i32
    %c0_i32_0 = arith.constant 0 : i32
    %c0_i32_1 = arith.constant 0 : i32
    %c0_i32_2 = arith.constant 0 : i32
    return %c0_i32, %c0_i32_0, %c0_i32_1 : i32, i32, i32
  }
  func.func @transform_2(%arg0: i32) -> (i32, i32, i32) {
    %c0_i32 = arith.constant 0 : i32
    %c0_i32_0 = arith.constant 0 : i32
    %c0_i32_1 = arith.constant 0 : i32
    %c0_i32_2 = arith.constant 0 : i32
    return %c0_i32, %c0_i32_0, %c0_i32_1 : i32, i32, i32
  }
  func.func @transform_3(%arg0: i32) -> (i32, i32, i32) {
    %c0_i32 = arith.constant 0 : i32
    %c0_i32_0 = arith.constant 0 : i32
    %c0_i32_1 = arith.constant 0 : i32
    %c0_i32_2 = arith.constant 0 : i32
    return %c0_i32, %c0_i32_0, %c0_i32_1 : i32, i32, i32
  }
  func.func @transform_4(%arg0: i32) -> (i32, i32, i32) {
    %c0_i32 = arith.constant 0 : i32
    %c0_i32_0 = arith.constant 0 : i32
    %c0_i32_1 = arith.constant 0 : i32
    %c0_i32_2 = arith.constant 0 : i32
    return %c0_i32, %c0_i32_0, %c0_i32_1 : i32, i32, i32
  }
  func.func @transform_5(%arg0: i32) -> (i32, i32, i32) {
    %c0_i32 = arith.constant 0 : i32
    %c0_i32_0 = arith.constant 0 : i32
    %c0_i32_1 = arith.constant 0 : i32
    %c0_i32_2 = arith.constant 0 : i32
    return %c0_i32, %c0_i32_0, %c0_i32_1 : i32, i32, i32
  }
  func.func @transform_6(%arg0: i32) -> (i32, i32, i32) {
    %c0_i32 = arith.constant 0 : i32
    %c0_i32_0 = arith.constant 0 : i32
    %c0_i32_1 = arith.constant 0 : i32
    %c0_i32_2 = arith.constant 0 : i32
    return %c0_i32, %c0_i32_0, %c0_i32_1 : i32, i32, i32
  }
  func.func @transform_7(%arg0: i32) -> (i32, i32) {
    %c0_i32 = arith.constant 0 : i32
    %c0_i32_0 = arith.constant 0 : i32
    return %c0_i32, %arg0 : i32, i32
  }
  func.func @transform_8(%arg0: i32) -> (i32, i32) {
    %c0_i32 = arith.constant 0 : i32
    %c0_i32_0 = arith.constant 0 : i32
    return %c0_i32, %arg0 : i32, i32
  }
}

</mosaic_0001>

<bundles_post_ra>
// kernel: _flow_pallas.1
= control target key start
LH: loop header
LB: loop body
LE: loop exit
PB: predicated region body
PF: predicated region fallthrough
CT: control target
= control target key end

     0   :  { %14 = vsyncpa [#allocation4], 0  ;;  %s7192_s0 = inlined_call_operand.vmem [shape: f32[16,512], index: 0, kind: input, shape index: {}]   ;;  %s7193_s1 = inlined_call_operand.vmem [shape: bf16[4,128,16], index: 1, kind: input, shape index: {}]   ;;  %s7194_s2 = inlined_call_operand.vmem [shape: bf16[4,128,1], index: 2, kind: input, shape index: {}]   ;;  %s7195_s3 = inlined_call_operand.vmem [shape: bf16[4,128,128], index: 3, kind: input, shape index: {}]   ;;  %s7196_s4 = inlined_call_operand.vmem [shape: bf16[4,128,1], index: 4, kind: input, shape index: {}]   ;;  %s7197_s5 = inlined_call_operand.vmem [shape: bf16[4,32,128], index: 5, kind: input, shape index: {}]   ;;  %s7198_s6 = inlined_call_operand.vmem [shape: f32[4,32,1], index: 6, kind: input, shape index: {}]   ;;  %s7199_s7 = inlined_call_operand.hbm [shape: f32[16,512], index: 7, kind: output, shape index: {0}]   ;;  %s7200_s8 = inlined_call_operand.hbm [shape: f32[1,512], index: 8, kind: output, shape index: {1}]  }
   0x1   :  { %16 = vsyncpa [#allocation4 + $0x1], 0 }
   0x2   :  { %17 = vsyncpa [#allocation6], 0 }
   0x3   :  { %19 = vsyncpa [#allocation6 + $0x1], 0  ;;  %s5772_s27 = smov 0   ;;  %s5774_s28 = smov 0  }
   0x4   :  { %s5776_s29 = smov 0   ;;  %s5778_s30 = smov 0  }
   0x5 LB: > { %s5793_s9 = sadd.s32 4294967295, %s5717_s30   ;;  %s4976_s10 = sadd.s32 4294967294, %s5717_s30   ;;  %s5717_s30 = sphi %s5778_s30, %s7206_s30   ;;  %s5713_s29 = sphi %s5776_s29, %s7205_s29   ;;  %s5709_s28 = sphi %s5774_s28, %s7204_s28   ;;  %s5705_s27 = sphi %s5772_s27, %s7203_s27  }
   0x6   : > { %s5797_s11 = sadd.s32 1, %s5717_s30   ;;  %s32_s12 = sadd.s32 1, %s5713_s29 }
   0x7   : > { %s29_s13 = ssub.s32 %s5717_s30, %s5797_s11  ;;  %p39_p0 = scmp.ne.s32.totalorder %s5713_s29, %s5709_s28 }
   0x8   : > { %p30_p1 = scmp.eq.s32.totalorder %s29_s13, 0  ;;  %p40_p2 = scmp.eq.s32.totalorder %s5717_s30, 0 }
   0x9   : > { %p195_p3 = scmp.eq.s32.totalorder %s5793_s9, 1  ;;  %p200_p4 = scmp.ne.s32.totalorder %s5709_s28, %s5705_s27 }
   0xa   : > { %s5809_s14 = scalar_select %p30_p1, %s5713_s29, %s32_s12  }
   0xb   : > { %p41_p5 = por %p40_p2, %p39_p0  ;;  %p5811_p6 = por %p195_p3, %p39_p0 }
   0xc   : > { %p201_p7 = scmp.eq.s32.totalorder %s4976_s10, 1  ;;  %p4978_p9 = scmp.ge.s32.totalorder %s5717_s30, 2 }
   0xe   : > { %p5815_p8 = por %p201_p7, %p200_p4  ;;  %261 = sbr.rel (%p4978_p9) target bundleno = 28 (0x1c), region = 40 }
  0x15   : > { %264 = sbr.rel (!%p41_p5) target bundleno = 28 (0x1c), region = 44  ;;  %s266_s17 = sand.u32 (%p41_p5), 1, %s5713_s29  }
  0x16   : > { %s5380_s18 = sshll.u32 (%p41_p5), %s5717_s30, 4  ;;  %s4979_s19 = sshll.u32 (%p41_p5), %s266_s17, 5 }
  0x17   : > { %s271_s22 = scalar_lea.vmem (%p41_p5), %s7192_s0, %s5380_s18  ;;  %s268_s23 = scalar_lea.vmem (%p41_p5), [#allocation2], %s4979_s19 }
  0x18   : > { %v284_v0 = vld [vmem:[%s271_s22] sm:$0xff] (%p41_p5)  ;;  %v286_v1 = vld [vmem:[%s271_s22 + $0x8] sm:$0xff] (%p41_p5) }
  0x19   : > { %v288_v2 = vld [vmem:[%s271_s22 + $0x20] sm:$0xff] (%p41_p5)  ;;  %285 = vst [vmem:[%s268_s23] sm:$0xff] (%p41_p5), %v284_v0  ;;  %287 = vst [vmem:[%s268_s23 + $0x8] sm:$0xff] (%p41_p5), %v286_v1  ;;  %v290_v3 = vld [vmem:[%s271_s22 + $0x28] sm:$0xff] (%p41_p5) }
  0x1a   : > { %289 = vst [vmem:[%s268_s23 + $0x10] sm:$0xff] (%p41_p5), %v288_v2  ;;  %291 = vst [vmem:[%s268_s23 + $0x18] sm:$0xff] (%p41_p5), %v290_v3 }
  0x1c PF: > { %p4982_p10 = scmp.ge.s32.totalorder %s5717_s30, 1  ;;  %p296_p11 = scmp.lt.s32.totalorder %s5717_s30, 3 }
  0x1e   : > { %p297_p12 = pnand %p4982_p10, %p296_p11 }
  0x1f   : > { %v5020_v4 = vld [vmem:[%s7194_s2 + $0xc8] sm:$0xf] (!%p297_p12)  ;;  %v5018_v5 = vld [vmem:[%s7194_s2 + $0xc0] sm:$0xf] (!%p297_p12)  ;;  %s5836_s12 = sand.u32 (!%p297_p12), 1, %s5709_s28   ;;  %v5719_v6 = vmov (!%p297_p12), 0  }
  0x20   : > { %300 = sbr.rel (%p297_p12) target bundleno = 3344 (0xd10), region = 67  ;;  %5450 = vset.pattern.permute.xlu1 (!%p297_p12), %v5719_v6  ;;  %5449 = vset.pattern.permute.xlu0 (!%p297_p12), %v5719_v6  ;;  %s4983_s13 = sshll.u32 (!%p297_p12), %s5836_s12, 5  ;;  %v5021_v7 = vld [vmem:[%s7194_s2 + $0xcc] sm:$0xf] (!%p297_p12)  ;;  %v5019_v8 = vld [vmem:[%s7194_s2 + $0xc4] sm:$0xf] (!%p297_p12) }
  0x21   : > { %605 = vperm.xlu1 (!%p297_p12), %5450, %v5020_v4   ;;  %581 = vperm.xlu0 (!%p297_p12), %5449, %v5018_v5   ;;  %s5849_s21 = scalar_lea.vmem (!%p297_p12), [#allocation2], %s4983_s13  ;;  %v5023_v15 = vld [vmem:[%s7194_s2 + $0xd4] sm:$0xf] (!%p297_p12)  ;;  %v5022_v16 = vld [vmem:[%s7194_s2 + $0xd0] sm:$0xf] (!%p297_p12)  ;;  %v5451_v17 = vld [vmem:[%s7193_s1 + $0xc0] sm:$0xff] (!%p297_p12)  }
  0x22   : > { %v346_v9 = vld [vmem:[%s5849_s21 + $0x8] sm:$0xff] (!%p297_p12)  ;;  %v348_v10 = vld [vmem:[%s5849_s21 + $0x18] sm:$0xff] (!%p297_p12)  ;;  %v345_v11 = vld [vmem:[%s5849_s21] sm:$0xff] (!%p297_p12)  ;;  %465 = vmatprep.mubr.bf16.mxu0 (!%p297_p12), %v5719_v6  ;;  %948 = vmatprep.mubr.bf16.mxu1 (!%p297_p12), %v5719_v6  ;;  %vm408_vm0 = vcmask (!%p297_p12), 130048   ;;  %s333_s26 = scalar_lea.vmem (!%p297_p12), [#allocation3], %s4983_s13  ;;  %s5381_s17 = sshll.u32 (!%p297_p12), %s5793_s9, 8 }
  0x23   : > { %v350_v12 = vpack.c.bf16 (!%p297_p12), %v348_v10, %v346_v9  ;;  %v347_v13 = vld [vmem:[%s5849_s21 + $0x10] sm:$0xff] (!%p297_p12)  ;;  %v5025_v18 = vld [vmem:[%s7194_s2 + $0xdc] sm:$0xf] (!%p297_p12)  ;;  %v5024_v19 = vld [vmem:[%s7194_s2 + $0xd8] sm:$0xf] (!%p297_p12)  ;;  %s4862_s10 = sshll.u32 (!%p297_p12), %s333_s26, 4  ;;  %s7105_s10 = int_to_ptr.vmem [resolvable:$true] %s4862_s10 }
  0x24   : > { %v349_v14 = vpack.c.bf16 (!%p297_p12), %v347_v13, %v345_v11  ;;  %v5027_v20 = vld [vmem:[%s7194_s2 + $0xe4] sm:$0xf] (!%p297_p12)  ;;  %v5026_v21 = vld [vmem:[%s7194_s2 + $0xe0] sm:$0xf] (!%p297_p12)  ;;  %v5452_v22 = vld [vmem:[%s7193_s1 + $0xc8] sm:$0xff] (!%p297_p12)   ;;  %s4844_s19 = scalar_lea.sflag (!%p297_p12), [#allocation4], %s5836_s12 }
  0x25   : > { %617 = vperm.xlu1 (!%p297_p12), %5450, %v5021_v7   ;;  %593 = vperm.xlu0 (!%p297_p12), %5449, %v5019_v8   ;;  %v5029_v23 = vld [vmem:[%s7194_s2 + $0xec] sm:$0xf] (!%p297_p12)  ;;  %v5028_v24 = vld [vmem:[%s7194_s2 + $0xe8] sm:$0xf] (!%p297_p12)  ;;  %v5031_v25 = vld [vmem:[%s7194_s2 + $0xf4] sm:$0xf] (!%p297_p12) }
  0x26   : > { %433 = vmatprep.subr.bf16.mxu0 (!%p297_p12), %v350_v12  ;;  %v5030_v26 = vld [vmem:[%s7194_s2 + $0xf0] sm:$0xf] (!%p297_p12)  ;;  %v5033_v28 = vld [vmem:[%s7194_s2 + $0xfc] sm:$0xf] (!%p297_p12)  ;;  %v5032_v29 = vld [vmem:[%s7194_s2 + $0xf8] sm:$0xf] (!%p297_p12) }
  0x27   : > { %434 = vmatpush1.bf16.msra.mxu0 %v349_v14  ;;  %v5453_v27 = vld [vmem:[%s7193_s1 + $0xd0] sm:$0xff]   ;;  %v5067_v30 = vld [vmem:[%s7196_s4 + $0xc4] sm:$0xf]  ;;  %v5066_v31 = vld [vmem:[%s7196_s4 + $0xc0] sm:$0xf]  ;;  %s5623_s20 = scalar_lea.vmem %s7105_s10, 512 }
  0x28   : > { %v5454_v32 = vld [vmem:[%s7193_s1 + $0xd8] sm:$0xff]   ;;  %v5069_v33 = vld [vmem:[%s7196_s4 + $0xcc] sm:$0xf]  ;;  %v5068_v34 = vld [vmem:[%s7196_s4 + $0xc8] sm:$0xf]  ;;  %p5624_p13 = scmp.ne.s32.totalorder %s7105_s10, %s5623_s20  ;;  %s5721_s22 = smov [#allocation3]  }
  0x29   : > { %641 = vperm.xlu1 %5450, %v5023_v15   ;;  %629 = vperm.xlu0 %5449, %v5022_v16   ;;  %v5071_v35 = vld [vmem:[%s7196_s4 + $0xd4] sm:$0xf]  ;;  %v5070_v36 = vld [vmem:[%s7196_s4 + $0xd0] sm:$0xf]  ;;  %v5455_v37 = vld [vmem:[%s7193_s1 + $0xe0] sm:$0xff]   ;;  %s5627_s23 = sshll.u32 %s5721_s22, 4  ;;  %s5628_s23 = int_to_ptr.vmem [resolvable:$false] %s5627_s23 }
  0x2a   : > { %5010 = vmatmul.mubr.msk.bf16.vlgmr.msra.gmra.mrb[0].mxu0 %vm408_vm0, %v5451_v17  ;;  %v5073_v38 = vld [vmem:[%s7196_s4 + $0xdc] sm:$0xf]  ;;  %v5072_v39 = vld [vmem:[%s7196_s4 + $0xd8] sm:$0xf]  ;;  %v5075_v40 = vld [vmem:[%s7196_s4 + $0xe4] sm:$0xf]  ;;  %p5625_p0 = pnand %p5624_p13, %p5811_p6  ;;  %p5630_p2 = scmp.lt.s32.totalorder %s7105_s10, %s5628_s23 }
  0x2b   : > { %475 = vmatprep.mubr.bf16.mxu0 %v5719_v6  ;;  %v5074_v41 = vld [vmem:[%s7196_s4 + $0xe0] sm:$0xf]  ;;  %v5456_v42 = vld [vmem:[%s7193_s1 + $0xe8] sm:$0xff]   ;;  %v5079_v45 = vld [vmem:[%s7196_s4 + $0xf4] sm:$0xf]  ;;  %s5629_s24 = scalar_lea.vmem %s5628_s23, 1024 }
  0x2c   : > { %v5077_v43 = vld [vmem:[%s7196_s4 + $0xec] sm:$0xf]  ;;  %v5076_v44 = vld [vmem:[%s7196_s4 + $0xe8] sm:$0xf]  ;;  %v5078_v46 = vld [vmem:[%s7196_s4 + $0xf0] sm:$0xf]  ;;  %p5626_p1 = pneg %p5625_p0  ;;  %p5631_p3 = scmp.lt.s32.totalorder %s5629_s24, %s5623_s20 }
  0x2d   : > { %665 = vperm.xlu1 %5450, %v5025_v18   ;;  %653 = vperm.xlu0 %5449, %v5024_v19   ;;  %v5457_v47 = vld [vmem:[%s7193_s1 + $0xf0] sm:$0xff]   ;;  %v5081_v48 = vld [vmem:[%s7196_s4 + $0xfc] sm:$0xf]  ;;  %v5080_v49 = vld [vmem:[%s7196_s4 + $0xf8] sm:$0xf] }
  0x2e   : > { %v5095_v50 = vld [vmem:[%s7198_s6 + $0x68] sm:$0xff]  ;;  %v5094_v51 = vld [vmem:[%s7198_s6 + $0x60] sm:$0xff]  ;;  %v5458_v52 = vld [vmem:[%s7193_s1 + $0xf8] sm:$0xff]   ;;  %p5632_p4 = por %p5631_p3, %p5630_p2 }
  0x2f   : > { %v5097_v53 = vld [vmem:[%s7198_s6 + $0x78] sm:$0xff]  ;;  %v5096_v54 = vld [vmem:[%s7198_s6 + $0x70] sm:$0xff]  ;;  %v5133_v55 = vld [vmem:[%s7194_s2 + $0x84] sm:$0xf] }
  0x30   : > { %v5132_v56 = vld [vmem:[%s7194_s2 + $0x80] sm:$0xf]  ;;  %v5135_v57 = vld [vmem:[%s7194_s2 + $0x8c] sm:$0xf]  ;;  %v5134_v58 = vld [vmem:[%s7194_s2 + $0x88] sm:$0xf]  ;;  %p5633_p5 = pnand %p5632_p4, %p5626_p1 }
  0x31   : > { %689 = vperm.xlu1 %5450, %v5027_v20   ;;  %677 = vperm.xlu0 %5449, %v5026_v21   ;;  %v5137_v59 = vld [vmem:[%s7194_s2 + $0x94] sm:$0xf]  ;;  %v5136_v60 = vld [vmem:[%s7194_s2 + $0x90] sm:$0xf]  ;;  %v5139_v61 = vld [vmem:[%s7194_s2 + $0x9c] sm:$0xf] }
  0x32   : > { %5011 = vmatmul.mubr.msk.bf16.gmra.mrb[4].mxu0 %vm408_vm0, %v5452_v22  ;;  %v5138_v62 = vld [vmem:[%s7194_s2 + $0x98] sm:$0xf]  ;;  %v5141_v63 = vld [vmem:[%s7194_s2 + $0xa4] sm:$0xf]  ;;  %v5140_v0 = vld [vmem:[%s7194_s2 + $0xa0] sm:$0xf] }
  0x33   : > { %485 = vmatprep.mubr.bf16.mxu0 %v5719_v6  ;;  %v5143_v1 = vld [vmem:[%s7194_s2 + $0xac] sm:$0xf]  ;;  %v5142_v2 = vld [vmem:[%s7194_s2 + $0xa8] sm:$0xf]  ;;  %v5145_v3 = vld [vmem:[%s7194_s2 + $0xb4] sm:$0xf] }
  0x34   : > { %v5144_v4 = vld [vmem:[%s7194_s2 + $0xb0] sm:$0xf]  ;;  %v5147_v5 = vld [vmem:[%s7194_s2 + $0xbc] sm:$0xf]  ;;  %v5146_v7 = vld [vmem:[%s7194_s2 + $0xb8] sm:$0xf] }
  0x35   : > { %713 = vperm.xlu1 %5450, %v5029_v23   ;;  %701 = vperm.xlu0 %5449, %v5028_v24   ;;  %v5181_v8 = vld [vmem:[%s7196_s4 + $0x84] sm:$0xf]  ;;  %v5180_v9 = vld [vmem:[%s7196_s4 + $0x80] sm:$0xf]  ;;  %v5183_v10 = vld [vmem:[%s7196_s4 + $0x8c] sm:$0xf] }
  0x36   : > { %v5182_v11 = vld [vmem:[%s7196_s4 + $0x88] sm:$0xf]  ;;  %v5185_v12 = vld [vmem:[%s7196_s4 + $0x94] sm:$0xf]  ;;  %v5184_v13 = vld [vmem:[%s7196_s4 + $0x90] sm:$0xf] }
  0x37   : > { %v5187_v14 = vld [vmem:[%s7196_s4 + $0x9c] sm:$0xf]  ;;  %v5186_v15 = vld [vmem:[%s7196_s4 + $0x98] sm:$0xf]  ;;  %v5189_v16 = vld [vmem:[%s7196_s4 + $0xa4] sm:$0xf] }
  0x38   : > { %v5188_v17 = vld [vmem:[%s7196_s4 + $0xa0] sm:$0xf]  ;;  %v5191_v18 = vld [vmem:[%s7196_s4 + $0xac] sm:$0xf]  ;;  %v5190_v19 = vld [vmem:[%s7196_s4 + $0xa8] sm:$0xf] }
  0x39   : > { %737 = vperm.xlu1 %5450, %v5031_v25   ;;  %725 = vperm.xlu0 %5449, %v5030_v26   ;;  %v5193_v20 = vld [vmem:[%s7196_s4 + $0xb4] sm:$0xf]  ;;  %v5192_v21 = vld [vmem:[%s7196_s4 + $0xb0] sm:$0xf]  ;;  %v5195_v22 = vld [vmem:[%s7196_s4 + $0xbc] sm:$0xf] }
  0x3a   : > { %5012 = vmatmul.mubr.msk.bf16.gmra.mrb[8].mxu0 %vm408_vm0, %v5453_v27  ;;  %v5194_v23 = vld [vmem:[%s7196_s4 + $0xb8] sm:$0xf]  ;;  %v5209_v24 = vld [vmem:[%s7198_s6 + $0x48] sm:$0xff]  ;;  %v5208_v25 = vld [vmem:[%s7198_s6 + $0x40] sm:$0xff] }
  0x3b   : > { %495 = vmatprep.mubr.bf16.mxu0 %v5719_v6  ;;  %v5211_v26 = vld [vmem:[%s7198_s6 + $0x58] sm:$0xff]  ;;  %v5210_v27 = vld [vmem:[%s7198_s6 + $0x50] sm:$0xff] }
  0x3d   : > { %761 = vperm.xlu1 %5450, %v5033_v28   ;;  %749 = vperm.xlu0 %5449, %v5032_v29   ;;  %v5247_v28 = vld [vmem:[%s7194_s2 + $0x44] sm:$0xf]  ;;  %v5246_v29 = vld [vmem:[%s7194_s2 + $0x40] sm:$0xf] }
  0x41   : > { %1076 = vperm.xlu1 %5450, %v5067_v30   ;;  %1064 = vperm.xlu0 %5449, %v5066_v31   ;;  %v5249_v30 = vld [vmem:[%s7194_s2 + $0x4c] sm:$0xf]  ;;  %v5248_v31 = vld [vmem:[%s7194_s2 + $0x48] sm:$0xf] }
  0x42   : > { %5013 = vmatmul.mubr.msk.bf16.gmra.mrb[12].mxu0 %vm408_vm0, %v5454_v32  ;;  %v5251_v32 = vld [vmem:[%s7194_s2 + $0x54] sm:$0xf] }
  0x43   : > { %505 = vmatprep.mubr.bf16.mxu0 %v5719_v6 }
  0x45   : > { %1100 = vperm.xlu1 %5450, %v5069_v33   ;;  %1088 = vperm.xlu0 %5449, %v5068_v34   ;;  %v5250_v33 = vld [vmem:[%s7194_s2 + $0x50] sm:$0xf] }
  0x49   : > { %1124 = vperm.xlu1 %5450, %v5071_v35   ;;  %1112 = vperm.xlu0 %5449, %v5070_v36   ;;  %v5253_v36 = vld [vmem:[%s7194_s2 + $0x5c] sm:$0xf] }
  0x4a   : > { %5014 = vmatmul.mubr.msk.bf16.gmra.mrb[16].mxu0 %vm408_vm0, %v5455_v37  ;;  %v5252_v37 = vld [vmem:[%s7194_s2 + $0x58] sm:$0xf] }
  0x4b   : > { %515 = vmatprep.mubr.bf16.mxu0 %v5719_v6 }
  0x4d   : > { %1148 = vperm.xlu1 %5450, %v5073_v38   ;;  %1136 = vperm.xlu0 %5449, %v5072_v39   ;;  %v5255_v39 = vld [vmem:[%s7194_s2 + $0x64] sm:$0xf] }
  0x51   : > { %1172 = vperm.xlu1 %5450, %v5075_v40   ;;  %1160 = vperm.xlu0 %5449, %v5074_v41   ;;  %v5254_v40 = vld [vmem:[%s7194_s2 + $0x60] sm:$0xf] }
  0x52   : > { %5015 = vmatmul.mubr.msk.bf16.gmra.mrb[20].mxu0 %vm408_vm0, %v5456_v42  ;;  %v5257_v42 = vld [vmem:[%s7194_s2 + $0x6c] sm:$0xf] }
  0x53   : > { %525 = vmatprep.mubr.bf16.mxu0 %v5719_v6 }
  0x55   : > { %1196 = vperm.xlu1 %5450, %v5077_v43   ;;  %1184 = vperm.xlu0 %5449, %v5076_v44   ;;  %v5256_v43 = vld [vmem:[%s7194_s2 + $0x68] sm:$0xf] }
  0x59   : > { %1220 = vperm.xlu1 %5450, %v5079_v45   ;;  %1208 = vperm.xlu0 %5449, %v5078_v46   ;;  %v5259_v46 = vld [vmem:[%s7194_s2 + $0x74] sm:$0xf] }
  0x5a   : > { %5016 = vmatmul.mubr.msk.bf16.gmra.mrb[24].mxu0 %vm408_vm0, %v5457_v47  ;;  %v5258_v47 = vld [vmem:[%s7194_s2 + $0x70] sm:$0xf] }
  0x5b   : > { %535 = vmatprep.mubr.bf16.mxu0 %v5719_v6 }
  0x5d   : > { %1244 = vperm.xlu1 %5450, %v5081_v48   ;;  %1232 = vperm.xlu0 %5449, %v5080_v49   ;;  %v5261_v49 = vld [vmem:[%s7194_s2 + $0x7c] sm:$0xf] }
  0x61   : > { %1351 = vperm.xlu1 %5450, %v5095_v50   ;;  %1346 = vperm.xlu0 %5449, %v5094_v51   ;;  %v5260_v50 = vld [vmem:[%s7194_s2 + $0x78] sm:$0xf] }
  0x62   : > { %5017 = vmatmul.mubr.msk.bf16.gmra.mrb[28].mxu0 %vm408_vm0, %v5458_v52  ;;  %v5295_v52 = vld [vmem:[%s7196_s4 + $0x44] sm:$0xf] }
  0x63   : > { %1408 = vmatprep.mubr.bf16.mxu0 %v5719_v6 }
  0x65   : > { %1361 = vperm.xlu1 %5450, %v5097_v53   ;;  %1356 = vperm.xlu0 %5449, %v5096_v54   ;;  %v5294_v53 = vld [vmem:[%s7196_s4 + $0x40] sm:$0xf] }
  0x69   : > { %1704 = vperm.xlu1 %5450, %v5133_v55   ;;  %1692 = vperm.xlu0 %5449, %v5132_v56   ;;  %v5297_v56 = vld [vmem:[%s7196_s4 + $0x4c] sm:$0xf] }
  0x6d   : > { %1728 = vperm.xlu1 %5450, %v5135_v57   ;;  %1716 = vperm.xlu0 %5449, %v5134_v58   ;;  %v5296_v57 = vld [vmem:[%s7196_s4 + $0x48] sm:$0xf] }
  0x71   : > { %1752 = vperm.xlu1 %5450, %v5137_v59   ;;  %1740 = vperm.xlu0 %5449, %v5136_v60   ;;  %v5299_v59 = vld [vmem:[%s7196_s4 + $0x54] sm:$0xf]  ;;  %v5298_v60 = vld [vmem:[%s7196_s4 + $0x50] sm:$0xf] }
  0x75   : > { %1776 = vperm.xlu1 %5450, %v5139_v61   ;;  %1764 = vperm.xlu0 %5449, %v5138_v62   ;;  %v5301_v62 = vld [vmem:[%s7196_s4 + $0x5c] sm:$0xf] }
  0x79   : > { %1800 = vperm.xlu1 %5450, %v5141_v63   ;;  %1788 = vperm.xlu0 %5449, %v5140_v0   ;;  %v5300_v63 = vld [vmem:[%s7196_s4 + $0x58] sm:$0xf] }
  0x7d   : > { %1824 = vperm.xlu1 %5450, %v5143_v1   ;;  %1812 = vperm.xlu0 %5449, %v5142_v2   ;;  %v5303_v2 = vld [vmem:[%s7196_s4 + $0x64] sm:$0xf] }
  0x81   : > { %1848 = vperm.xlu1 %5450, %v5145_v3   ;;  %1836 = vperm.xlu0 %5449, %v5144_v4   ;;  %v5302_v3 = vld [vmem:[%s7196_s4 + $0x60] sm:$0xf] }
  0x85   : > { %1872 = vperm.xlu1 %5450, %v5147_v5   ;;  %1860 = vperm.xlu0 %5449, %v5146_v7   ;;  %v5305_v5 = vld [vmem:[%s7196_s4 + $0x6c] sm:$0xf]  ;;  %v5304_v7 = vld [vmem:[%s7196_s4 + $0x68] sm:$0xf] }
  0x89   : > { %2187 = vperm.xlu1 %5450, %v5181_v8   ;;  %2175 = vperm.xlu0 %5449, %v5180_v9   ;;  %v5307_v9 = vld [vmem:[%s7196_s4 + $0x74] sm:$0xf] }
  0x8d   : > { %2211 = vperm.xlu1 %5450, %v5183_v10   ;;  %2199 = vperm.xlu0 %5449, %v5182_v11   ;;  %v5306_v10 = vld [vmem:[%s7196_s4 + $0x70] sm:$0xf] }
  0x91   : > { %2235 = vperm.xlu1 %5450, %v5185_v12   ;;  %2223 = vperm.xlu0 %5449, %v5184_v13   ;;  %v5309_v13 = vld [vmem:[%s7196_s4 + $0x7c] sm:$0xf] }
  0x95   : > { %2259 = vperm.xlu1 %5450, %v5187_v14   ;;  %2247 = vperm.xlu0 %5449, %v5186_v15   ;;  %v5308_v14 = vld [vmem:[%s7196_s4 + $0x78] sm:$0xf]  ;;  %v5720_v15 = vmov 839922192  }
  0x99   : > { %2283 = vperm.xlu1 %5450, %v5189_v16   ;;  %2271 = vperm.xlu0 %5449, %v5188_v17   ;;  %v585_v16 = vunpack.c.l.s4 %v5720_v15  ;;  %v587_v17 = vlaneseq }
  0x9d   : > { %2307 = vperm.xlu1 %5450, %v5191_v18   ;;  %2295 = vperm.xlu0 %5449, %v5190_v19   ;;  %v5323_v19 = vld [vmem:[%s7198_s6 + $0x28] sm:$0xff] }
  0xa0   : > { %v6119_v34 = vpop.permute.xlu1 %605  ;;  %v6121_v35 = vpop.permute.xlu0 %581 }
  0xa1   : > { %2331 = vperm.xlu1 %5450, %v5193_v20   ;;  %2319 = vperm.xlu0 %5449, %v5192_v21   ;;  %v5322_v20 = vld [vmem:[%s7198_s6 + $0x20] sm:$0xff] }
  0xa4   : > { %v6129_v38 = vpop.permute.xlu1 %617  ;;  %v6137_v41 = vpop.permute.xlu0 %593 }
  0xa5   : > { %2355 = vperm.xlu1 %5450, %v5195_v22   ;;  %2343 = vperm.xlu0 %5449, %v5194_v23   ;;  %v586_v22 = vunpack.c.0.s8 %v585_v16  ;;  %v6244_v23 = vshrl.u32 %v587_v17, 7 }
  0xa8   : > { %v6145_v44 = vpop.permute.xlu1 %641  ;;  %v6147_v45 = vpop.permute.xlu0 %629 }
  0xa9   : > { %2462 = vperm.xlu1 %5450, %v5209_v24   ;;  %2457 = vperm.xlu0 %5449, %v5208_v25   ;;  %v5325_v24 = vld [vmem:[%s7198_s6 + $0x38] sm:$0xff]  ;;  %v5324_v25 = vld [vmem:[%s7198_s6 + $0x30] sm:$0xff] }
  0xac   : > { %v6155_v48 = vpop.permute.xlu1 %665  ;;  %v6163_v51 = vpop.permute.xlu0 %653 }
  0xad   : > { %2472 = vperm.xlu1 %5450, %v5211_v26   ;;  %2467 = vperm.xlu0 %5449, %v5210_v27  }
  0xb0   : > { %v6171_v54 = vpop.permute.xlu1 %689  ;;  %v6173_v55 = vpop.permute.xlu0 %677 }
  0xb1   : > { %2815 = vperm.xlu1 %5450, %v5247_v28   ;;  %2803 = vperm.xlu0 %5449, %v5246_v29   ;;  %v6257_v28 = vsub.s32 %v586_v22, %v6244_v23  ;;  %v3895_v29 = vld [vmem:[%s7194_s2 + $0x4] sm:$0xf] }
  0xb3   : > { %v638_v22 = vrot.slane %v6147_v45, %v6257_v28 }
  0xb4   : > { %v6181_v58 = vpop.permute.xlu1 %713  ;;  %v6189_v61 = vpop.permute.xlu0 %701 }
  0xb5   : > { %2839 = vperm.xlu1 %5450, %v5249_v30   ;;  %2827 = vperm.xlu0 %5449, %v5248_v31   ;;  %v3894_v30 = vld [vmem:[%s7194_s2] sm:$0xf]  ;;  %v590_v31 = vrot.slane %v6121_v35, %v6257_v28 }
  0xb8   : > { %v6197_v0 = vpop.permute.xlu1 %737  ;;  %v6199_v1 = vpop.permute.xlu0 %725 }
  0xb9   : > { %2863 = vperm.xlu1 %5450, %v5251_v32   ;;  %2851 = vperm.xlu0 %5449, %v5250_v33   ;;  %v602_v32 = vrot.slane %v6137_v41, %v6257_v28  ;;  %v3899_v41 = vld [vmem:[%s7194_s2 + $0x14] sm:$0xf] }
  0xbc   : > { %v6207_v4 = vpop.permute.xlu1 %761  ;;  %v6215_v8 = vpop.permute.xlu0 %749 }
  0xbd   : > { %2887 = vperm.xlu1 %5450, %v5253_v36   ;;  %2875 = vperm.xlu0 %5449, %v5252_v37   ;;  %v3897_v36 = vld [vmem:[%s7194_s2 + $0xc] sm:$0xf]  ;;  %v3896_v37 = vld [vmem:[%s7194_s2 + $0x8] sm:$0xf] }
  0xc0   : > { %v6223_v11 = vpop.permute.xlu1 %1076  ;;  %v6225_v12 = vpop.permute.xlu0 %1064 }
  0xc1   : > { %2911 = vperm.xlu1 %5450, %v5255_v39   ;;  %2899 = vperm.xlu0 %5449, %v5254_v40  }
  0xc4   : > { %v6233_v18 = vpop.permute.xlu1 %1100  ;;  %v6241_v21 = vpop.permute.xlu0 %1088 }
  0xc5   : > { %2935 = vperm.xlu1 %5450, %v5257_v42   ;;  %2923 = vperm.xlu0 %5449, %v5256_v43   ;;  %v5034_v42 = vcombine.low %v590_v31, %v602_v32  ;;  %v3898_v43 = vld [vmem:[%s7194_s2 + $0x10] sm:$0xf] }
  0xc8   : > { %v6252_v26 = vpop.permute.xlu1 %1124  ;;  %v6254_v27 = vpop.permute.xlu0 %1112 }
  0xc9   : > { %2959 = vperm.xlu1 %5450, %v5259_v46   ;;  %2947 = vperm.xlu0 %5449, %v5258_v47  }
  0xcc   : > { %v6269_v33 = vpop.permute.xlu1 %1148  ;;  %v6277_v39 = vpop.permute.xlu0 %1136 }
  0xcd   : > { %2983 = vperm.xlu1 %5450, %v5261_v49   ;;  %2971 = vperm.xlu0 %5449, %v5260_v50  }
  0xd0   : > { %v6285_v47 = vpop.permute.xlu1 %1172 }
  0xd1   : > { %3298 = vperm.xlu1 %5450, %v5295_v52   ;;  %3286 = vperm.xlu0 %5449, %v5294_v53   ;;  %v6287_v52 = vpop.permute.xlu0 %1160 }
  0xd5   : > { %3322 = vperm.xlu1 %5450, %v5297_v56   ;;  %3310 = vperm.xlu0 %5449, %v5296_v57   ;;  %v614_v56 = vrot.slane %v6119_v34, %v6257_v28  ;;  %v626_v57 = vrot.slane %v6129_v38, %v6257_v28  ;;  %v6300_v34 = vpop.permute.xlu1 %1196 }
  0xd9   : > { %3346 = vperm.xlu1 %5450, %v5299_v59   ;;  %3334 = vperm.xlu0 %5449, %v5298_v60   ;;  %v3901_v60 = vld [vmem:[%s7194_s2 + $0x1c] sm:$0xf]  ;;  %v6321_v31 = vpop.permute.xlu1 %1220 }
  0xdd   : > { %3370 = vperm.xlu1 %5450, %v5301_v62   ;;  %3358 = vperm.xlu0 %5449, %v5300_v63   ;;  %v3900_v62 = vld [vmem:[%s7194_s2 + $0x18] sm:$0xf] }
  0xe1   : > { %3394 = vperm.xlu1 %5450, %v5303_v2   ;;  %3382 = vperm.xlu0 %5449, %v5302_v3  }
  0xe5   : > { %3418 = vperm.xlu1 %5450, %v5305_v5   ;;  %3406 = vperm.xlu0 %5449, %v5304_v7   ;;  %v5035_v5 = vcombine.low %v614_v56, %v626_v57  ;;  %v6337_v56 = vpop.permute.xlu1 %1244 }
  0xe9   : > { %3442 = vperm.xlu1 %5450, %v5307_v9   ;;  %3430 = vperm.xlu0 %5449, %v5306_v10   ;;  %v3903_v9 = vld [vmem:[%s7194_s2 + $0x24] sm:$0xf]  ;;  %v3902_v10 = vld [vmem:[%s7194_s2 + $0x20] sm:$0xf] }
  0xed   : > { %3466 = vperm.xlu1 %5450, %v5309_v13   ;;  %3454 = vperm.xlu0 %5449, %v5308_v14   ;;  %v6309_v13 = vpop.permute.xlu0 %1184 }
  0xf1   : > { %3573 = vperm.xlu1 %5450, %v5323_v19   ;;  %3568 = vperm.xlu0 %5449, %v5322_v20   ;;  %v650_v20 = vrot.slane %v6145_v44, %v6257_v28  ;;  %v6323_v32 = vpop.permute.xlu0 %1208 }
  0xf3   : > { %v5036_v45 = vcombine.low %v638_v22, %v650_v20  ;;  %v4378_v22 = vld [vmem:[%s7196_s4 + $0xc] sm:$0xf] }
  0xf5   : > { %3583 = vperm.xlu1 %5450, %v5325_v24   ;;  %3578 = vperm.xlu0 %5449, %v5324_v25   ;;  %v3905_v25 = vld [vmem:[%s7194_s2 + $0x2c] sm:$0xf] }
  0xf9   : > { %3924 = vperm.xlu1 %5450, %v3895_v29   ;;  %3912 = vperm.xlu0 %5449, %v3894_v30   ;;  %v3904_v29 = vld [vmem:[%s7194_s2 + $0x28] sm:$0xf] }
  0xfd   : > { %v467_v40 = vpop.f32.mrb[0].mxu0  ;;  %3948 = vperm.xlu1 %5450, %v3897_v36   ;;  %3936 = vperm.xlu0 %5449, %v3896_v37  }
  0xfe   : > { %v469_v35 = vpop.f32.mrb[1].mxu0 }
  0xff   : > { %v471_v46 = vpop.f32.mrb[2].mxu0 }
 0x100   : > { %v546_v49 = vpack.c.bf16 %v471_v46, %v467_v40  ;;  %v473_v50 = vpop.f32.mrb[3].mxu0 }
 0x101   : > { %v547_v53 = vpack.c.bf16 %v473_v50, %v469_v35  ;;  %3972 = vperm.xlu1 %5450, %v3899_v41   ;;  %3960 = vperm.xlu0 %5449, %v3898_v43   ;;  %v3906_v35 = vld [vmem:[%s7194_s2 + $0x30] sm:$0xf]  ;;  %v674_v50 = vrot.slane %v6155_v48, %v6257_v28 }
 0x102   : > { %v819_v59 = vadd.bf16 %v5034_v42, %v546_v49 }
 0x103   : > { %v820_v63 = vadd.bf16 %v5034_v42, %v547_v53  ;;  %v3907_v42 = vld [vmem:[%s7194_s2 + $0x34] sm:$0xf]  ;;  %v662_v53 = vrot.slane %v6163_v51, %v6257_v28 }
 0x104   : > { %v835_v38 = vmax.bf16 %v5719_v6, %v819_v59  ;;  %v3909_v59 = vld [vmem:[%s7194_s2 + $0x3c] sm:$0xf] }
 0x105   : > { %v477_v2 = vpop.f32.mrb[4].mxu0  ;;  %3996 = vperm.xlu1 %5450, %v3901_v60   ;;  %3984 = vperm.xlu0 %5449, %v3900_v62   ;;  %v836_v3 = vmax.bf16 %v5719_v6, %v820_v63  ;;  %v3908_v60 = vld [vmem:[%s7194_s2 + $0x38] sm:$0xf]  ;;  %v6345_v62 = vpop.permute.xlu0 %1232  ;;  %v5037_v51 = vcombine.low %v662_v53, %v674_v50  ;;  %v4382_v53 = vld [vmem:[%s7196_s4 + $0x1c] sm:$0xf] }
 0x106   : > { %v479_v7 = vpop.f32.mrb[5].mxu0 }
 0x107   : > { %v481_v14 = vpop.f32.mrb[6].mxu0  ;;  %916 = vmatprep.subr.bf16.mxu1 %v836_v3 }
 0x108   : > { %v548_v15 = vpack.c.bf16 %v481_v14, %v477_v2  ;;  %v483_v16 = vpop.f32.mrb[7].mxu0  ;;  %917 = vmatpush1.bf16.msra.mxu1 %v835_v38  ;;  %v4375_v38 = vld [vmem:[%s7196_s4] sm:$0xf] }
 0x109   : > { %v549_v19 = vpack.c.bf16 %v483_v16, %v479_v7  ;;  %4020 = vperm.xlu1 %5450, %v3903_v9   ;;  %4008 = vperm.xlu0 %5449, %v3902_v10   ;;  %v4376_v7 = vld [vmem:[%s7196_s4 + $0x4] sm:$0xf]  ;;  %v6355_v10 = vpop.permute.xlu1 %1351  ;;  %v6357_v16 = vpop.permute.xlu0 %1346 }
 0x10a   : > { %v821_v24 = vadd.bf16 %v5035_v5, %v548_v15 }
 0x10b   : > { %v822_v30 = vadd.bf16 %v5035_v5, %v549_v19 }
 0x10c   : > { %v837_v40 = vmax.bf16 %v5719_v6, %v821_v24  ;;  %v4377_v24 = vld [vmem:[%s7196_s4 + $0x8] sm:$0xf] }
 0x10d   : > { %v487_v36 = vpop.f32.mrb[8].mxu0  ;;  %4044 = vperm.xlu1 %5450, %v3905_v25   ;;  %4032 = vperm.xlu0 %5449, %v3904_v29   ;;  %v838_v44 = vmax.bf16 %v5719_v6, %v822_v30  ;;  %v698_v29 = vrot.slane %v6171_v54, %v6257_v28  ;;  %v686_v30 = vrot.slane %v6173_v55, %v6257_v28  ;;  %v4379_v54 = vld [vmem:[%s7196_s4 + $0x10] sm:$0xf] }
 0x10e   : > { %v489_v37 = vpop.f32.mrb[9].mxu0 }
 0x10f   : > { %v491_v41 = vpop.f32.mrb[10].mxu0  ;;  %918 = vmatprep.subr.bf16.mxu1 %v838_v44 }
 0x110   : > { %v550_v43 = vpack.c.bf16 %v491_v41, %v487_v36  ;;  %v493_v46 = vpop.f32.mrb[11].mxu0  ;;  %919 = vmatpush1.bf16.msra.mxu1 %v837_v40  ;;  %v5038_v41 = vcombine.low %v686_v30, %v698_v29 }
 0x111   : > { %v551_v49 = vpack.c.bf16 %v493_v46, %v489_v37  ;;  %4068 = vperm.xlu1 %5450, %v3907_v42   ;;  %4056 = vperm.xlu0 %5449, %v3906_v35   ;;  %v4380_v42 = vld [vmem:[%s7196_s4 + $0x14] sm:$0xf]  ;;  %v6379_v35 = vpop.permute.xlu0 %1356 }
 0x112   : > { %v823_v57 = vadd.bf16 %v5036_v45, %v550_v43 }
 0x113   : > { %v824_v63 = vadd.bf16 %v5036_v45, %v551_v49  ;;  %v6370_v45 = vpop.permute.xlu1 %1361 }
 0x114   : > { %v839_v5 = vmax.bf16 %v5719_v6, %v823_v57  ;;  %v4381_v57 = vld [vmem:[%s7196_s4 + $0x18] sm:$0xf] }
 0x115   : > { %v497_v2 = vpop.f32.mrb[12].mxu0  ;;  %4092 = vperm.xlu1 %5450, %v3909_v59   ;;  %4080 = vperm.xlu0 %5449, %v3908_v60   ;;  %v840_v48 = vmax.bf16 %v5719_v6, %v824_v63  ;;  %v722_v60 = vrot.slane %v6181_v58, %v6257_v28  ;;  %v710_v63 = vrot.slane %v6189_v61, %v6257_v28  ;;  %v4383_v58 = vld [vmem:[%s7196_s4 + $0x20] sm:$0xf] }
 0x116   : > { %v499_v3 = vpop.f32.mrb[13].mxu0 }
 0x117   : > { %v501_v9 = vpop.f32.mrb[14].mxu0  ;;  %920 = vmatprep.subr.bf16.mxu1 %v840_v48  ;;  %v6393_v48 = vpop.permute.xlu0 %1692 }
 0x118   : > { %v552_v14 = vpack.c.bf16 %v501_v9, %v497_v2  ;;  %v503_v15 = vpop.f32.mrb[15].mxu0  ;;  %921 = vmatpush1.bf16.msra.mxu1 %v839_v5  ;;  %v6391_v2 = vpop.permute.xlu1 %1704  ;;  %v5039_v9 = vcombine.low %v710_v63, %v722_v60  ;;  %v4389_v60 = vld [vmem:[%s7196_s4 + $0x38] sm:$0xf] }
 0x119   : > { %v553_v19 = vpack.c.bf16 %v503_v15, %v499_v3  ;;  %4405 = vperm.xlu1 %5450, %v4376_v7   ;;  %4393 = vperm.xlu0 %5449, %v4375_v38   ;;  %v4384_v38 = vld [vmem:[%s7196_s4 + $0x24] sm:$0xf] }
 0x11a   : > { %v825_v20 = vadd.bf16 %v5037_v51, %v552_v14 }
 0x11b   : > { %v826_v25 = vadd.bf16 %v5037_v51, %v553_v19  ;;  %v6411_v29 = vpop.permute.xlu0 %1716 }
 0x11c   : > { %v841_v40 = vmax.bf16 %v5719_v6, %v825_v20  ;;  %v6403_v20 = vpop.permute.xlu1 %1728 }
 0x11d   : > { %v507_v36 = vpop.f32.mrb[16].mxu0  ;;  %4429 = vperm.xlu1 %5450, %v4378_v22   ;;  %4417 = vperm.xlu0 %5449, %v4377_v24   ;;  %v842_v44 = vmax.bf16 %v5719_v6, %v826_v25  ;;  %v4386_v24 = vld [vmem:[%s7196_s4 + $0x2c] sm:$0xf]  ;;  %v4385_v25 = vld [vmem:[%s7196_s4 + $0x28] sm:$0xf] }
 0x11e   : > { %v509_v37 = vpop.f32.mrb[17].mxu0 }
 0x11f   : > { %v511_v55 = vpop.f32.mrb[18].mxu0  ;;  %922 = vmatprep.subr.bf16.mxu1 %v842_v44  ;;  %v734_v44 = vrot.slane %v6199_v1, %v6257_v28 }
 0x120   : > { %v554_v43 = vpack.c.bf16 %v511_v55, %v507_v36  ;;  %v513_v46 = vpop.f32.mrb[19].mxu0  ;;  %923 = vmatpush1.bf16.msra.mxu1 %v841_v40  ;;  %v746_v36 = vrot.slane %v6197_v0, %v6257_v28  ;;  %v4388_v55 = vld [vmem:[%s7196_s4 + $0x34] sm:$0xf]  ;;  %v6425_v1 = vpop.permute.xlu1 %1752 }
 0x121   : > { %v555_v49 = vpack.c.bf16 %v513_v46, %v509_v37  ;;  %4453 = vperm.xlu1 %5450, %v4380_v42   ;;  %4441 = vperm.xlu0 %5449, %v4379_v54  }
 0x122   : > { %v827_v50 = vadd.bf16 %v5038_v41, %v554_v43  ;;  %v5040_v43 = vcombine.low %v734_v44, %v746_v36  ;;  %v4669_v36 = vld [vmem:[%s7198_s6 + $0x10] sm:$0xff] }
 0x123   : > { %v828_v59 = vadd.bf16 %v5038_v41, %v555_v49  ;;  %v4387_v41 = vld [vmem:[%s7196_s4 + $0x30] sm:$0xf] }
 0x124   : > { %v843_v7 = vmax.bf16 %v5719_v6, %v827_v50  ;;  %v6427_v50 = vpop.permute.xlu0 %1740 }
 0x125   : > { %v517_v51 = vpop.f32.mrb[20].mxu0  ;;  %4477 = vperm.xlu1 %5450, %v4382_v53   ;;  %4465 = vperm.xlu0 %5449, %v4381_v57   ;;  %v844_v3 = vmax.bf16 %v5719_v6, %v828_v59  ;;  %v4390_v59 = vld [vmem:[%s7196_s4 + $0x3c] sm:$0xf] }
 0x126   : > { %v519_v5 = vpop.f32.mrb[21].mxu0 }
 0x127   : > { %v521_v61 = vpop.f32.mrb[22].mxu0  ;;  %924 = vmatprep.subr.bf16.mxu1 %v844_v3  ;;  %v758_v3 = vrot.slane %v6215_v8, %v6257_v28 }
 0x128   : > { %v556_v14 = vpack.c.bf16 %v521_v61, %v517_v51  ;;  %v523_v15 = vpop.f32.mrb[23].mxu0  ;;  %925 = vmatpush1.bf16.msra.mxu1 %v843_v7  ;;  %v770_v51 = vrot.slane %v6207_v4, %v6257_v28  ;;  %v4667_v4 = vld [vmem:[%s7198_s6] sm:$0xff] }
 0x129   : > { %v557_v19 = vpack.c.bf16 %v523_v15, %v519_v5  ;;  %4501 = vperm.xlu1 %5450, %v4384_v38   ;;  %4489 = vperm.xlu0 %5449, %v4383_v58   ;;  %v6440_v38 = vpop.permute.xlu1 %1776 }
 0x12a   : > { %v829_v22 = vadd.bf16 %v5039_v9, %v556_v14  ;;  %v6449_v14 = vpop.permute.xlu0 %1764  ;;  %v5041_v15 = vcombine.low %v758_v3, %v770_v51 }
 0x12b   : > { %v830_v30 = vadd.bf16 %v5039_v9, %v557_v19  ;;  %v4668_v9 = vld [vmem:[%s7198_s6 + $0x8] sm:$0xff] }
 0x12c   : > { %v845_v54 = vmax.bf16 %v5719_v6, %v829_v22 }
 0x12d   : > { %v527_v37 = vpop.f32.mrb[24].mxu0  ;;  %4525 = vperm.xlu1 %5450, %v4386_v24   ;;  %4513 = vperm.xlu0 %5449, %v4385_v25   ;;  %v846_v40 = vmax.bf16 %v5719_v6, %v830_v30  ;;  %v4670_v30 = vld [vmem:[%s7198_s6 + $0x18] sm:$0xff] }
 0x12e   : > { %v529_v42 = vpop.f32.mrb[25].mxu0 }
 0x12f   : > { %v531_v0 = vpop.f32.mrb[26].mxu0  ;;  %926 = vmatprep.subr.bf16.mxu1 %v846_v40  ;;  %v6459_v40 = vpop.permute.xlu0 %1788 }
 0x130   : > { %v558_v46 = vpack.c.bf16 %v531_v0, %v527_v37  ;;  %v533_v49 = vpop.f32.mrb[27].mxu0  ;;  %927 = vmatpush1.bf16.msra.mxu1 %v845_v54  ;;  %v6457_v37 = vpop.permute.xlu1 %1800  ;;  %v5461_v0 = vld [vmem:[%s7195_s3 + $0xd0] sm:$0xff]  }
 0x131   : > { %v559_v53 = vpack.c.bf16 %v533_v49, %v529_v42  ;;  %4549 = vperm.xlu1 %5450, %v4388_v55   ;;  %4537 = vperm.xlu0 %5449, %v4387_v41   ;;  %v5459_v55 = vld [vmem:[%s7195_s3 + $0xc0] sm:$0xff]   ;;  %v5460_v41 = vld [vmem:[%s7195_s3 + $0xc8] sm:$0xff]  }
 0x132   : > { %v831_v57 = vadd.bf16 %v5040_v43, %v558_v46  ;;  %v5463_v46 = vld [vmem:[%s7195_s3 + $0xe0] sm:$0xff]   ;;  %v5464_v49 = vld [vmem:[%s7195_s3 + $0xe8] sm:$0xff]  }
 0x133   : > { %v832_v63 = vadd.bf16 %v5040_v43, %v559_v53  ;;  %v5462_v43 = vld [vmem:[%s7195_s3 + $0xd8] sm:$0xff]   ;;  %v5465_v53 = vld [vmem:[%s7195_s3 + $0xf0] sm:$0xff]  }
 0x134   : > { %v847_v61 = vmax.bf16 %v5719_v6, %v831_v57  ;;  %v5466_v57 = vld [vmem:[%s7195_s3 + $0xf8] sm:$0xff]  }
 0x135   : > { %v537_v5 = vpop.f32.mrb[28].mxu0  ;;  %4573 = vperm.xlu1 %5450, %v4390_v59   ;;  %4561 = vperm.xlu0 %5449, %v4389_v60   ;;  %v848_v7 = vmax.bf16 %v5719_v6, %v832_v63  ;;  %v1085_v59 = vrot.slane %v6223_v11, %v6257_v28  ;;  %v1073_v60 = vrot.slane %v6225_v12, %v6257_v28 }
 0x136   : > { %v539_v58 = vpop.f32.mrb[29].mxu0 }
 0x137   : > { %v541_v8 = vpop.f32.mrb[30].mxu0  ;;  %928 = vmatprep.subr.bf16.mxu1 %v848_v7 }
 0x138   : > { %v560_v19 = vpack.c.bf16 %v541_v8, %v537_v5  ;;  %v543_v22 = vpop.f32.mrb[31].mxu0  ;;  %929 = vmatpush1.bf16.msra.mxu1 %v847_v61  ;;  %v5082_v5 = vcombine.low %v1073_v60, %v1085_v59  ;;  %v1109_v8 = vrot.slane %v6233_v18, %v6257_v28  ;;  %v1133_v18 = vrot.slane %v6252_v26, %v6257_v28 }
 0x139   : > { %v561_v24 = vpack.c.bf16 %v543_v22, %v539_v58  ;;  %4678 = vperm.xlu1 %5450, %v4668_v9   ;;  %4673 = vperm.xlu0 %5449, %v4667_v4   ;;  %v1157_v26 = vrot.slane %v6269_v33, %v6257_v28  ;;  %v1181_v33 = vrot.slane %v6285_v47, %v6257_v28 }
 0x13a   : > { %v833_v25 = vadd.bf16 %v5041_v15, %v560_v19  ;;  %v1205_v47 = vrot.slane %v6300_v34, %v6257_v28  ;;  %v1229_v34 = vrot.slane %v6321_v31, %v6257_v28  ;;  %v1253_v31 = vrot.slane %v6337_v56, %v6257_v28 }
 0x13b   : > { %v834_v44 = vadd.bf16 %v5041_v15, %v561_v24  ;;  %v1097_v15 = vrot.slane %v6241_v21, %v6257_v28  ;;  %v1121_v21 = vrot.slane %v6254_v27, %v6257_v28  ;;  %v1145_v27 = vrot.slane %v6277_v39, %v6257_v28 }
 0x13c   : > { %v849_v54 = vmax.bf16 %v5719_v6, %v833_v25  ;;  %v1169_v39 = vrot.slane %v6287_v52, %v6257_v28  ;;  %v1193_v52 = vrot.slane %v6309_v13, %v6257_v28  ;;  %v1217_v13 = vrot.slane %v6323_v32, %v6257_v28 }
 0x13d   : > { %4688 = vperm.xlu1 %5450, %v4670_v30   ;;  %4683 = vperm.xlu0 %5449, %v4669_v36   ;;  %v850_v42 = vmax.bf16 %v5719_v6, %v834_v44  ;;  %v5083_v25 = vcombine.low %v1097_v15, %v1109_v8  ;;  %v1241_v32 = vrot.slane %v6345_v62, %v6257_v28  ;;  %v5467_v62 = vld [vmem:[%s7197_s5 + $0x30] sm:$0xff]  }
 0x13f   : > { %930 = vmatprep.subr.bf16.mxu1 %v850_v42 }
 0x140   : > { %931 = vmatpush1.bf16.msra.mxu1 %v849_v54 }
 0x143   : > { %949 = vmatmul.mubr.bf16.vlgmr.msra.gmra.mrb[0].mxu1 %v5459_v55 }
 0x144   : > { %958 = vmatprep.mubr.bf16.mxu1 %v5719_v6 }
 0x14b   : > { %959 = vmatmul.mubr.bf16.gmra.mrb[4].mxu1 %v5460_v41 }
 0x14c   : > { %968 = vmatprep.mubr.bf16.mxu1 %v5719_v6 }
 0x153   : > { %969 = vmatmul.mubr.bf16.gmra.mrb[8].mxu1 %v5461_v0 }
 0x154   : > { %978 = vmatprep.mubr.bf16.mxu1 %v5719_v6 }
 0x15b   : > { %979 = vmatmul.mubr.bf16.gmra.mrb[12].mxu1 %v5462_v43 }
 0x15c   : > { %988 = vmatprep.mubr.bf16.mxu1 %v5719_v6 }
 0x163   : > { %989 = vmatmul.mubr.bf16.gmra.mrb[16].mxu1 %v5463_v46 }
 0x164   : > { %998 = vmatprep.mubr.bf16.mxu1 %v5719_v6 }
 0x16b   : > { %999 = vmatmul.mubr.bf16.gmra.mrb[20].mxu1 %v5464_v49  ;;  %v5084_v49 = vcombine.low %v1121_v21, %v1133_v18 }
 0x16c   : > { %1008 = vmatprep.mubr.bf16.mxu1 %v5719_v6 }
 0x173   : > { %1009 = vmatmul.mubr.bf16.gmra.mrb[24].mxu1 %v5465_v53 }
 0x174   : > { %1018 = vmatprep.mubr.bf16.mxu1 %v5719_v6 }
 0x17b   : > { %1019 = vmatmul.mubr.bf16.gmra.mrb[28].mxu1 %v5466_v57 }
 0x17c   : > { %2059 = vmatprep.mubr.bf16.mxu1 %v5719_v6 }
 0x216   : > { %v950_v63 = vpop.f32.mrb[0].mxu1 }
 0x217   : > { %v952_v51 = vpop.f32.mrb[1].mxu1 }
 0x218   : > { %v954_v3 = vpop.f32.mrb[2].mxu1 }
 0x219   : > { %v1029_v7 = vpack.c.bf16 %v954_v3, %v950_v63  ;;  %v956_v58 = vpop.f32.mrb[3].mxu1 }
 0x21a   : > { %v1030_v61 = vpack.c.bf16 %v956_v58, %v952_v51 }
 0x21b   : > { %v1302_v9 = vadd.bf16 %v5082_v5, %v1029_v7 }
 0x21c   : > { %v1303_v4 = vadd.bf16 %v5082_v5, %v1030_v61  ;;  %v5085_v61 = vcombine.low %v1145_v27, %v1157_v26 }
 0x21d   : > { %v1318_v12 = vmax.bf16 %v5719_v6, %v1302_v9 }
 0x21e   : > { %v960_v19 = vpop.f32.mrb[4].mxu1  ;;  %v1319_v11 = vmax.bf16 %v5719_v6, %v1303_v4 }
 0x21f   : > { %v962_v22 = vpop.f32.mrb[5].mxu1 }
 0x220   : > { %v964_v24 = vpop.f32.mrb[6].mxu1  ;;  %1376 = vmatprep.subr.bf16.mxu0 %v1319_v11 }
 0x221   : > { %v1031_v30 = vpack.c.bf16 %v964_v24, %v960_v19  ;;  %v966_v36 = vpop.f32.mrb[7].mxu1  ;;  %1377 = vmatpush1.bf16.msra.mxu0 %v1318_v12 }
 0x222   : > { %v1032_v44 = vpack.c.bf16 %v966_v36, %v962_v22 }
 0x223   : > { %v1304_v42 = vadd.bf16 %v5083_v25, %v1031_v30  ;;  %v5086_v30 = vcombine.low %v1169_v39, %v1181_v33 }
 0x224   : > { %v1305_v54 = vadd.bf16 %v5083_v25, %v1032_v44 }
 0x225   : > { %v1320_v0 = vmax.bf16 %v5719_v6, %v1304_v42 }
 0x226   : > { %v970_v55 = vpop.f32.mrb[8].mxu1  ;;  %v1321_v41 = vmax.bf16 %v5719_v6, %v1305_v54 }
 0x227   : > { %v972_v43 = vpop.f32.mrb[9].mxu1 }
 0x228   : > { %v974_v46 = vpop.f32.mrb[10].mxu1  ;;  %1378 = vmatprep.subr.bf16.mxu0 %v1321_v41 }
 0x229   : > { %v1033_v53 = vpack.c.bf16 %v974_v46, %v970_v55  ;;  %v976_v57 = vpop.f32.mrb[11].mxu1  ;;  %1379 = vmatpush1.bf16.msra.mxu0 %v1320_v0  ;;  %v5087_v46 = vcombine.low %v1193_v52, %v1205_v47 }
 0x22a   : > { %v1034_v59 = vpack.c.bf16 %v976_v57, %v972_v43 }
 0x22b   : > { %v1306_v60 = vadd.bf16 %v5084_v49, %v1033_v53 }
 0x22c   : > { %v1307_v63 = vadd.bf16 %v5084_v49, %v1034_v59 }
 0x22d   : > { %v1322_v5 = vmax.bf16 %v5719_v6, %v1306_v60 }
 0x22e   : > { %v980_v51 = vpop.f32.mrb[12].mxu1  ;;  %v1323_v3 = vmax.bf16 %v5719_v6, %v1307_v63 }
 0x22f   : > { %v982_v7 = vpop.f32.mrb[13].mxu1 }
 0x230   : > { %v984_v58 = vpop.f32.mrb[14].mxu1  ;;  %1380 = vmatprep.subr.bf16.mxu0 %v1323_v3 }
 0x231   : > { %v1035_v9 = vpack.c.bf16 %v984_v58, %v980_v51  ;;  %v986_v4 = vpop.f32.mrb[15].mxu1  ;;  %1381 = vmatpush1.bf16.msra.mxu0 %v1322_v5  ;;  %v5088_v5 = vcombine.low %v1217_v13, %v1229_v34 }
 0x232   : > { %v1036_v8 = vpack.c.bf16 %v986_v4, %v982_v7 }
 0x233   : > { %v1308_v15 = vadd.bf16 %v5085_v61, %v1035_v9 }
 0x234   : > { %v1309_v19 = vadd.bf16 %v5085_v61, %v1036_v8 }
 0x235   : > { %v1324_v22 = vmax.bf16 %v5719_v6, %v1308_v15 }
 0x236   : > { %v990_v11 = vpop.f32.mrb[16].mxu1  ;;  %v1325_v12 = vmax.bf16 %v5719_v6, %v1309_v19 }
 0x237   : > { %v992_v24 = vpop.f32.mrb[17].mxu1 }
 0x238   : > { %v994_v25 = vpop.f32.mrb[18].mxu1  ;;  %1382 = vmatprep.subr.bf16.mxu0 %v1325_v12 }
 0x239   : > { %v1037_v36 = vpack.c.bf16 %v994_v25, %v990_v11  ;;  %v996_v44 = vpop.f32.mrb[19].mxu1  ;;  %1383 = vmatpush1.bf16.msra.mxu0 %v1324_v22  ;;  %v5089_v11 = vcombine.low %v1241_v32, %v1253_v31  ;;  %v5619_v32 = vld [vmem:[%s5849_s21 + $0x10] sm:$0xff] }
 0x23a   : > { %v1038_v42 = vpack.c.bf16 %v996_v44, %v992_v24  ;;  %v5468_v44 = vld [vmem:[%s7197_s5 + $0x38] sm:$0xff]  }
 0x23b   : > { %v1310_v54 = vadd.bf16 %v5086_v30, %v1037_v36 }
 0x23c   : > { %v1311_v18 = vadd.bf16 %v5086_v30, %v1038_v42 }
 0x23d   : > { %v1326_v41 = vmax.bf16 %v5719_v6, %v1310_v54 }
 0x23e   : > { %v1000_v21 = vpop.f32.mrb[20].mxu1  ;;  %v1327_v55 = vmax.bf16 %v5719_v6, %v1311_v18 }
 0x23f   : > { %v1002_v0 = vpop.f32.mrb[21].mxu1 }
 0x240   : > { %v1004_v43 = vpop.f32.mrb[22].mxu1  ;;  %1384 = vmatprep.subr.bf16.mxu0 %v1327_v55 }
 0x241   : > { %v1039_v49 = vpack.c.bf16 %v1004_v43, %v1000_v21  ;;  %v1006_v53 = vpop.f32.mrb[23].mxu1  ;;  %1385 = vmatpush1.bf16.msra.mxu0 %v1326_v41 }
 0x242   : > { %v1040_v57 = vpack.c.bf16 %v1006_v53, %v1002_v0 }
 0x243   : > { %v1312_v59 = vadd.bf16 %v5087_v46, %v1039_v49 }
 0x244   : > { %v1313_v60 = vadd.bf16 %v5087_v46, %v1040_v57 }
 0x245   : > { %v1328_v27 = vmax.bf16 %v5719_v6, %v1312_v59 }
 0x246   : > { %v1010_v63 = vpop.f32.mrb[24].mxu1  ;;  %v1329_v26 = vmax.bf16 %v5719_v6, %v1313_v60 }
 0x247   : > { %v1012_v51 = vpop.f32.mrb[25].mxu1 }
 0x248   : > { %v1014_v3 = vpop.f32.mrb[26].mxu1  ;;  %1386 = vmatprep.subr.bf16.mxu0 %v1329_v26 }
 0x249   : > { %v1041_v7 = vpack.c.bf16 %v1014_v3, %v1010_v63  ;;  %v1016_v58 = vpop.f32.mrb[27].mxu1  ;;  %1387 = vmatpush1.bf16.msra.mxu0 %v1328_v27 }
 0x24a   : > { %v1042_v61 = vpack.c.bf16 %v1016_v58, %v1012_v51 }
 0x24b   : > { %v1314_v9 = vadd.bf16 %v5088_v5, %v1041_v7 }
 0x24c   : > { %v1315_v4 = vadd.bf16 %v5088_v5, %v1042_v61 }
 0x24d   : > { %v1330_v19 = vmax.bf16 %v5719_v6, %v1314_v9 }
 0x24e   : > { %v1020_v8 = vpop.f32.mrb[28].mxu1  ;;  %v1331_v15 = vmax.bf16 %v5719_v6, %v1315_v4 }
 0x24f   : > { %v1022_v33 = vpop.f32.mrb[29].mxu1 }
 0x250   : > { %v1024_v39 = vpop.f32.mrb[30].mxu1  ;;  %1388 = vmatprep.subr.bf16.mxu0 %v1331_v15 }
 0x251   : > { %v1043_v12 = vpack.c.bf16 %v1024_v39, %v1020_v8  ;;  %v1026_v22 = vpop.f32.mrb[31].mxu1  ;;  %1389 = vmatpush1.bf16.msra.mxu0 %v1330_v19  ;;  %v5620_v19 = vld [vmem:[%s5849_s21 + $0x8] sm:$0xff]  ;;  %v5621_v39 = vld [vmem:[%s5849_s21 + $0x18] sm:$0xff] }
 0x252   : > { %v1044_v24 = vpack.c.bf16 %v1026_v22, %v1022_v33  ;;  %v5622_v22 = vld [vmem:[%s5849_s21] sm:$0xff]  ;;  %s7111_s21 = scalar_lea.hbm %s7199_s7, %s5381_s17 }
 0x253   : > { %v1316_v25 = vadd.bf16 %v5089_v11, %v1043_v12 }
 0x254   : > { %v1317_v30 = vadd.bf16 %v5089_v11, %v1044_v24 }
 0x255   : > { %v1332_v36 = vmax.bf16 %v5719_v6, %v1316_v25 }
 0x256   : > { %v1333_v56 = vmax.bf16 %v5719_v6, %v1317_v30 }
 0x258   : > { %1390 = vmatprep.subr.bf16.mxu0 %v1333_v56 }
 0x259   : > { %1391 = vmatpush1.bf16.msra.mxu0 %v1332_v36 }
 0x25c   : > { %1409 = vmatmul.mubr.bf16.vlgmr.msra.gmra.mrb[32].mxu0 %v5467_v62 }
 0x25d   : > { %1418 = vmatprep.mubr.bf16.mxu0 %v5719_v6 }
 0x264   : > { %1419 = vmatmul.mubr.bf16.gmra.mrb[36].mxu0 %v5468_v44 }
 0x265   : > { %1576 = vmatprep.mubr.bf16.mxu0 %v5719_v6 }
 0x32f   : > { %v1410_v42 = vpop.f32.mrb[32].mxu0 }
 0x330   : > { %v1411_v54 = vadd.f32 %v1410_v42, %v6357_v16  ;;  %v1412_v18 = vpop.f32.mrb[33].mxu0  ;;  %v5469_v42 = vld [vmem:[%s7193_s1 + $0x80] sm:$0xff]  }
 0x331   : > { %v1413_v47 = vadd.f32 %v1412_v18, %v6357_v16  ;;  %v1414_v52 = vpop.f32.mrb[34].mxu0  ;;  %v5471_v18 = vld [vmem:[%s7193_s1 + $0x90] sm:$0xff]  }
 0x332   : > { %5523 = vtanh.f32 %v1411_v54  ;;  %v1415_v21 = vadd.f32 %v1414_v52, %v6355_v10  ;;  %v1416_v55 = vpop.f32.mrb[35].mxu0  ;;  %v5470_v54 = vld [vmem:[%s7193_s1 + $0x88] sm:$0xff]   ;;  %v5473_v52 = vld [vmem:[%s7193_s1 + $0xa0] sm:$0xff]  }
 0x333   : > { %5525 = vtanh.f32 %v1413_v47  ;;  %v1417_v41 = vadd.f32 %v1416_v55, %v6355_v10  ;;  %v5472_v47 = vld [vmem:[%s7193_s1 + $0x98] sm:$0xff]   ;;  %v5475_v55 = vld [vmem:[%s7193_s1 + $0xb0] sm:$0xff]  }
 0x334   : > { %5527 = vtanh.f32 %v1415_v21  ;;  %v5474_v21 = vld [vmem:[%s7193_s1 + $0xa8] sm:$0xff]  }
 0x335   : > { %5529 = vtanh.f32 %v1417_v41  ;;  %v5476_v41 = vld [vmem:[%s7193_s1 + $0xb8] sm:$0xff]  }
 0x337   : > { %v1420_v0 = vpop.f32.mrb[36].mxu0 }
 0x338   : > { %v1422_v43 = vpop.f32.mrb[37].mxu0  ;;  %v1421_v46 = vadd.f32 %v1420_v0, %v6379_v35  ;;  %v1713_v0 = vrot.slane %v6391_v2, %v6257_v28 }
 0x339   : > { %v1424_v49 = vpop.f32.mrb[38].mxu0  ;;  %v1423_v53 = vadd.f32 %v1422_v43, %v6379_v35  ;;  %v1701_v43 = vrot.slane %v6393_v48, %v6257_v28 }
 0x33a   : > { %v1426_v57 = vpop.f32.mrb[39].mxu0  ;;  %v1425_v16 = vadd.f32 %v1424_v49, %v6370_v45  ;;  %5531 = vtanh.f32 %v1421_v46 }
 0x33b   : > { %v1427_v60 = vadd.f32 %v1426_v57, %v6370_v45  ;;  %5533 = vtanh.f32 %v1423_v53  ;;  %v5148_v57 = vcombine.low %v1701_v43, %v1713_v0 }
 0x33c   : > { %v6558_v59 = vpop.eup %5523  ;;  %5535 = vtanh.f32 %v1425_v16 }
 0x33d   : > { %v6561_v34 = vpop.eup %5525  ;;  %v1441_v10 = vsub.f32 0.0, %v6558_v59  ;;  %5537 = vtanh.f32 %v1427_v60 }
 0x33e   : > { %v6564_v13 = vpop.eup %5527  ;;  %v1442_v63 = vsub.f32 0.0, %v6561_v34 }
 0x33f   : > { %v6567_v26 = vpop.eup %5529  ;;  %v1445_v35 = vmul.f32 1.442695, %v1441_v10  ;;  %v1443_v27 = vsub.f32 0.0, %v6564_v13 }
 0x340   : > { %v1447_v51 = vmul.f32 1.442695, %v1442_v63  ;;  %v1444_v45 = vsub.f32 0.0, %v6567_v26 }
 0x341   : > { %5539 = vpow2.f32 %v1445_v35  ;;  %v1449_v3 = vmul.f32 1.442695, %v1443_v27  ;;  %v1737_v27 = vrot.slane %v6403_v20, %v6257_v28  ;;  %v1761_v20 = vrot.slane %v6425_v1, %v6257_v28 }
 0x342   : > { %5541 = vpow2.f32 %v1447_v51  ;;  %v1451_v5 = vmul.f32 1.442695, %v1444_v45  ;;  %v1725_v51 = vrot.slane %v6411_v29, %v6257_v28  ;;  %v1749_v29 = vrot.slane %v6427_v50, %v6257_v28 }
 0x343   : > { %5543 = vpow2.f32 %v1449_v3  ;;  %v1785_v1 = vrot.slane %v6440_v38, %v6257_v28  ;;  %v1773_v50 = vrot.slane %v6449_v14, %v6257_v28  ;;  %v1809_v38 = vrot.slane %v6457_v37, %v6257_v28 }
 0x344   : > { %5545 = vpow2.f32 %v1451_v5  ;;  %v5532_v7 = vpop.eup %5531  ;;  %v1797_v14 = vrot.slane %v6459_v40, %v6257_v28 }
 0x345   : > { %v5534_v58 = vpop.eup %5533  ;;  %v1437_v24 = vsub.f32 %v5622_v22, %v5532_v7  ;;  %v5149_v7 = vcombine.low %v1725_v51, %v1737_v27  ;;  %v1825_v51 = vpop.permute.xlu1 %1824 }
 0x346   : > { %v5536_v61 = vpop.eup %5535  ;;  %v1438_v33 = vsub.f32 %v5620_v19, %v5534_v58 }
 0x347   : > { %v5538_v9 = vpop.eup %5537  ;;  %v1439_v8 = vsub.f32 %v5619_v32, %v5536_v61 }
 0x348   : > { %v1440_v11 = vsub.f32 %v5621_v39, %v5538_v9  ;;  %v5150_v39 = vcombine.low %v1749_v29, %v1761_v20 }
 0x349   : > { %v1849_v29 = vpop.permute.xlu1 %1848 }
 0x34b   : > { %v5540_v4 = vpop.eup %5539 }
 0x34c   : > { %v5542_v31 = vpop.eup %5541  ;;  %v6581_v36 = vmul.f32 %v5540_v4, %v1437_v24 }
 0x34d   : > { %v5544_v15 = vpop.eup %5543  ;;  %v6577_v30 = vmul.f32 %v5542_v31, %v1438_v33 }
 0x34e   : > { %v5546_v12 = vpop.eup %5545  ;;  %v6575_v25 = vmul.f32 %v5544_v15, %v1439_v8 }
 0x34f   : > { %v6579_v56 = vmul.f32 %v5546_v12, %v1440_v11 }
 0x350   : > { %v1461_v44 = vpack.c.bf16 %v6575_v25, %v6581_v36 }
 0x351   : > { %v1462_v62 = vpack.c.bf16 %v6579_v56, %v6577_v30 }
 0x353   : > { %1544 = vmatprep.subr.bf16.mxu0 %v1462_v62 }
 0x354   : > { %1545 = vmatpush1.bf16.msra.mxu0 %v1461_v44 }
 0x357   : > { %5124 = vmatmul.mubr.msk.bf16.vlgmr.msra.gmra.mrb[40].mxu0 %vm408_vm0, %v5469_v42 }
 0x358   : > { %1586 = vmatprep.mubr.bf16.mxu0 %v5719_v6 }
 0x35f   : > { %5125 = vmatmul.mubr.msk.bf16.gmra.mrb[44].mxu0 %vm408_vm0, %v5470_v54 }
 0x360   : > { %1596 = vmatprep.mubr.bf16.mxu0 %v5719_v6 }
 0x367   : > { %5126 = vmatmul.mubr.msk.bf16.gmra.mrb[48].mxu0 %vm408_vm0, %v5471_v18 }
 0x368   : > { %1606 = vmatprep.mubr.bf16.mxu0 %v5719_v6 }
 0x36f   : > { %5127 = vmatmul.mubr.msk.bf16.gmra.mrb[52].mxu0 %vm408_vm0, %v5472_v47 }
 0x370   : > { %1616 = vmatprep.mubr.bf16.mxu0 %v5719_v6 }
 0x377   : > { %5128 = vmatmul.mubr.msk.bf16.gmra.mrb[56].mxu0 %vm408_vm0, %v5473_v52  ;;  %v5151_v52 = vcombine.low %v1773_v50, %v1785_v1 }
 0x378   : > { %1626 = vmatprep.mubr.bf16.mxu0 %v5719_v6 }
 0x37f   : > { %5129 = vmatmul.mubr.msk.bf16.gmra.mrb[60].mxu0 %vm408_vm0, %v5474_v21 }
 0x380   : > { %1636 = vmatprep.mubr.bf16.mxu0 %v5719_v6 }
 0x387   : > { %5130 = vmatmul.mubr.msk.bf16.gmra.mrb[64].mxu0 %vm408_vm0, %v5475_v55 }
 0x388   : > { %1646 = vmatprep.mubr.bf16.mxu0 %v5719_v6 }
 0x38f   : > { %5131 = vmatmul.mubr.msk.bf16.gmra.mrb[68].mxu0 %vm408_vm0, %v5476_v41 }
 0x390   : > { %2519 = vmatprep.mubr.bf16.mxu0 %v5719_v6 }
 0x42a   : > { %v1578_v46 = vpop.f32.mrb[40].mxu0 }
 0x42b   : > { %v1580_v49 = vpop.f32.mrb[41].mxu0 }
 0x42c   : > { %v1582_v53 = vpop.f32.mrb[42].mxu0 }
 0x42d   : > { %v1657_v16 = vpack.c.bf16 %v1582_v53, %v1578_v46  ;;  %v1584_v60 = vpop.f32.mrb[43].mxu0 }
 0x42e   : > { %v1658_v10 = vpack.c.bf16 %v1584_v60, %v1580_v49  ;;  %v5152_v60 = vcombine.low %v1797_v14, %v1809_v38 }
 0x42f   : > { %v1930_v63 = vadd.bf16 %v5148_v57, %v1657_v16 }
 0x430   : > { %v1931_v35 = vadd.bf16 %v5148_v57, %v1658_v10 }
 0x431   : > { %v1946_v48 = vmax.bf16 %v5719_v6, %v1930_v63 }
 0x432   : > { %v1588_v45 = vpop.f32.mrb[44].mxu0  ;;  %v1947_v2 = vmax.bf16 %v5719_v6, %v1931_v35 }
 0x433   : > { %v1590_v3 = vpop.f32.mrb[45].mxu0 }
 0x434   : > { %v1592_v5 = vpop.f32.mrb[46].mxu0  ;;  %2027 = vmatprep.subr.bf16.mxu1 %v1947_v2  ;;  %v1833_v2 = vrot.slane %v1825_v51, %v6257_v28  ;;  %v5481_v51 = vld [vmem:[%s7195_s3 + $0xa0] sm:$0xff]  }
 0x435   : > { %v1659_v58 = vpack.c.bf16 %v1592_v5, %v1588_v45  ;;  %v1594_v61 = vpop.f32.mrb[47].mxu0  ;;  %2028 = vmatpush1.bf16.msra.mxu1 %v1946_v48  ;;  %v1813_v45 = vpop.permute.xlu0 %1812 }
 0x436   : > { %v1660_v9 = vpack.c.bf16 %v1594_v61, %v1590_v3  ;;  %v1821_v40 = vrot.slane %v1813_v45, %v6257_v28  ;;  %v5482_v45 = vld [vmem:[%s7195_s3 + $0xa8] sm:$0xff]  }
 0x437   : > { %v1932_v4 = vadd.bf16 %v5149_v7, %v1659_v58 }
 0x438   : > { %v1933_v31 = vadd.bf16 %v5149_v7, %v1660_v9  ;;  %v5153_v61 = vcombine.low %v1821_v40, %v1833_v2  ;;  %v5484_v2 = vld [vmem:[%s7195_s3 + $0xb8] sm:$0xff]  }
 0x439   : > { %v1948_v15 = vmax.bf16 %v5719_v6, %v1932_v4 }
 0x43a   : > { %v1598_v32 = vpop.f32.mrb[48].mxu0  ;;  %v1949_v8 = vmax.bf16 %v5719_v6, %v1933_v31 }
 0x43b   : > { %v1600_v19 = vpop.f32.mrb[49].mxu0 }
 0x43c   : > { %v1602_v33 = vpop.f32.mrb[50].mxu0  ;;  %2029 = vmatprep.subr.bf16.mxu1 %v1949_v8 }
 0x43d   : > { %v1661_v11 = vpack.c.bf16 %v1602_v33, %v1598_v32  ;;  %v1604_v12 = vpop.f32.mrb[51].mxu0  ;;  %2030 = vmatpush1.bf16.msra.mxu1 %v1948_v15  ;;  %v1837_v32 = vpop.permute.xlu0 %1836  ;;  %v1857_v15 = vrot.slane %v1849_v29, %v6257_v28 }
 0x43e   : > { %v1662_v22 = vpack.c.bf16 %v1604_v12, %v1600_v19  ;;  %v1845_v19 = vrot.slane %v1837_v32, %v6257_v28 }
 0x43f   : > { %v1934_v24 = vadd.bf16 %v5150_v39, %v1661_v11 }
 0x440   : > { %v1935_v62 = vadd.bf16 %v5150_v39, %v1662_v22 }
 0x441   : > { %v1950_v54 = vmax.bf16 %v5719_v6, %v1934_v24  ;;  %v5154_v24 = vcombine.low %v1845_v19, %v1857_v15 }
 0x442   : > { %v1608_v44 = vpop.f32.mrb[52].mxu0  ;;  %v1951_v42 = vmax.bf16 %v5719_v6, %v1935_v62 }
 0x443   : > { %v1610_v18 = vpop.f32.mrb[53].mxu0 }
 0x444   : > { %v1612_v47 = vpop.f32.mrb[54].mxu0  ;;  %2031 = vmatprep.subr.bf16.mxu1 %v1951_v42  ;;  %v1873_v42 = vpop.permute.xlu1 %1872 }
 0x445   : > { %v1663_v21 = vpack.c.bf16 %v1612_v47, %v1608_v44  ;;  %v1614_v55 = vpop.f32.mrb[55].mxu0  ;;  %2032 = vmatpush1.bf16.msra.mxu1 %v1950_v54  ;;  %v1861_v54 = vpop.permute.xlu0 %1860  ;;  %v1881_v47 = vrot.slane %v1873_v42, %v6257_v28 }
 0x446   : > { %v1664_v41 = vpack.c.bf16 %v1614_v55, %v1610_v18 }
 0x447   : > { %v1936_v0 = vadd.bf16 %v5151_v52, %v1663_v21 }
 0x448   : > { %v1937_v43 = vadd.bf16 %v5151_v52, %v1664_v41  ;;  %v1869_v52 = vrot.slane %v1861_v54, %v6257_v28  ;;  %v2188_v40 = vpop.permute.xlu1 %2187 }
 0x449   : > { %v1952_v53 = vmax.bf16 %v5719_v6, %v1936_v0 }
 0x44a   : > { %v1618_v46 = vpop.f32.mrb[56].mxu0  ;;  %v1953_v49 = vmax.bf16 %v5719_v6, %v1937_v43  ;;  %v5155_v38 = vcombine.low %v1869_v52, %v1881_v47 }
 0x44b   : > { %v1620_v57 = vpop.f32.mrb[57].mxu0 }
 0x44c   : > { %v1622_v16 = vpop.f32.mrb[58].mxu0  ;;  %2033 = vmatprep.subr.bf16.mxu1 %v1953_v49  ;;  %v2212_v32 = vpop.permute.xlu1 %2211 }
 0x44d   : > { %v1665_v10 = vpack.c.bf16 %v1622_v16, %v1618_v46  ;;  %v1624_v63 = vpop.f32.mrb[59].mxu0  ;;  %2034 = vmatpush1.bf16.msra.mxu1 %v1952_v53  ;;  %v2220_v19 = vrot.slane %v2212_v32, %v6257_v28 }
 0x44e   : > { %v1666_v35 = vpack.c.bf16 %v1624_v63, %v1620_v57  ;;  %v5478_v63 = vld [vmem:[%s7195_s3 + $0x88] sm:$0xff]  }
 0x44f   : > { %v1938_v27 = vadd.bf16 %v5152_v60, %v1665_v10  ;;  %v5477_v10 = vld [vmem:[%s7195_s3 + $0x80] sm:$0xff]  }
 0x450   : > { %v1939_v37 = vadd.bf16 %v5152_v60, %v1666_v35  ;;  %v5479_v35 = vld [vmem:[%s7195_s3 + $0x90] sm:$0xff]   ;;  %v2236_v54 = vpop.permute.xlu1 %2235 }
 0x451   : > { %v1954_v5 = vmax.bf16 %v5719_v6, %v1938_v27  ;;  %v5480_v27 = vld [vmem:[%s7195_s3 + $0x98] sm:$0xff]   ;;  %v2244_v52 = vrot.slane %v2236_v54, %v6257_v28 }
 0x452   : > { %v1628_v48 = vpop.f32.mrb[60].mxu0  ;;  %v1955_v3 = vmax.bf16 %v5719_v6, %v1939_v37  ;;  %v5483_v37 = vld [vmem:[%s7195_s3 + $0xb0] sm:$0xff]  }
 0x453   : > { %v1630_v7 = vpop.f32.mrb[61].mxu0 }
 0x454   : > { %v1632_v58 = vpop.f32.mrb[62].mxu0  ;;  %2035 = vmatprep.subr.bf16.mxu1 %v1955_v3  ;;  %v2196_v3 = vrot.slane %v2188_v40, %v6257_v28 }
 0x455   : > { %v1667_v9 = vpack.c.bf16 %v1632_v58, %v1628_v48  ;;  %v1634_v4 = vpop.f32.mrb[63].mxu0  ;;  %2036 = vmatpush1.bf16.msra.mxu1 %v1954_v5  ;;  %v2176_v48 = vpop.permute.xlu0 %2175 }
 0x456   : > { %v1668_v31 = vpack.c.bf16 %v1634_v4, %v1630_v7  ;;  %v2184_v5 = vrot.slane %v2176_v48, %v6257_v28 }
 0x457   : > { %v1940_v20 = vadd.bf16 %v5153_v61, %v1667_v9 }
 0x458   : > { %v1941_v8 = vadd.bf16 %v5153_v61, %v1668_v31  ;;  %v5196_v9 = vcombine.low %v2184_v5, %v2196_v3 }
 0x459   : > { %v1956_v11 = vmax.bf16 %v5719_v6, %v1940_v20 }
 0x45a   : > { %v1638_v33 = vpop.f32.mrb[64].mxu0  ;;  %v1957_v39 = vmax.bf16 %v5719_v6, %v1941_v8  ;;  %v2200_v8 = vpop.permute.xlu0 %2199 }
 0x45b   : > { %v1640_v12 = vpop.f32.mrb[65].mxu0 }
 0x45c   : > { %v1642_v22 = vpop.f32.mrb[66].mxu0  ;;  %2037 = vmatprep.subr.bf16.mxu1 %v1957_v39 }
 0x45d   : > { %v1669_v62 = vpack.c.bf16 %v1642_v22, %v1638_v33  ;;  %v1644_v1 = vpop.f32.mrb[67].mxu0  ;;  %2038 = vmatpush1.bf16.msra.mxu1 %v1956_v11  ;;  %v2208_v33 = vrot.slane %v2200_v8, %v6257_v28 }
 0x45e   : > { %v1670_v50 = vpack.c.bf16 %v1644_v1, %v1640_v12 }
 0x45f   : > { %v1942_v44 = vadd.bf16 %v5154_v24, %v1669_v62  ;;  %v5197_v62 = vcombine.low %v2208_v33, %v2220_v19 }
 0x460   : > { %v1943_v18 = vadd.bf16 %v5154_v24, %v1670_v50 }
 0x461   : > { %v1958_v41 = vmax.bf16 %v5719_v6, %v1942_v44 }
 0x462   : > { %v1648_v21 = vpop.f32.mrb[68].mxu0  ;;  %v1959_v55 = vmax.bf16 %v5719_v6, %v1943_v18  ;;  %v2224_v18 = vpop.permute.xlu0 %2223 }
 0x463   : > { %v1650_v0 = vpop.f32.mrb[69].mxu0 }
 0x464   : > { %v1652_v43 = vpop.f32.mrb[70].mxu0  ;;  %2039 = vmatprep.subr.bf16.mxu1 %v1959_v55 }
 0x465   : > { %v1671_v14 = vpack.c.bf16 %v1652_v43, %v1648_v21  ;;  %v1654_v46 = vpop.f32.mrb[71].mxu0  ;;  %2040 = vmatpush1.bf16.msra.mxu1 %v1958_v41  ;;  %v2232_v21 = vrot.slane %v2224_v18, %v6257_v28 }
 0x466   : > { %v1672_v49 = vpack.c.bf16 %v1654_v46, %v1650_v0 }
 0x467   : > { %v1944_v53 = vadd.bf16 %v5155_v38, %v1671_v14  ;;  %v5198_v14 = vcombine.low %v2232_v21, %v2244_v52 }
 0x468   : > { %v1945_v57 = vadd.bf16 %v5155_v38, %v1672_v49 }
 0x469   : > { %v1960_v60 = vmax.bf16 %v5719_v6, %v1944_v53  ;;  %v2260_v53 = vpop.permute.xlu1 %2259 }
 0x46a   : > { %v1961_v16 = vmax.bf16 %v5719_v6, %v1945_v57  ;;  %v2248_v57 = vpop.permute.xlu0 %2247 }
 0x46c   : > { %2041 = vmatprep.subr.bf16.mxu1 %v1961_v16 }
 0x46d   : > { %2042 = vmatpush1.bf16.msra.mxu1 %v1960_v60  ;;  %v2284_v5 = vpop.permute.xlu1 %2283 }
 0x470   : > { %2060 = vmatmul.mubr.bf16.vlgmr.msra.gmra.mrb[32].mxu1 %v5477_v10 }
 0x471   : > { %2069 = vmatprep.mubr.bf16.mxu1 %v5719_v6 }
 0x478   : > { %2070 = vmatmul.mubr.bf16.gmra.mrb[36].mxu1 %v5478_v63  ;;  %v2268_v63 = vrot.slane %v2260_v53, %v6257_v28 }
 0x479   : > { %2079 = vmatprep.mubr.bf16.mxu1 %v5719_v6 }
 0x480   : > { %2080 = vmatmul.mubr.bf16.gmra.mrb[40].mxu1 %v5479_v35  ;;  %v2256_v35 = vrot.slane %v2248_v57, %v6257_v28 }
 0x481   : > { %2089 = vmatprep.mubr.bf16.mxu1 %v5719_v6 }
 0x482   : > { %v5199_v40 = vcombine.low %v2256_v35, %v2268_v63 }
 0x488   : > { %2090 = vmatmul.mubr.bf16.gmra.mrb[44].mxu1 %v5480_v27 }
 0x489   : > { %2099 = vmatprep.mubr.bf16.mxu1 %v5719_v6 }
 0x490   : > { %2100 = vmatmul.mubr.bf16.gmra.mrb[48].mxu1 %v5481_v51 }
 0x491   : > { %2109 = vmatprep.mubr.bf16.mxu1 %v5719_v6 }
 0x498   : > { %2110 = vmatmul.mubr.bf16.gmra.mrb[52].mxu1 %v5482_v45 }
 0x499   : > { %2119 = vmatprep.mubr.bf16.mxu1 %v5719_v6 }
 0x4a0   : > { %2120 = vmatmul.mubr.bf16.gmra.mrb[56].mxu1 %v5483_v37 }
 0x4a1   : > { %2129 = vmatprep.mubr.bf16.mxu1 %v5719_v6 }
 0x4a8   : > { %2130 = vmatmul.mubr.bf16.gmra.mrb[60].mxu1 %v5484_v2 }
 0x4a9   : > { %2687 = vmatprep.mubr.bf16.mxu1 %v5719_v6 }
 0x543   : > { %v2061_v7 = vpop.f32.mrb[32].mxu1 }
 0x544   : > { %v2063_v58 = vpop.f32.mrb[33].mxu1 }
 0x545   : > { %v2065_v61 = vpop.f32.mrb[34].mxu1 }
 0x546   : > { %v2140_v4 = vpack.c.bf16 %v2065_v61, %v2061_v7  ;;  %v2067_v31 = vpop.f32.mrb[35].mxu1  ;;  %v2272_v7 = vpop.permute.xlu0 %2271 }
 0x547   : > { %v2141_v20 = vpack.c.bf16 %v2067_v31, %v2063_v58  ;;  %v2280_v31 = vrot.slane %v2272_v7, %v6257_v28 }
 0x548   : > { %v2413_v29 = vadd.bf16 %v5196_v9, %v2140_v4  ;;  %v2292_v4 = vrot.slane %v2284_v5, %v6257_v28 }
 0x549   : > { %v2414_v15 = vadd.bf16 %v5196_v9, %v2141_v20 }
 0x54a   : > { %v2429_v12 = vmax.bf16 %v5719_v6, %v2413_v29  ;;  %v5200_v19 = vcombine.low %v2280_v31, %v2292_v4 }
 0x54b   : > { %v2071_v39 = vpop.f32.mrb[36].mxu1  ;;  %v2430_v11 = vmax.bf16 %v5719_v6, %v2414_v15 }
 0x54c   : > { %v2073_v22 = vpop.f32.mrb[37].mxu1 }
 0x54d   : > { %v2075_v24 = vpop.f32.mrb[38].mxu1  ;;  %2487 = vmatprep.subr.bf16.mxu0 %v2430_v11  ;;  %v2308_v11 = vpop.permute.xlu1 %2307 }
 0x54e   : > { %v2142_v1 = vpack.c.bf16 %v2075_v24, %v2071_v39  ;;  %v2077_v50 = vpop.f32.mrb[39].mxu1  ;;  %2488 = vmatpush1.bf16.msra.mxu0 %v2429_v12  ;;  %v2296_v12 = vpop.permute.xlu0 %2295 }
 0x54f   : > { %v2143_v44 = vpack.c.bf16 %v2077_v50, %v2073_v22  ;;  %v2304_v50 = vrot.slane %v2296_v12, %v6257_v28 }
 0x550   : > { %v2415_v42 = vadd.bf16 %v5197_v62, %v2142_v1  ;;  %v2316_v1 = vrot.slane %v2308_v11, %v6257_v28 }
 0x551   : > { %v2416_v47 = vadd.bf16 %v5197_v62, %v2143_v44 }
 0x552   : > { %v2431_v0 = vmax.bf16 %v5719_v6, %v2415_v42  ;;  %v5201_v52 = vcombine.low %v2304_v50, %v2316_v1 }
 0x553   : > { %v2081_v55 = vpop.f32.mrb[40].mxu1  ;;  %v2432_v41 = vmax.bf16 %v5719_v6, %v2416_v47 }
 0x554   : > { %v2083_v43 = vpop.f32.mrb[41].mxu1 }
 0x555   : > { %v2085_v38 = vpop.f32.mrb[42].mxu1  ;;  %2489 = vmatprep.subr.bf16.mxu0 %v2432_v41  ;;  %v2332_v41 = vpop.permute.xlu1 %2331 }
 0x556   : > { %v2144_v46 = vpack.c.bf16 %v2085_v38, %v2081_v55  ;;  %v2087_v49 = vpop.f32.mrb[43].mxu1  ;;  %2490 = vmatpush1.bf16.msra.mxu0 %v2431_v0  ;;  %v2320_v0 = vpop.permute.xlu0 %2319 }
 0x557   : > { %v2145_v16 = vpack.c.bf16 %v2087_v49, %v2083_v43  ;;  %v2328_v49 = vrot.slane %v2320_v0, %v6257_v28 }
 0x558   : > { %v2417_v60 = vadd.bf16 %v5198_v14, %v2144_v46  ;;  %v2340_v46 = vrot.slane %v2332_v41, %v6257_v28 }
 0x559   : > { %v2418_v10 = vadd.bf16 %v5198_v14, %v2145_v16 }
 0x55a   : > { %v2433_v45 = vmax.bf16 %v5719_v6, %v2417_v60  ;;  %v5202_v63 = vcombine.low %v2328_v49, %v2340_v46 }
 0x55b   : > { %v2091_v27 = vpop.f32.mrb[44].mxu1  ;;  %v2434_v51 = vmax.bf16 %v5719_v6, %v2418_v10 }
 0x55c   : > { %v2093_v37 = vpop.f32.mrb[45].mxu1 }
 0x55d   : > { %v2095_v2 = vpop.f32.mrb[46].mxu1  ;;  %2491 = vmatprep.subr.bf16.mxu0 %v2434_v51  ;;  %v2356_v51 = vpop.permute.xlu1 %2355 }
 0x55e   : > { %v2146_v48 = vpack.c.bf16 %v2095_v2, %v2091_v27  ;;  %v2097_v3 = vpop.f32.mrb[47].mxu1  ;;  %2492 = vmatpush1.bf16.msra.mxu0 %v2433_v45  ;;  %v2344_v45 = vpop.permute.xlu0 %2343 }
 0x55f   : > { %v2147_v58 = vpack.c.bf16 %v2097_v3, %v2093_v37  ;;  %v2352_v3 = vrot.slane %v2344_v45, %v6257_v28 }
 0x560   : > { %v2419_v61 = vadd.bf16 %v5199_v40, %v2146_v48  ;;  %v2364_v48 = vrot.slane %v2356_v51, %v6257_v28 }
 0x561   : > { %v2420_v9 = vadd.bf16 %v5199_v40, %v2147_v58 }
 0x562   : > { %v2435_v32 = vmax.bf16 %v5719_v6, %v2419_v61  ;;  %v5203_v4 = vcombine.low %v2352_v3, %v2364_v48  ;;  %v2458_v11 = vpop.permute.xlu0 %2457 }
 0x563   : > { %v2101_v20 = vpop.f32.mrb[48].mxu1  ;;  %v2436_v29 = vmax.bf16 %v5719_v6, %v2420_v9 }
 0x564   : > { %v2103_v8 = vpop.f32.mrb[49].mxu1 }
 0x565   : > { %v2105_v15 = vpop.f32.mrb[50].mxu1  ;;  %2493 = vmatprep.subr.bf16.mxu0 %v2436_v29 }
 0x566   : > { %v2148_v33 = vpack.c.bf16 %v2105_v15, %v2101_v20  ;;  %v2107_v39 = vpop.f32.mrb[51].mxu1  ;;  %2494 = vmatpush1.bf16.msra.mxu0 %v2435_v32 }
 0x567   : > { %v2149_v22 = vpack.c.bf16 %v2107_v39, %v2103_v8  ;;  %v5486_v39 = vld [vmem:[%s7197_s5 + $0x28] sm:$0xff]  }
 0x568   : > { %v2421_v24 = vadd.bf16 %v5200_v19, %v2148_v33  ;;  %v5485_v33 = vld [vmem:[%s7197_s5 + $0x20] sm:$0xff]  }
 0x569   : > { %v2422_v62 = vadd.bf16 %v5200_v19, %v2149_v22 }
 0x56a   : > { %v2437_v54 = vmax.bf16 %v5719_v6, %v2421_v24 }
 0x56b   : > { %v2111_v44 = vpop.f32.mrb[52].mxu1  ;;  %v2438_v42 = vmax.bf16 %v5719_v6, %v2422_v62  ;;  %v2463_v62 = vpop.permute.xlu1 %2462 }
 0x56c   : > { %v2113_v18 = vpop.f32.mrb[53].mxu1 }
 0x56d   : > { %v2115_v47 = vpop.f32.mrb[54].mxu1  ;;  %2495 = vmatprep.subr.bf16.mxu0 %v2438_v42 }
 0x56e   : > { %v2150_v21 = vpack.c.bf16 %v2115_v47, %v2111_v44  ;;  %v2117_v55 = vpop.f32.mrb[55].mxu1  ;;  %2496 = vmatpush1.bf16.msra.mxu0 %v2437_v54  ;;  %v2468_v47 = vpop.permute.xlu0 %2467 }
 0x56f   : > { %v2151_v43 = vpack.c.bf16 %v2117_v55, %v2113_v18  ;;  %v2473_v41 = vpop.permute.xlu1 %2472 }
 0x570   : > { %v2423_v38 = vadd.bf16 %v5201_v52, %v2150_v21 }
 0x571   : > { %v2424_v14 = vadd.bf16 %v5201_v52, %v2151_v43 }
 0x572   : > { %v2439_v16 = vmax.bf16 %v5719_v6, %v2423_v38 }
 0x573   : > { %v2121_v53 = vpop.f32.mrb[56].mxu1  ;;  %v2440_v57 = vmax.bf16 %v5719_v6, %v2424_v14 }
 0x574   : > { %v2123_v60 = vpop.f32.mrb[57].mxu1 }
 0x575   : > { %v2125_v10 = vpop.f32.mrb[58].mxu1  ;;  %2497 = vmatprep.subr.bf16.mxu0 %v2440_v57 }
 0x576   : > { %v2152_v35 = vpack.c.bf16 %v2125_v10, %v2121_v53  ;;  %v2127_v27 = vpop.f32.mrb[59].mxu1  ;;  %2498 = vmatpush1.bf16.msra.mxu0 %v2439_v16 }
 0x577   : > { %v2153_v37 = vpack.c.bf16 %v2127_v27, %v2123_v60 }
 0x578   : > { %v2425_v2 = vadd.bf16 %v5202_v63, %v2152_v35 }
 0x579   : > { %v2426_v40 = vadd.bf16 %v5202_v63, %v2153_v37 }
 0x57a   : > { %v2441_v58 = vmax.bf16 %v5719_v6, %v2425_v2 }
 0x57b   : > { %v2131_v5 = vpop.f32.mrb[60].mxu1  ;;  %v2442_v7 = vmax.bf16 %v5719_v6, %v2426_v40 }
 0x57c   : > { %v2133_v61 = vpop.f32.mrb[61].mxu1 }
 0x57d   : > { %v2135_v9 = vpop.f32.mrb[62].mxu1  ;;  %2499 = vmatprep.subr.bf16.mxu0 %v2442_v7 }
 0x57e   : > { %v2154_v31 = vpack.c.bf16 %v2135_v9, %v2131_v5  ;;  %v2137_v20 = vpop.f32.mrb[63].mxu1  ;;  %2500 = vmatpush1.bf16.msra.mxu0 %v2441_v58 }
 0x57f   : > { %v2155_v29 = vpack.c.bf16 %v2137_v20, %v2133_v61 }
 0x580   : > { %v2427_v32 = vadd.bf16 %v5203_v4, %v2154_v31 }
 0x581   : > { %v2428_v8 = vadd.bf16 %v5203_v4, %v2155_v29 }
 0x582   : > { %v2443_v19 = vmax.bf16 %v5719_v6, %v2427_v32 }
 0x583   : > { %v2444_v15 = vmax.bf16 %v5719_v6, %v2428_v8 }
 0x585   : > { %2501 = vmatprep.subr.bf16.mxu0 %v2444_v15  ;;  %v5489_v15 = vld [vmem:[%s7193_s1 + $0x50] sm:$0xff]  }
 0x586   : > { %2502 = vmatpush1.bf16.msra.mxu0 %v2443_v19  ;;  %v5490_v19 = vld [vmem:[%s7193_s1 + $0x58] sm:$0xff]  }
 0x589   : > { %2520 = vmatmul.mubr.bf16.vlgmr.msra.gmra.mrb[72].mxu0 %v5485_v33  ;;  %v5491_v33 = vld [vmem:[%s7193_s1 + $0x60] sm:$0xff]  }
 0x58a   : > { %2529 = vmatprep.mubr.bf16.mxu0 %v5719_v6 }
 0x591   : > { %2530 = vmatmul.mubr.bf16.gmra.mrb[76].mxu0 %v5486_v39  ;;  %v5492_v39 = vld [vmem:[%s7193_s1 + $0x68] sm:$0xff]  }
 0x592   : > { %3170 = vmatprep.mubr.bf16.mxu0 %v5719_v6 }
 0x65c   : > { %v2521_v12 = vpop.f32.mrb[72].mxu0 }
 0x65d   : > { %v2522_v22 = vadd.f32 %v2521_v12, %v2458_v11  ;;  %v2523_v24 = vpop.f32.mrb[73].mxu0  ;;  %v5494_v12 = vld [vmem:[%s7193_s1 + $0x78] sm:$0xff]  }
 0x65e   : > { %v2524_v1 = vadd.f32 %v2523_v24, %v2458_v11  ;;  %v2525_v50 = vpop.f32.mrb[74].mxu0  ;;  %v5493_v11 = vld [vmem:[%s7193_s1 + $0x70] sm:$0xff]   ;;  %v2804_v24 = vpop.permute.xlu0 %2803 }
 0x65f   : > { %5547 = vtanh.f32 %v2522_v22  ;;  %v2526_v44 = vadd.f32 %v2525_v50, %v2463_v62  ;;  %v2527_v42 = vpop.f32.mrb[75].mxu0  ;;  %v2816_v22 = vpop.permute.xlu1 %2815 }
 0x660   : > { %5549 = vtanh.f32 %v2524_v1  ;;  %v2528_v54 = vadd.f32 %v2527_v42, %v2463_v62  ;;  %v2824_v62 = vrot.slane %v2816_v22, %v6257_v28  ;;  %v2812_v1 = vrot.slane %v2804_v24, %v6257_v28 }
 0x661   : > { %5551 = vtanh.f32 %v2526_v44 }
 0x662   : > { %5553 = vtanh.f32 %v2528_v54  ;;  %v5262_v54 = vcombine.low %v2812_v1, %v2824_v62 }
 0x664   : > { %v2531_v18 = vpop.f32.mrb[76].mxu0 }
 0x665   : > { %v2533_v52 = vpop.f32.mrb[77].mxu0  ;;  %v2532_v21 = vadd.f32 %v2531_v18, %v2468_v47 }
 0x666   : > { %v2535_v55 = vpop.f32.mrb[78].mxu0  ;;  %v2534_v0 = vadd.f32 %v2533_v52, %v2468_v47  ;;  %v2840_v52 = vpop.permute.xlu1 %2839 }
 0x667   : > { %v2537_v43 = vpop.f32.mrb[79].mxu0  ;;  %v2536_v38 = vadd.f32 %v2535_v55, %v2473_v41  ;;  %5555 = vtanh.f32 %v2532_v21  ;;  %v2828_v21 = vpop.permute.xlu0 %2827 }
 0x668   : > { %v2538_v46 = vadd.f32 %v2537_v43, %v2473_v41  ;;  %5557 = vtanh.f32 %v2534_v0  ;;  %v2848_v43 = vrot.slane %v2840_v52, %v6257_v28 }
 0x669   : > { %v6741_v14 = vpop.eup %5547  ;;  %5559 = vtanh.f32 %v2536_v38  ;;  %v2836_v38 = vrot.slane %v2828_v21, %v6257_v28 }
 0x66a   : > { %v6743_v49 = vpop.eup %5549  ;;  %v2552_v53 = vsub.f32 0.0, %v6741_v14  ;;  %5561 = vtanh.f32 %v2538_v46 }
 0x66b   : > { %v6746_v57 = vpop.eup %5551  ;;  %v2553_v16 = vsub.f32 0.0, %v6743_v49 }
 0x66c   : > { %v6749_v60 = vpop.eup %5553  ;;  %v2556_v10 = vmul.f32 1.442695, %v2552_v53  ;;  %v2554_v63 = vsub.f32 0.0, %v6746_v57 }
 0x66d   : > { %v2558_v35 = vmul.f32 1.442695, %v2553_v16  ;;  %v2555_v27 = vsub.f32 0.0, %v6749_v60 }
 0x66e   : > { %5563 = vpow2.f32 %v2556_v10  ;;  %v2560_v51 = vmul.f32 1.442695, %v2554_v63 }
 0x66f   : > { %5565 = vpow2.f32 %v2558_v35  ;;  %v2562_v45 = vmul.f32 1.442695, %v2555_v27  ;;  %v5263_v35 = vcombine.low %v2836_v38, %v2848_v43 }
 0x670   : > { %5567 = vpow2.f32 %v2560_v51 }
 0x671   : > { %5569 = vpow2.f32 %v2562_v45  ;;  %v5556_v37 = vpop.eup %5555  ;;  %v2864_v45 = vpop.permute.xlu1 %2863 }
 0x672   : > { %v5558_v2 = vpop.eup %5557  ;;  %v2548_v3 = vsub.f32 %v6581_v36, %v5556_v37  ;;  %v2852_v37 = vpop.permute.xlu0 %2851 }
 0x673   : > { %v5560_v40 = vpop.eup %5559  ;;  %v2549_v7 = vsub.f32 %v6577_v30, %v5558_v2 }
 0x674   : > { %v5562_v48 = vpop.eup %5561  ;;  %v2550_v61 = vsub.f32 %v6575_v25, %v5560_v40  ;;  %v5487_v25 = vld [vmem:[%s7193_s1 + $0x40] sm:$0xff]  }
 0x675   : > { %v2551_v31 = vsub.f32 %v6579_v56, %v5562_v48  ;;  %v5488_v56 = vld [vmem:[%s7193_s1 + $0x48] sm:$0xff]  }
 0x678   : > { %v5564_v5 = vpop.eup %5563 }
 0x679   : > { %v5566_v58 = vpop.eup %5565  ;;  %v6756_v9 = vmul.f32 %v5564_v5, %v2548_v3  ;;  %v2872_v3 = vrot.slane %v2864_v45, %v6257_v28  ;;  %v2860_v5 = vrot.slane %v2852_v37, %v6257_v28 }
 0x67a   : > { %v5568_v4 = vpop.eup %5567  ;;  %v6759_v20 = vmul.f32 %v5566_v58, %v2549_v7 }
 0x67b   : > { %v5570_v29 = vpop.eup %5569  ;;  %v6761_v32 = vmul.f32 %v5568_v4, %v2550_v61 }
 0x67c   : > { %v6763_v8 = vmul.f32 %v5570_v29, %v2551_v31  ;;  %v5264_v29 = vcombine.low %v2860_v5, %v2872_v3 }
 0x67d   : > { %v2572_v30 = vpack.c.bf16 %v6761_v32, %v6756_v9 }
 0x67e   : > { %v2573_v36 = vpack.c.bf16 %v6763_v8, %v6759_v20 }
 0x680   : > { %2655 = vmatprep.subr.bf16.mxu1 %v2573_v36 }
 0x681   : > { %2656 = vmatpush1.bf16.msra.mxu1 %v2572_v30 }
 0x684   : > { %5238 = vmatmul.mubr.msk.bf16.vlgmr.msra.gmra.mrb[64].mxu1 %vm408_vm0, %v5487_v25  ;;  %v2888_v25 = vpop.permute.xlu1 %2887 }
 0x685   : > { %2697 = vmatprep.mubr.bf16.mxu1 %v5719_v6 }
 0x68c   : > { %5239 = vmatmul.mubr.msk.bf16.gmra.mrb[68].mxu1 %vm408_vm0, %v5488_v56  ;;  %v2876_v56 = vpop.permute.xlu0 %2875 }
 0x68d   : > { %2707 = vmatprep.mubr.bf16.mxu1 %v5719_v6 }
 0x694   : > { %5240 = vmatmul.mubr.msk.bf16.gmra.mrb[72].mxu1 %vm408_vm0, %v5489_v15 }
 0x695   : > { %2717 = vmatprep.mubr.bf16.mxu1 %v5719_v6 }
 0x69c   : > { %5241 = vmatmul.mubr.msk.bf16.gmra.mrb[76].mxu1 %vm408_vm0, %v5490_v19 }
 0x69d   : > { %2727 = vmatprep.mubr.bf16.mxu1 %v5719_v6 }
 0x6a4   : > { %5242 = vmatmul.mubr.msk.bf16.gmra.mrb[80].mxu1 %vm408_vm0, %v5491_v33 }
 0x6a5   : > { %2737 = vmatprep.mubr.bf16.mxu1 %v5719_v6 }
 0x6ac   : > { %5243 = vmatmul.mubr.msk.bf16.gmra.mrb[84].mxu1 %vm408_vm0, %v5492_v39  ;;  %v2896_v39 = vrot.slane %v2888_v25, %v6257_v28 }
 0x6ad   : > { %2747 = vmatprep.mubr.bf16.mxu1 %v5719_v6 }
 0x6b4   : > { %5244 = vmatmul.mubr.msk.bf16.gmra.mrb[88].mxu1 %vm408_vm0, %v5493_v11  ;;  %v2884_v11 = vrot.slane %v2876_v56, %v6257_v28 }
 0x6b5   : > { %2757 = vmatprep.mubr.bf16.mxu1 %v5719_v6 }
 0x6bc   : > { %5245 = vmatmul.mubr.msk.bf16.gmra.mrb[92].mxu1 %vm408_vm0, %v5494_v12 }
 0x6bd   : > { %3630 = vmatprep.mubr.bf16.mxu1 %v5719_v6 }
 0x757   : > { %v2689_v50 = vpop.f32.mrb[64].mxu1 }
 0x758   : > { %v2691_v44 = vpop.f32.mrb[65].mxu1 }
 0x759   : > { %v2693_v42 = vpop.f32.mrb[66].mxu1 }
 0x75a   : > { %v2768_v18 = vpack.c.bf16 %v2693_v42, %v2689_v50  ;;  %v2695_v47 = vpop.f32.mrb[67].mxu1  ;;  %v5265_v50 = vcombine.low %v2884_v11, %v2896_v39 }
 0x75b   : > { %v2769_v55 = vpack.c.bf16 %v2695_v47, %v2691_v44 }
 0x75c   : > { %v3041_v41 = vadd.bf16 %v5262_v54, %v2768_v18  ;;  %v2900_v18 = vpop.permute.xlu0 %2899 }
 0x75d   : > { %v3042_v0 = vadd.bf16 %v5262_v54, %v2769_v55  ;;  %v2912_v54 = vpop.permute.xlu1 %2911 }
 0x75e   : > { %v3057_v16 = vmax.bf16 %v5719_v6, %v3041_v41  ;;  %v2920_v55 = vrot.slane %v2912_v54, %v6257_v28  ;;  %v2908_v41 = vrot.slane %v2900_v18, %v6257_v28 }
 0x75f   : > { %v2699_v46 = vpop.f32.mrb[68].mxu1  ;;  %v3058_v53 = vmax.bf16 %v5719_v6, %v3042_v0 }
 0x760   : > { %v2701_v10 = vpop.f32.mrb[69].mxu1 }
 0x761   : > { %v2703_v63 = vpop.f32.mrb[70].mxu1  ;;  %3138 = vmatprep.subr.bf16.mxu0 %v3058_v53 }
 0x762   : > { %v2770_v27 = vpack.c.bf16 %v2703_v63, %v2699_v46  ;;  %v2705_v51 = vpop.f32.mrb[71].mxu1  ;;  %3139 = vmatpush1.bf16.msra.mxu0 %v3057_v16  ;;  %v5266_v16 = vcombine.low %v2908_v41, %v2920_v55 }
 0x763   : > { %v2771_v2 = vpack.c.bf16 %v2705_v51, %v2701_v10 }
 0x764   : > { %v3043_v40 = vadd.bf16 %v5263_v35, %v2770_v27  ;;  %v2924_v27 = vpop.permute.xlu0 %2923 }
 0x765   : > { %v3044_v48 = vadd.bf16 %v5263_v35, %v2771_v2  ;;  %v2936_v35 = vpop.permute.xlu1 %2935 }
 0x766   : > { %v3059_v61 = vmax.bf16 %v5719_v6, %v3043_v40  ;;  %v2944_v2 = vrot.slane %v2936_v35, %v6257_v28  ;;  %v2932_v40 = vrot.slane %v2924_v27, %v6257_v28 }
 0x767   : > { %v2709_v7 = vpop.f32.mrb[72].mxu1  ;;  %v3060_v58 = vmax.bf16 %v5719_v6, %v3044_v48 }
 0x768   : > { %v2711_v4 = vpop.f32.mrb[73].mxu1 }
 0x769   : > { %v2713_v31 = vpop.f32.mrb[74].mxu1  ;;  %3140 = vmatprep.subr.bf16.mxu0 %v3060_v58 }
 0x76a   : > { %v2772_v36 = vpack.c.bf16 %v2713_v31, %v2709_v7  ;;  %v2715_v30 = vpop.f32.mrb[75].mxu1  ;;  %3141 = vmatpush1.bf16.msra.mxu0 %v3059_v61  ;;  %v5267_v61 = vcombine.low %v2932_v40, %v2944_v2  ;;  %v5498_v2 = vld [vmem:[%s7195_s3 + $0x58] sm:$0xff]   ;;  %v5499_v40 = vld [vmem:[%s7195_s3 + $0x60] sm:$0xff]  }
 0x76b   : > { %v2773_v15 = vpack.c.bf16 %v2715_v30, %v2711_v4 }
 0x76c   : > { %v3045_v19 = vadd.bf16 %v5264_v29, %v2772_v36  ;;  %v2948_v36 = vpop.permute.xlu0 %2947 }
 0x76d   : > { %v3046_v33 = vadd.bf16 %v5264_v29, %v2773_v15  ;;  %v2960_v29 = vpop.permute.xlu1 %2959 }
 0x76e   : > { %v3061_v24 = vmax.bf16 %v5719_v6, %v3045_v19  ;;  %v2968_v15 = vrot.slane %v2960_v29, %v6257_v28  ;;  %v2956_v19 = vrot.slane %v2948_v36, %v6257_v28 }
 0x76f   : > { %v2719_v12 = vpop.f32.mrb[76].mxu1  ;;  %v3062_v22 = vmax.bf16 %v5719_v6, %v3046_v33 }
 0x770   : > { %v2721_v62 = vpop.f32.mrb[77].mxu1 }
 0x771   : > { %v2723_v1 = vpop.f32.mrb[78].mxu1  ;;  %3142 = vmatprep.subr.bf16.mxu0 %v3062_v22 }
 0x772   : > { %v2774_v44 = vpack.c.bf16 %v2723_v1, %v2719_v12  ;;  %v2725_v42 = vpop.f32.mrb[79].mxu1  ;;  %3143 = vmatpush1.bf16.msra.mxu0 %v3061_v24  ;;  %v5268_v24 = vcombine.low %v2956_v19, %v2968_v15 }
 0x773   : > { %v2775_v47 = vpack.c.bf16 %v2725_v42, %v2721_v62 }
 0x774   : > { %v3047_v52 = vadd.bf16 %v5265_v50, %v2774_v44  ;;  %v2972_v44 = vpop.permute.xlu0 %2971 }
 0x775   : > { %v3048_v21 = vadd.bf16 %v5265_v50, %v2775_v47  ;;  %v2984_v50 = vpop.permute.xlu1 %2983 }
 0x776   : > { %v3063_v38 = vmax.bf16 %v5719_v6, %v3047_v52  ;;  %v2992_v47 = vrot.slane %v2984_v50, %v6257_v28  ;;  %v2980_v52 = vrot.slane %v2972_v44, %v6257_v28 }
 0x777   : > { %v2729_v0 = vpop.f32.mrb[80].mxu1  ;;  %v3064_v43 = vmax.bf16 %v5719_v6, %v3048_v21 }
 0x778   : > { %v2731_v46 = vpop.f32.mrb[81].mxu1 }
 0x779   : > { %v2733_v53 = vpop.f32.mrb[82].mxu1  ;;  %3144 = vmatprep.subr.bf16.mxu0 %v3064_v43 }
 0x77a   : > { %v2776_v10 = vpack.c.bf16 %v2733_v53, %v2729_v0  ;;  %v2735_v63 = vpop.f32.mrb[83].mxu1  ;;  %3145 = vmatpush1.bf16.msra.mxu0 %v3063_v38  ;;  %v5269_v38 = vcombine.low %v2980_v52, %v2992_v47 }
 0x77b   : > { %v2777_v51 = vpack.c.bf16 %v2735_v63, %v2731_v46 }
 0x77c   : > { %v3049_v45 = vadd.bf16 %v5266_v16, %v2776_v10 }
 0x77d   : > { %v3050_v37 = vadd.bf16 %v5266_v16, %v2777_v51  ;;  %v5495_v51 = vld [vmem:[%s7195_s3 + $0x40] sm:$0xff]  }
 0x77e   : > { %v3065_v5 = vmax.bf16 %v5719_v6, %v3049_v45  ;;  %v5496_v45 = vld [vmem:[%s7195_s3 + $0x48] sm:$0xff]  }
 0x77f   : > { %v2739_v48 = vpop.f32.mrb[84].mxu1  ;;  %v3066_v3 = vmax.bf16 %v5719_v6, %v3050_v37  ;;  %v5497_v37 = vld [vmem:[%s7195_s3 + $0x50] sm:$0xff]  }
 0x780   : > { %v2741_v7 = vpop.f32.mrb[85].mxu1 }
 0x781   : > { %v2743_v58 = vpop.f32.mrb[86].mxu1  ;;  %3146 = vmatprep.subr.bf16.mxu0 %v3066_v3  ;;  %v5501_v3 = vld [vmem:[%s7195_s3 + $0x70] sm:$0xff]  }
 0x782   : > { %v2778_v4 = vpack.c.bf16 %v2743_v58, %v2739_v48  ;;  %v2745_v31 = vpop.f32.mrb[87].mxu1  ;;  %3147 = vmatpush1.bf16.msra.mxu0 %v3065_v5  ;;  %v5500_v48 = vld [vmem:[%s7195_s3 + $0x68] sm:$0xff]   ;;  %v5502_v5 = vld [vmem:[%s7195_s3 + $0x78] sm:$0xff]   ;;  %v3287_v58 = vpop.permute.xlu0 %3286 }
 0x783   : > { %v2779_v30 = vpack.c.bf16 %v2745_v31, %v2741_v7  ;;  %v3299_v7 = vpop.permute.xlu1 %3298 }
 0x784   : > { %v3051_v25 = vadd.bf16 %v5267_v61, %v2778_v4  ;;  %v3295_v4 = vrot.slane %v3287_v58, %v6257_v28 }
 0x785   : > { %v3052_v56 = vadd.bf16 %v5267_v61, %v2779_v30  ;;  %v3307_v61 = vrot.slane %v3299_v7, %v6257_v28 }
 0x786   : > { %v3067_v11 = vmax.bf16 %v5719_v6, %v3051_v25  ;;  %v3311_v19 = vpop.permute.xlu0 %3310 }
 0x787   : > { %v2749_v33 = vpop.f32.mrb[88].mxu1  ;;  %v3068_v39 = vmax.bf16 %v5719_v6, %v3052_v56  ;;  %v5310_v30 = vcombine.low %v3295_v4, %v3307_v61  ;;  %v3323_v15 = vpop.permute.xlu1 %3322 }
 0x788   : > { %v2751_v12 = vpop.f32.mrb[89].mxu1 }
 0x789   : > { %v2753_v22 = vpop.f32.mrb[90].mxu1  ;;  %3148 = vmatprep.subr.bf16.mxu0 %v3068_v39 }
 0x78a   : > { %v2780_v62 = vpack.c.bf16 %v2753_v22, %v2749_v33  ;;  %v2755_v1 = vpop.f32.mrb[91].mxu1  ;;  %3149 = vmatpush1.bf16.msra.mxu0 %v3067_v11  ;;  %v3319_v22 = vrot.slane %v3311_v19, %v6257_v28  ;;  %v3335_v52 = vpop.permute.xlu0 %3334 }
 0x78b   : > { %v2781_v42 = vpack.c.bf16 %v2755_v1, %v2751_v12  ;;  %v3331_v12 = vrot.slane %v3323_v15, %v6257_v28  ;;  %v3347_v47 = vpop.permute.xlu1 %3346 }
 0x78c   : > { %v3053_v54 = vadd.bf16 %v5268_v24, %v2780_v62 }
 0x78d   : > { %v3054_v18 = vadd.bf16 %v5268_v24, %v2781_v42  ;;  %v5311_v42 = vcombine.low %v3319_v22, %v3331_v12 }
 0x78e   : > { %v3069_v41 = vmax.bf16 %v5719_v6, %v3053_v54 }
 0x78f   : > { %v2759_v21 = vpop.f32.mrb[92].mxu1  ;;  %v3070_v55 = vmax.bf16 %v5719_v6, %v3054_v18 }
 0x790   : > { %v2761_v0 = vpop.f32.mrb[93].mxu1 }
 0x791   : > { %v2763_v43 = vpop.f32.mrb[94].mxu1  ;;  %3150 = vmatprep.subr.bf16.mxu0 %v3070_v55 }
 0x792   : > { %v2782_v46 = vpack.c.bf16 %v2763_v43, %v2759_v21  ;;  %v2765_v53 = vpop.f32.mrb[95].mxu1  ;;  %3151 = vmatpush1.bf16.msra.mxu0 %v3069_v41  ;;  %v3343_v43 = vrot.slane %v3335_v52, %v6257_v28 }
 0x793   : > { %v2783_v16 = vpack.c.bf16 %v2765_v53, %v2761_v0  ;;  %v3355_v0 = vrot.slane %v3347_v47, %v6257_v28 }
 0x794   : > { %v3055_v10 = vadd.bf16 %v5269_v38, %v2782_v46 }
 0x795   : > { %v3056_v63 = vadd.bf16 %v5269_v38, %v2783_v16 }
 0x796   : > { %v3071_v27 = vmax.bf16 %v5719_v6, %v3055_v10 }
 0x797   : > { %v3072_v35 = vmax.bf16 %v5719_v6, %v3056_v63  ;;  %v5312_v63 = vcombine.low %v3343_v43, %v3355_v0 }
 0x799   : > { %3152 = vmatprep.subr.bf16.mxu0 %v3072_v35 }
 0x79a   : > { %3153 = vmatpush1.bf16.msra.mxu0 %v3071_v27 }
 0x79d   : > { %3171 = vmatmul.mubr.bf16.vlgmr.msra.gmra.mrb[80].mxu0 %v5495_v51  ;;  %v3371_v51 = vpop.permute.xlu1 %3370 }
 0x79e   : > { %3180 = vmatprep.mubr.bf16.mxu0 %v5719_v6 }
 0x7a5   : > { %3181 = vmatmul.mubr.bf16.gmra.mrb[84].mxu0 %v5496_v45  ;;  %v3359_v45 = vpop.permute.xlu0 %3358 }
 0x7a6   : > { %3190 = vmatprep.mubr.bf16.mxu0 %v5719_v6 }
 0x7ad   : > { %3191 = vmatmul.mubr.bf16.gmra.mrb[88].mxu0 %v5497_v37 }
 0x7ae   : > { %3200 = vmatprep.mubr.bf16.mxu0 %v5719_v6 }
 0x7b5   : > { %3201 = vmatmul.mubr.bf16.gmra.mrb[92].mxu0 %v5498_v2 }
 0x7b6   : > { %3210 = vmatprep.mubr.bf16.mxu0 %v5719_v6 }
 0x7bd   : > { %3211 = vmatmul.mubr.bf16.gmra.mrb[96].mxu0 %v5499_v40 }
 0x7be   : > { %3220 = vmatprep.mubr.bf16.mxu0 %v5719_v6 }
 0x7c5   : > { %3221 = vmatmul.mubr.bf16.gmra.mrb[100].mxu0 %v5500_v48  ;;  %v3379_v48 = vrot.slane %v3371_v51, %v6257_v28 }
 0x7c6   : > { %3230 = vmatprep.mubr.bf16.mxu0 %v5719_v6 }
 0x7cd   : > { %3231 = vmatmul.mubr.bf16.gmra.mrb[104].mxu0 %v5501_v3  ;;  %v3367_v3 = vrot.slane %v3359_v45, %v6257_v28 }
 0x7ce   : > { %3240 = vmatprep.mubr.bf16.mxu0 %v5719_v6 }
 0x7d5   : > { %3241 = vmatmul.mubr.bf16.gmra.mrb[108].mxu0 %v5502_v5 }
 0x7d6   : > { %4278 = vmatprep.mubr.bf16.mxu0 %v5719_v6 }
 0x870   : > { %v3172_v31 = vpop.f32.mrb[80].mxu0 }
 0x871   : > { %v3174_v29 = vpop.f32.mrb[81].mxu0 }
 0x872   : > { %v3176_v36 = vpop.f32.mrb[82].mxu0 }
 0x873   : > { %v3251_v25 = vpack.c.bf16 %v3176_v36, %v3172_v31  ;;  %v3178_v56 = vpop.f32.mrb[83].mxu0  ;;  %v5313_v31 = vcombine.low %v3367_v3, %v3379_v48 }
 0x874   : > { %v3252_v33 = vpack.c.bf16 %v3178_v56, %v3174_v29 }
 0x875   : > { %v3524_v39 = vadd.bf16 %v5310_v30, %v3251_v25  ;;  %v3383_v25 = vpop.permute.xlu0 %3382 }
 0x876   : > { %v3525_v11 = vadd.bf16 %v5310_v30, %v3252_v33  ;;  %v3395_v30 = vpop.permute.xlu1 %3394 }
 0x877   : > { %v3540_v1 = vmax.bf16 %v5719_v6, %v3524_v39  ;;  %v3403_v33 = vrot.slane %v3395_v30, %v6257_v28  ;;  %v3391_v39 = vrot.slane %v3383_v25, %v6257_v28 }
 0x878   : > { %v3182_v24 = vpop.f32.mrb[84].mxu0  ;;  %v3541_v62 = vmax.bf16 %v5719_v6, %v3525_v11 }
 0x879   : > { %v3184_v50 = vpop.f32.mrb[85].mxu0 }
 0x87a   : > { %v3186_v44 = vpop.f32.mrb[86].mxu0  ;;  %3598 = vmatprep.subr.bf16.mxu1 %v3541_v62 }
 0x87b   : > { %v3253_v54 = vpack.c.bf16 %v3186_v44, %v3182_v24  ;;  %v3188_v18 = vpop.f32.mrb[87].mxu0  ;;  %3599 = vmatpush1.bf16.msra.mxu1 %v3540_v1  ;;  %v5314_v1 = vcombine.low %v3391_v39, %v3403_v33 }
 0x87c   : > { %v3254_v21 = vpack.c.bf16 %v3188_v18, %v3184_v50 }
 0x87d   : > { %v3526_v55 = vadd.bf16 %v5311_v42, %v3253_v54  ;;  %v3407_v54 = vpop.permute.xlu0 %3406 }
 0x87e   : > { %v3527_v41 = vadd.bf16 %v5311_v42, %v3254_v21  ;;  %v3419_v42 = vpop.permute.xlu1 %3418 }
 0x87f   : > { %v3542_v53 = vmax.bf16 %v5719_v6, %v3526_v55  ;;  %v3427_v21 = vrot.slane %v3419_v42, %v6257_v28  ;;  %v3415_v55 = vrot.slane %v3407_v54, %v6257_v28 }
 0x880   : > { %v3192_v38 = vpop.f32.mrb[88].mxu0  ;;  %v3543_v46 = vmax.bf16 %v5719_v6, %v3527_v41 }
 0x881   : > { %v3194_v16 = vpop.f32.mrb[89].mxu0 }
 0x882   : > { %v3196_v10 = vpop.f32.mrb[90].mxu0  ;;  %3600 = vmatprep.subr.bf16.mxu1 %v3543_v46 }
 0x883   : > { %v3255_v35 = vpack.c.bf16 %v3196_v10, %v3192_v38  ;;  %v3198_v27 = vpop.f32.mrb[91].mxu0  ;;  %3601 = vmatpush1.bf16.msra.mxu1 %v3542_v53  ;;  %v5315_v53 = vcombine.low %v3415_v55, %v3427_v21 }
 0x884   : > { %v3256_v37 = vpack.c.bf16 %v3198_v27, %v3194_v16 }
 0x885   : > { %v3528_v2 = vadd.bf16 %v5312_v63, %v3255_v35  ;;  %v3431_v35 = vpop.permute.xlu0 %3430 }
 0x886   : > { %v3529_v40 = vadd.bf16 %v5312_v63, %v3256_v37  ;;  %v3443_v63 = vpop.permute.xlu1 %3442 }
 0x887   : > { %v3544_v58 = vmax.bf16 %v5719_v6, %v3528_v2  ;;  %v3451_v37 = vrot.slane %v3443_v63, %v6257_v28  ;;  %v3439_v2 = vrot.slane %v3431_v35, %v6257_v28 }
 0x888   : > { %v3202_v5 = vpop.f32.mrb[92].mxu0  ;;  %v3545_v7 = vmax.bf16 %v5719_v6, %v3529_v40 }
 0x889   : > { %v3204_v61 = vpop.f32.mrb[93].mxu0 }
 0x88a   : > { %v3206_v4 = vpop.f32.mrb[94].mxu0  ;;  %3602 = vmatprep.subr.bf16.mxu1 %v3545_v7 }
 0x88b   : > { %v3257_v29 = vpack.c.bf16 %v3206_v4, %v3202_v5  ;;  %v3208_v36 = vpop.f32.mrb[95].mxu0  ;;  %3603 = vmatpush1.bf16.msra.mxu1 %v3544_v58  ;;  %v5316_v58 = vcombine.low %v3439_v2, %v3451_v37 }
 0x88c   : > { %v3258_v56 = vpack.c.bf16 %v3208_v36, %v3204_v61 }
 0x88d   : > { %v3530_v15 = vadd.bf16 %v5313_v31, %v3257_v29  ;;  %v3455_v29 = vpop.permute.xlu0 %3454 }
 0x88e   : > { %v3531_v19 = vadd.bf16 %v5313_v31, %v3258_v56  ;;  %v3467_v31 = vpop.permute.xlu1 %3466 }
 0x88f   : > { %v3546_v22 = vmax.bf16 %v5719_v6, %v3530_v15  ;;  %v3475_v56 = vrot.slane %v3467_v31, %v6257_v28  ;;  %v3463_v15 = vrot.slane %v3455_v29, %v6257_v28 }
 0x890   : > { %v3212_v11 = vpop.f32.mrb[96].mxu0  ;;  %v3547_v12 = vmax.bf16 %v5719_v6, %v3531_v19 }
 0x891   : > { %v3214_v24 = vpop.f32.mrb[97].mxu0 }
 0x892   : > { %v3216_v62 = vpop.f32.mrb[98].mxu0  ;;  %3604 = vmatprep.subr.bf16.mxu1 %v3547_v12 }
 0x893   : > { %v3259_v50 = vpack.c.bf16 %v3216_v62, %v3212_v11  ;;  %v3218_v44 = vpop.f32.mrb[99].mxu0  ;;  %3605 = vmatpush1.bf16.msra.mxu1 %v3546_v22  ;;  %v5317_v22 = vcombine.low %v3463_v15, %v3475_v56 }
 0x894   : > { %v3260_v18 = vpack.c.bf16 %v3218_v44, %v3214_v24 }
 0x895   : > { %v3532_v47 = vadd.bf16 %v5314_v1, %v3259_v50 }
 0x896   : > { %v3533_v52 = vadd.bf16 %v5314_v1, %v3260_v18  ;;  %v5503_v18 = vld [vmem:[%s7197_s5 + $0x10] sm:$0xff]  }
 0x897   : > { %v3548_v43 = vmax.bf16 %v5719_v6, %v3532_v47  ;;  %v5504_v47 = vld [vmem:[%s7197_s5 + $0x18] sm:$0xff]  }
 0x898   : > { %v3222_v41 = vpop.f32.mrb[100].mxu0  ;;  %v3549_v0 = vmax.bf16 %v5719_v6, %v3533_v52  ;;  %v3569_v52 = vpop.permute.xlu0 %3568 }
 0x899   : > { %v3224_v38 = vpop.f32.mrb[101].mxu0 }
 0x89a   : > { %v3226_v46 = vpop.f32.mrb[102].mxu0  ;;  %3606 = vmatprep.subr.bf16.mxu1 %v3549_v0  ;;  %v3574_v0 = vpop.permute.xlu1 %3573 }
 0x89b   : > { %v3261_v16 = vpack.c.bf16 %v3226_v46, %v3222_v41  ;;  %v3228_v10 = vpop.f32.mrb[103].mxu0  ;;  %3607 = vmatpush1.bf16.msra.mxu1 %v3548_v43 }
 0x89c   : > { %v3262_v27 = vpack.c.bf16 %v3228_v10, %v3224_v38  ;;  %v3579_v63 = vpop.permute.xlu0 %3578 }
 0x89d   : > { %v3534_v51 = vadd.bf16 %v5315_v53, %v3261_v16 }
 0x89e   : > { %v3535_v45 = vadd.bf16 %v5315_v53, %v3262_v27 }
 0x89f   : > { %v3550_v3 = vmax.bf16 %v5719_v6, %v3534_v51 }
 0x8a0   : > { %v3232_v40 = vpop.f32.mrb[104].mxu0  ;;  %v3551_v48 = vmax.bf16 %v5719_v6, %v3535_v45  ;;  %v3584_v45 = vpop.permute.xlu1 %3583 }
 0x8a1   : > { %v3234_v5 = vpop.f32.mrb[105].mxu0 }
 0x8a2   : > { %v3236_v7 = vpop.f32.mrb[106].mxu0  ;;  %3608 = vmatprep.subr.bf16.mxu1 %v3551_v48 }
 0x8a3   : > { %v3263_v61 = vpack.c.bf16 %v3236_v7, %v3232_v40  ;;  %v3238_v4 = vpop.f32.mrb[107].mxu0  ;;  %3609 = vmatpush1.bf16.msra.mxu1 %v3550_v3  ;;  %v2568_v40 = vadd.f32 %v6741_v14, %v6558_v59 }
 0x8a4   : > { %v3264_v36 = vpack.c.bf16 %v3238_v4, %v3234_v5  ;;  %v2569_v5 = vadd.f32 %v6743_v49, %v6561_v34 }
 0x8a5   : > { %v3536_v30 = vadd.bf16 %v5316_v58, %v3263_v61  ;;  %v2570_v61 = vadd.f32 %v6746_v57, %v6564_v13 }
 0x8a6   : > { %v3537_v25 = vadd.bf16 %v5316_v58, %v3264_v36  ;;  %v2571_v36 = vadd.f32 %v6749_v60, %v6567_v26 }
 0x8a7   : > { %v3552_v39 = vmax.bf16 %v5719_v6, %v3536_v30 }
 0x8a8   : > { %v3242_v19 = vpop.f32.mrb[108].mxu0  ;;  %v3553_v33 = vmax.bf16 %v5719_v6, %v3537_v25 }
 0x8a9   : > { %v3244_v11 = vpop.f32.mrb[109].mxu0 }
 0x8aa   : > { %v3246_v12 = vpop.f32.mrb[110].mxu0  ;;  %3610 = vmatprep.subr.bf16.mxu1 %v3553_v33 }
 0x8ab   : > { %v3265_v24 = vpack.c.bf16 %v3246_v12, %v3242_v19  ;;  %v3248_v62 = vpop.f32.mrb[111].mxu0  ;;  %3611 = vmatpush1.bf16.msra.mxu1 %v3552_v39 }
 0x8ac   : > { %v3266_v1 = vpack.c.bf16 %v3248_v62, %v3244_v11 }
 0x8ad   : > { %v3538_v50 = vadd.bf16 %v5317_v22, %v3265_v24 }
 0x8ae   : > { %v3539_v44 = vadd.bf16 %v5317_v22, %v3266_v1 }
 0x8af   : > { %v3554_v54 = vmax.bf16 %v5719_v6, %v3538_v50 }
 0x8b0   : > { %v3555_v42 = vmax.bf16 %v5719_v6, %v3539_v44 }
 0x8b2   : > { %3612 = vmatprep.subr.bf16.mxu1 %v3555_v42 }
 0x8b3   : > { %3613 = vmatpush1.bf16.msra.mxu1 %v3554_v54 }
 0x8b6   : > { %3631 = vmatmul.mubr.bf16.vlgmr.msra.gmra.mrb[96].mxu1 %v5503_v18 }
 0x8b7   : > { %3640 = vmatprep.mubr.bf16.mxu1 %v5719_v6 }
 0x8be   : > { %3641 = vmatmul.mubr.bf16.gmra.mrb[100].mxu1 %v5504_v47 }
 0x8bf   : > { %3797 = vmatprep.mubr.bf16.mxu1 %v5719_v6 }
 0x989   : > { %v3632_v21 = vpop.f32.mrb[96].mxu1 }
 0x98a   : > { %v3633_v55 = vadd.f32 %v3632_v21, %v3569_v52  ;;  %v3634_v41 = vpop.f32.mrb[97].mxu1  ;;  %v5508_v21 = vld [vmem:[%s7193_s1 + $0x18] sm:$0xff]  }
 0x98b   : > { %v3635_v43 = vadd.f32 %v3634_v41, %v3569_v52  ;;  %v3636_v38 = vpop.f32.mrb[98].mxu1  ;;  %v5507_v52 = vld [vmem:[%s7193_s1 + $0x10] sm:$0xff]   ;;  %v5510_v41 = vld [vmem:[%s7193_s1 + $0x28] sm:$0xff]  }
 0x98c   : > { %5571 = vtanh.f32 %v3633_v55  ;;  %v3637_v46 = vadd.f32 %v3636_v38, %v3574_v0  ;;  %v3638_v53 = vpop.f32.mrb[99].mxu1  ;;  %v5509_v55 = vld [vmem:[%s7193_s1 + $0x20] sm:$0xff]   ;;  %v3925_v38 = vpop.permute.xlu1 %3924 }
 0x98d   : > { %5573 = vtanh.f32 %v3635_v43  ;;  %v3639_v16 = vadd.f32 %v3638_v53, %v3574_v0  ;;  %v5511_v0 = vld [vmem:[%s7193_s1 + $0x30] sm:$0xff]   ;;  %v5512_v43 = vld [vmem:[%s7193_s1 + $0x38] sm:$0xff]   ;;  %v3933_v53 = vrot.slane %v3925_v38, %v6257_v28 }
 0x98e   : > { %5575 = vtanh.f32 %v3637_v46  ;;  %v3913_v46 = vpop.permute.xlu0 %3912 }
 0x98f   : > { %5577 = vtanh.f32 %v3639_v16  ;;  %v3921_v16 = vrot.slane %v3913_v46, %v6257_v28 }
 0x991   : > { %v3642_v10 = vpop.f32.mrb[100].mxu1 }
 0x992   : > { %v3644_v35 = vpop.f32.mrb[101].mxu1  ;;  %v3643_v27 = vadd.f32 %v3642_v10, %v3579_v63 }
 0x993   : > { %v3646_v51 = vpop.f32.mrb[102].mxu1  ;;  %v3645_v37 = vadd.f32 %v3644_v35, %v3579_v63 }
 0x994   : > { %v3648_v2 = vpop.f32.mrb[103].mxu1  ;;  %v3647_v48 = vadd.f32 %v3646_v51, %v3584_v45  ;;  %5579 = vtanh.f32 %v3643_v27  ;;  %v5344_v27 = vcombine.low %v3921_v16, %v3933_v53 }
 0x995   : > { %v3649_v7 = vadd.f32 %v3648_v2, %v3584_v45  ;;  %5581 = vtanh.f32 %v3645_v37  ;;  %v3949_v37 = vpop.permute.xlu1 %3948  ;;  %v3937_v2 = vpop.permute.xlu0 %3936 }
 0x996   : > { %v5572_v3 = vpop.eup %5571  ;;  %5583 = vtanh.f32 %v3647_v48 }
 0x997   : > { %v5574_v58 = vpop.eup %5573  ;;  %v3663_v4 = vsub.f32 0.0, %v5572_v3  ;;  %v6919_v31 = vadd.f32 %v5572_v3, %v2568_v40  ;;  %5585 = vtanh.f32 %v3649_v7  ;;  %v3945_v7 = vrot.slane %v3937_v2, %v6257_v28 }
 0x998   : > { %v5576_v29 = vpop.eup %5575  ;;  %v3664_v30 = vsub.f32 0.0, %v5574_v58  ;;  %v6923_v59 = vadd.f32 %v5574_v58, %v2569_v5  ;;  %v3957_v5 = vrot.slane %v3949_v37, %v6257_v28 }
 0x999   : > { %v5578_v14 = vpop.eup %5577  ;;  %v3667_v25 = vmul.f32 1.442695, %v3663_v4  ;;  %v3665_v34 = vsub.f32 0.0, %v5576_v29  ;;  %v6925_v49 = vadd.f32 %v5576_v29, %v2570_v61 }
 0x99a   : > { %v3669_v56 = vmul.f32 1.442695, %v3664_v30  ;;  %v3666_v13 = vsub.f32 0.0, %v5578_v14  ;;  %v6927_v57 = vadd.f32 %v5578_v14, %v2571_v36  ;;  %v5345_v30 = vcombine.low %v3945_v7, %v3957_v5 }
 0x99b   : > { %5587 = vpow2.f32 %v3667_v25  ;;  %v3671_v15 = vmul.f32 1.442695, %v3665_v34  ;;  %v3973_v34 = vpop.permute.xlu1 %3972 }
 0x99c   : > { %5589 = vpow2.f32 %v3669_v56  ;;  %v3673_v19 = vmul.f32 1.442695, %v3666_v13  ;;  %v3961_v56 = vpop.permute.xlu0 %3960 }
 0x99d   : > { %5591 = vpow2.f32 %v3671_v15 }
 0x99e   : > { %5593 = vpow2.f32 %v3673_v19  ;;  %v5580_v26 = vpop.eup %5579 }
 0x99f   : > { %v5582_v60 = vpop.eup %5581  ;;  %v3659_v11 = vsub.f32 %v6756_v9, %v5580_v26  ;;  %v3981_v26 = vrot.slane %v3973_v34, %v6257_v28 }
 0x9a0   : > { %v5584_v33 = vpop.eup %5583  ;;  %v3660_v22 = vsub.f32 %v6759_v20, %v5582_v60  ;;  %v3969_v60 = vrot.slane %v3961_v56, %v6257_v28 }
 0x9a1   : > { %v5586_v39 = vpop.eup %5585  ;;  %v3661_v62 = vsub.f32 %v6761_v32, %v5584_v33  ;;  %v5505_v32 = vld [vmem:[%s7193_s1] sm:$0xff]  }
 0x9a2   : > { %v3662_v44 = vsub.f32 %v6763_v8, %v5586_v39  ;;  %v5506_v8 = vld [vmem:[%s7193_s1 + $0x8] sm:$0xff]  }
 0x9a5   : > { %v5588_v12 = vpop.eup %5587 }
 0x9a6   : > { %v5590_v24 = vpop.eup %5589  ;;  %v6932_v1 = vmul.f32 %v5588_v12, %v3659_v11 }
 0x9a7   : > { %v5592_v50 = vpop.eup %5591  ;;  %v6935_v42 = vmul.f32 %v5590_v24, %v3660_v22  ;;  %v5346_v24 = vcombine.low %v3969_v60, %v3981_v26 }
 0x9a8   : > { %v5594_v54 = vpop.eup %5593  ;;  %v6937_v18 = vmul.f32 %v5592_v50, %v3661_v62 }
 0x9a9   : > { %v6939_v47 = vmul.f32 %v5594_v54, %v3662_v44  ;;  %v3997_v44 = vpop.permute.xlu1 %3996  ;;  %v3985_v54 = vpop.permute.xlu0 %3984 }
 0x9aa   : > { %v3683_v20 = vpack.c.bf16 %v6937_v18, %v6932_v1 }
 0x9ab   : > { %v3684_v9 = vpack.c.bf16 %v6939_v47, %v6935_v42 }
 0x9ad   : > { %3765 = vmatprep.subr.bf16.mxu1 %v3684_v9  ;;  %v4021_v16 = vpop.permute.xlu1 %4020 }
 0x9ae   : > { %3766 = vmatpush1.bf16.msra.mxu1 %v3683_v20 }
 0x9b1   : > { %5336 = vmatmul.mubr.msk.bf16.vlgmr.msra.gmra.mrb[104].mxu1 %vm408_vm0, %v5505_v32 }
 0x9b2   : > { %3807 = vmatprep.mubr.bf16.mxu1 %v5719_v6 }
 0x9b9   : > { %5337 = vmatmul.mubr.msk.bf16.gmra.mrb[108].mxu1 %vm408_vm0, %v5506_v8  ;;  %v4005_v8 = vrot.slane %v3997_v44, %v6257_v28 }
 0x9ba   : > { %3817 = vmatprep.mubr.bf16.mxu1 %v5719_v6 }
 0x9c1   : > { %5338 = vmatmul.mubr.msk.bf16.gmra.mrb[112].mxu1 %vm408_vm0, %v5507_v52  ;;  %v3993_v52 = vrot.slane %v3985_v54, %v6257_v28 }
 0x9c2   : > { %3827 = vmatprep.mubr.bf16.mxu1 %v5719_v6 }
 0x9c3   : > { %v5347_v38 = vcombine.low %v3993_v52, %v4005_v8 }
 0x9c9   : > { %5339 = vmatmul.mubr.msk.bf16.gmra.mrb[116].mxu1 %vm408_vm0, %v5508_v21 }
 0x9ca   : > { %3837 = vmatprep.mubr.bf16.mxu1 %v5719_v6 }
 0x9d1   : > { %5340 = vmatmul.mubr.msk.bf16.gmra.mrb[120].mxu1 %vm408_vm0, %v5509_v55 }
 0x9d2   : > { %3847 = vmatprep.mubr.bf16.mxu1 %v5719_v6 }
 0x9d9   : > { %5341 = vmatmul.mubr.msk.bf16.gmra.mrb[124].mxu1 %vm408_vm0, %v5510_v41 }
 0x9da   : > { %3857 = vmatprep.mubr.bf16.mxu1 %v5719_v6 }
 0x9e1   : > { %5342 = vmatmul.mubr.msk.bf16.gmra.mrb[128].mxu1 %vm408_vm0, %v5511_v0 }
 0x9e2   : > { %3867 = vmatprep.mubr.bf16.mxu1 %v5719_v6 }
 0x9e9   : > { %5343 = vmatmul.mubr.msk.bf16.gmra.mrb[132].mxu1 %vm408_vm0, %v5512_v43 }
 0x9ea   : > { %4745 = vmatprep.mubr.bf16.mxu1 %v5719_v6 }
 0xa84   : > { %v3799_v10 = vpop.f32.mrb[104].mxu1 }
 0xa85   : > { %v3801_v63 = vpop.f32.mrb[105].mxu1 }
 0xa86   : > { %v3803_v35 = vpop.f32.mrb[106].mxu1 }
 0xa87   : > { %v3878_v51 = vpack.c.bf16 %v3803_v35, %v3799_v10  ;;  %v3805_v45 = vpop.f32.mrb[107].mxu1  ;;  %v4009_v10 = vpop.permute.xlu0 %4008 }
 0xa88   : > { %v3879_v40 = vpack.c.bf16 %v3805_v45, %v3801_v63  ;;  %v4017_v45 = vrot.slane %v4009_v10, %v6257_v28 }
 0xa89   : > { %v4150_v48 = vadd.bf16 %v5344_v27, %v3878_v51  ;;  %v4029_v51 = vrot.slane %v4021_v16, %v6257_v28 }
 0xa8a   : > { %v4151_v3 = vadd.bf16 %v5344_v27, %v3879_v40 }
 0xa8b   : > { %v4166_v4 = vmax.bf16 %v5719_v6, %v4150_v48  ;;  %v5348_v5 = vcombine.low %v4017_v45, %v4029_v51 }
 0xa8c   : > { %v3809_v58 = vpop.f32.mrb[108].mxu1  ;;  %v4167_v61 = vmax.bf16 %v5719_v6, %v4151_v3 }
 0xa8d   : > { %v3811_v29 = vpop.f32.mrb[109].mxu1 }
 0xa8e   : > { %v3813_v36 = vpop.f32.mrb[110].mxu1  ;;  %4246 = vmatprep.subr.bf16.mxu0 %v4167_v61  ;;  %v4045_v61 = vpop.permute.xlu1 %4044 }
 0xa8f   : > { %v3880_v14 = vpack.c.bf16 %v3813_v36, %v3809_v58  ;;  %v3815_v25 = vpop.f32.mrb[111].mxu1  ;;  %4247 = vmatpush1.bf16.msra.mxu0 %v4166_v4  ;;  %v4033_v4 = vpop.permute.xlu0 %4032 }
 0xa90   : > { %v3881_v13 = vpack.c.bf16 %v3815_v25, %v3811_v29  ;;  %v4041_v25 = vrot.slane %v4033_v4, %v6257_v28  ;;  %v5516_v4 = vld [vmem:[%s7195_s3 + $0x18] sm:$0xff]  }
 0xa91   : > { %v4152_v15 = vadd.bf16 %v5345_v30, %v3880_v14  ;;  %v4053_v14 = vrot.slane %v4045_v61, %v6257_v28  ;;  %v5515_v61 = vld [vmem:[%s7195_s3 + $0x10] sm:$0xff]  }
 0xa92   : > { %v4153_v19 = vadd.bf16 %v5345_v30, %v3881_v13 }
 0xa93   : > { %v4168_v11 = vmax.bf16 %v5719_v6, %v4152_v15  ;;  %v5349_v26 = vcombine.low %v4041_v25, %v4053_v14  ;;  %v5520_v14 = vld [vmem:[%s7195_s3 + $0x38] sm:$0xff]  }
 0xa94   : > { %v3819_v33 = vpop.f32.mrb[112].mxu1  ;;  %v4169_v39 = vmax.bf16 %v5719_v6, %v4153_v19 }
 0xa95   : > { %v3821_v12 = vpop.f32.mrb[113].mxu1 }
 0xa96   : > { %v3823_v22 = vpop.f32.mrb[114].mxu1  ;;  %4248 = vmatprep.subr.bf16.mxu0 %v4169_v39  ;;  %v4069_v39 = vpop.permute.xlu1 %4068 }
 0xa97   : > { %v3882_v62 = vpack.c.bf16 %v3823_v22, %v3819_v33  ;;  %v3825_v50 = vpop.f32.mrb[115].mxu1  ;;  %4249 = vmatpush1.bf16.msra.mxu0 %v4168_v11  ;;  %v4057_v11 = vpop.permute.xlu0 %4056 }
 0xa98   : > { %v3883_v9 = vpack.c.bf16 %v3825_v50, %v3821_v12  ;;  %v4065_v50 = vrot.slane %v4057_v11, %v6257_v28 }
 0xa99   : > { %v4154_v20 = vadd.bf16 %v5346_v24, %v3882_v62  ;;  %v4077_v62 = vrot.slane %v4069_v39, %v6257_v28 }
 0xa9a   : > { %v4155_v32 = vadd.bf16 %v5346_v24, %v3883_v9 }
 0xa9b   : > { %v4170_v41 = vmax.bf16 %v5719_v6, %v4154_v20  ;;  %v5350_v8 = vcombine.low %v4065_v50, %v4077_v62 }
 0xa9c   : > { %v3829_v21 = vpop.f32.mrb[116].mxu1  ;;  %v4171_v55 = vmax.bf16 %v5719_v6, %v4155_v32 }
 0xa9d   : > { %v3831_v0 = vpop.f32.mrb[117].mxu1 }
 0xa9e   : > { %v3833_v43 = vpop.f32.mrb[118].mxu1  ;;  %4250 = vmatprep.subr.bf16.mxu0 %v4171_v55  ;;  %v4093_v55 = vpop.permute.xlu1 %4092 }
 0xa9f   : > { %v3884_v46 = vpack.c.bf16 %v3833_v43, %v3829_v21  ;;  %v3835_v53 = vpop.f32.mrb[119].mxu1  ;;  %4251 = vmatpush1.bf16.msra.mxu0 %v4170_v41  ;;  %v4081_v41 = vpop.permute.xlu0 %4080 }
 0xaa0   : > { %v3885_v63 = vpack.c.bf16 %v3835_v53, %v3831_v0  ;;  %v4089_v53 = vrot.slane %v4081_v41, %v6257_v28 }
 0xaa1   : > { %v4156_v35 = vadd.bf16 %v5347_v38, %v3884_v46  ;;  %v4101_v46 = vrot.slane %v4093_v55, %v6257_v28 }
 0xaa2   : > { %v4157_v27 = vadd.bf16 %v5347_v38, %v3885_v63  ;;  %v4406_v25 = vpop.permute.xlu1 %4405 }
 0xaa3   : > { %v4172_v40 = vmax.bf16 %v5719_v6, %v4156_v35  ;;  %v5351_v51 = vcombine.low %v4089_v53, %v4101_v46 }
 0xaa4   : > { %v3839_v37 = vpop.f32.mrb[120].mxu1  ;;  %v4173_v2 = vmax.bf16 %v5719_v6, %v4157_v27 }
 0xaa5   : > { %v3841_v48 = vpop.f32.mrb[121].mxu1 }
 0xaa6   : > { %v3843_v3 = vpop.f32.mrb[122].mxu1  ;;  %4252 = vmatprep.subr.bf16.mxu0 %v4173_v2  ;;  %v4430_v11 = vpop.permute.xlu1 %4429 }
 0xaa7   : > { %v3886_v7 = vpack.c.bf16 %v3843_v3, %v3839_v37  ;;  %v3845_v58 = vpop.f32.mrb[123].mxu1  ;;  %4253 = vmatpush1.bf16.msra.mxu0 %v4172_v40  ;;  %v4438_v50 = vrot.slane %v4430_v11, %v6257_v28 }
 0xaa8   : > { %v3887_v29 = vpack.c.bf16 %v3845_v58, %v3841_v48  ;;  %v5514_v58 = vld [vmem:[%s7195_s3 + $0x8] sm:$0xff]  }
 0xaa9   : > { %v4158_v36 = vadd.bf16 %v5348_v5, %v3886_v7  ;;  %v5513_v7 = vld [vmem:[%s7195_s3] sm:$0xff]  }
 0xaaa   : > { %v4159_v30 = vadd.bf16 %v5348_v5, %v3887_v29  ;;  %v5517_v29 = vld [vmem:[%s7195_s3 + $0x20] sm:$0xff]   ;;  %v4454_v41 = vpop.permute.xlu1 %4453 }
 0xaab   : > { %v4174_v13 = vmax.bf16 %v5719_v6, %v4158_v36  ;;  %v5518_v36 = vld [vmem:[%s7195_s3 + $0x28] sm:$0xff]   ;;  %v4462_v53 = vrot.slane %v4454_v41, %v6257_v28 }
 0xaac   : > { %v3849_v34 = vpop.f32.mrb[124].mxu1  ;;  %v4175_v56 = vmax.bf16 %v5719_v6, %v4159_v30  ;;  %v5519_v30 = vld [vmem:[%s7195_s3 + $0x30] sm:$0xff]  }
 0xaad   : > { %v3851_v15 = vpop.f32.mrb[125].mxu1 }
 0xaae   : > { %v3853_v19 = vpop.f32.mrb[126].mxu1  ;;  %4254 = vmatprep.subr.bf16.mxu0 %v4175_v56  ;;  %v4414_v56 = vrot.slane %v4406_v25, %v6257_v28 }
 0xaaf   : > { %v3888_v60 = vpack.c.bf16 %v3853_v19, %v3849_v34  ;;  %v3855_v33 = vpop.f32.mrb[127].mxu1  ;;  %4255 = vmatpush1.bf16.msra.mxu0 %v4174_v13  ;;  %v4394_v34 = vpop.permute.xlu0 %4393 }
 0xab0   : > { %v3889_v12 = vpack.c.bf16 %v3855_v33, %v3851_v15  ;;  %v4402_v13 = vrot.slane %v4394_v34, %v6257_v28 }
 0xab1   : > { %v4160_v22 = vadd.bf16 %v5349_v26, %v3888_v60 }
 0xab2   : > { %v4161_v24 = vadd.bf16 %v5349_v26, %v3889_v12  ;;  %v5360_v60 = vcombine.low %v4402_v13, %v4414_v56 }
 0xab3   : > { %v4176_v9 = vmax.bf16 %v5719_v6, %v4160_v22  ;;  %v4418_v12 = vpop.permute.xlu0 %4417 }
 0xab4   : > { %v3859_v44 = vpop.f32.mrb[128].mxu1  ;;  %v4177_v54 = vmax.bf16 %v5719_v6, %v4161_v24 }
 0xab5   : > { %v3861_v20 = vpop.f32.mrb[129].mxu1 }
 0xab6   : > { %v3863_v32 = vpop.f32.mrb[130].mxu1  ;;  %4256 = vmatprep.subr.bf16.mxu0 %v4177_v54 }
 0xab7   : > { %v3890_v52 = vpack.c.bf16 %v3863_v32, %v3859_v44  ;;  %v3865_v21 = vpop.f32.mrb[131].mxu1  ;;  %4257 = vmatpush1.bf16.msra.mxu0 %v4176_v9  ;;  %v4426_v44 = vrot.slane %v4418_v12, %v6257_v28 }
 0xab8   : > { %v3891_v0 = vpack.c.bf16 %v3865_v21, %v3861_v20 }
 0xab9   : > { %v4162_v43 = vadd.bf16 %v5350_v8, %v3890_v52  ;;  %v5361_v52 = vcombine.low %v4426_v44, %v4438_v50 }
 0xaba   : > { %v4163_v38 = vadd.bf16 %v5350_v8, %v3891_v0  ;;  %v4442_v0 = vpop.permute.xlu0 %4441 }
 0xabb   : > { %v4178_v63 = vmax.bf16 %v5719_v6, %v4162_v43 }
 0xabc   : > { %v3869_v16 = vpop.f32.mrb[132].mxu1  ;;  %v4179_v10 = vmax.bf16 %v5719_v6, %v4163_v38 }
 0xabd   : > { %v3871_v35 = vpop.f32.mrb[133].mxu1 }
 0xabe   : > { %v3873_v27 = vpop.f32.mrb[134].mxu1  ;;  %4258 = vmatprep.subr.bf16.mxu0 %v4179_v10 }
 0xabf   : > { %v3892_v45 = vpack.c.bf16 %v3873_v27, %v3869_v16  ;;  %v3875_v37 = vpop.f32.mrb[135].mxu1  ;;  %4259 = vmatpush1.bf16.msra.mxu0 %v4178_v63  ;;  %v4450_v16 = vrot.slane %v4442_v0, %v6257_v28 }
 0xac0   : > { %v3893_v2 = vpack.c.bf16 %v3875_v37, %v3871_v35 }
 0xac1   : > { %v4164_v40 = vadd.bf16 %v5351_v51, %v3892_v45  ;;  %v5362_v45 = vcombine.low %v4450_v16, %v4462_v53 }
 0xac2   : > { %v4165_v48 = vadd.bf16 %v5351_v51, %v3893_v2 }
 0xac3   : > { %v4180_v5 = vmax.bf16 %v5719_v6, %v4164_v40  ;;  %v4478_v40 = vpop.permute.xlu1 %4477 }
 0xac4   : > { %v4181_v3 = vmax.bf16 %v5719_v6, %v4165_v48  ;;  %v4466_v48 = vpop.permute.xlu0 %4465 }
 0xac6   : > { %4260 = vmatprep.subr.bf16.mxu0 %v4181_v3 }
 0xac7   : > { %4261 = vmatpush1.bf16.msra.mxu0 %v4180_v5  ;;  %v4502_v13 = vpop.permute.xlu1 %4501 }
 0xaca   : > { %4279 = vmatmul.mubr.bf16.vlgmr.msra.gmra.mrb[112].mxu0 %v5513_v7 }
 0xacb   : > { %4288 = vmatprep.mubr.bf16.mxu0 %v5719_v6 }
 0xad2   : > { %4289 = vmatmul.mubr.bf16.gmra.mrb[116].mxu0 %v5514_v58  ;;  %v4486_v58 = vrot.slane %v4478_v40, %v6257_v28 }
 0xad3   : > { %4298 = vmatprep.mubr.bf16.mxu0 %v5719_v6 }
 0xada   : > { %4299 = vmatmul.mubr.bf16.gmra.mrb[120].mxu0 %v5515_v61  ;;  %v4474_v61 = vrot.slane %v4466_v48, %v6257_v28 }
 0xadb   : > { %4308 = vmatprep.mubr.bf16.mxu0 %v5719_v6 }
 0xadc   : > { %v5363_v25 = vcombine.low %v4474_v61, %v4486_v58 }
 0xae2   : > { %4309 = vmatmul.mubr.bf16.gmra.mrb[124].mxu0 %v5516_v4 }
 0xae3   : > { %4318 = vmatprep.mubr.bf16.mxu0 %v5719_v6 }
 0xaea   : > { %4319 = vmatmul.mubr.bf16.gmra.mrb[128].mxu0 %v5517_v29 }
 0xaeb   : > { %4328 = vmatprep.mubr.bf16.mxu0 %v5719_v6 }
 0xaf2   : > { %4329 = vmatmul.mubr.bf16.gmra.mrb[132].mxu0 %v5518_v36 }
 0xaf3   : > { %4338 = vmatprep.mubr.bf16.mxu0 %v5719_v6 }
 0xafa   : > { %4339 = vmatmul.mubr.bf16.gmra.mrb[136].mxu0 %v5519_v30 }
 0xafb   : > { %4348 = vmatprep.mubr.bf16.mxu0 %v5719_v6 }
 0xb02   : > { %4349 = vmatmul.mubr.bf16.gmra.mrb[140].mxu0 %v5520_v14 }
 0xb03   : > { %4735 = vmatprep.mubr.bf16.mxu0 %v5719_v6 }
 0xb9d   : > { %v4280_v15 = vpop.f32.mrb[112].mxu0 }
 0xb9e   : > { %v4282_v19 = vpop.f32.mrb[113].mxu0 }
 0xb9f   : > { %v4284_v26 = vpop.f32.mrb[114].mxu0 }
 0xba0   : > { %v4359_v33 = vpack.c.bf16 %v4284_v26, %v4280_v15  ;;  %v4286_v39 = vpop.f32.mrb[115].mxu0  ;;  %v4490_v15 = vpop.permute.xlu0 %4489 }
 0xba1   : > { %v4360_v22 = vpack.c.bf16 %v4286_v39, %v4282_v19  ;;  %v4498_v39 = vrot.slane %v4490_v15, %v6257_v28 }
 0xba2   : > { %v4631_v24 = vadd.bf16 %v5360_v60, %v4359_v33  ;;  %v4510_v33 = vrot.slane %v4502_v13, %v6257_v28 }
 0xba3   : > { %v4632_v62 = vadd.bf16 %v5360_v60, %v4360_v22 }
 0xba4   : > { %v4647_v20 = vmax.bf16 %v5719_v6, %v4631_v24  ;;  %v5364_v50 = vcombine.low %v4498_v39, %v4510_v33 }
 0xba5   : > { %v4290_v54 = vpop.f32.mrb[116].mxu0  ;;  %v4648_v9 = vmax.bf16 %v5719_v6, %v4632_v62 }
 0xba6   : > { %v4292_v32 = vpop.f32.mrb[117].mxu0 }
 0xba7   : > { %v4294_v8 = vpop.f32.mrb[118].mxu0  ;;  %4703 = vmatprep.subr.bf16.mxu0 %v4648_v9  ;;  %5383 = vmatprep.subr.bf16.mxu1 %v4648_v9  ;;  %v4526_v9 = vpop.permute.xlu1 %4525 }
 0xba8   : > { %v4361_v21 = vpack.c.bf16 %v4294_v8, %v4290_v54  ;;  %v4296_v55 = vpop.f32.mrb[119].mxu0  ;;  %4704 = vmatpush1.bf16.msra.mxu0 %v4647_v20  ;;  %5391 = vmatpush1.bf16.msra.mxu1 %v4647_v20  ;;  %v4514_v20 = vpop.permute.xlu0 %4513 }
 0xba9   : > { %v4362_v43 = vpack.c.bf16 %v4296_v55, %v4292_v32  ;;  %v4522_v55 = vrot.slane %v4514_v20, %v6257_v28 }
 0xbaa   : > { %v4633_v38 = vadd.bf16 %v5361_v52, %v4361_v21  ;;  %v4534_v21 = vrot.slane %v4526_v9, %v6257_v28 }
 0xbab   : > { %v4634_v46 = vadd.bf16 %v5361_v52, %v4362_v43 }
 0xbac   : > { %v4649_v35 = vmax.bf16 %v5719_v6, %v4633_v38  ;;  %v5365_v53 = vcombine.low %v4522_v55, %v4534_v21 }
 0xbad   : > { %v4300_v10 = vpop.f32.mrb[120].mxu0  ;;  %v4650_v63 = vmax.bf16 %v5719_v6, %v4634_v46 }
 0xbae   : > { %v4302_v27 = vpop.f32.mrb[121].mxu0 }
 0xbaf   : > { %v4304_v51 = vpop.f32.mrb[122].mxu0  ;;  %4705 = vmatprep.subr.bf16.mxu0 %v4650_v63  ;;  %5384 = vmatprep.subr.bf16.mxu1 %v4650_v63  ;;  %v4550_v63 = vpop.permute.xlu1 %4549 }
 0xbb0   : > { %v4363_v37 = vpack.c.bf16 %v4304_v51, %v4300_v10  ;;  %v4306_v2 = vpop.f32.mrb[123].mxu0  ;;  %4706 = vmatpush1.bf16.msra.mxu0 %v4649_v35  ;;  %5392 = vmatpush1.bf16.msra.mxu1 %v4649_v35  ;;  %v4538_v35 = vpop.permute.xlu0 %4537 }
 0xbb1   : > { %v4364_v3 = vpack.c.bf16 %v4306_v2, %v4302_v27  ;;  %v4546_v2 = vrot.slane %v4538_v35, %v6257_v28 }
 0xbb2   : > { %v4635_v5 = vadd.bf16 %v5362_v45, %v4363_v37  ;;  %v4558_v37 = vrot.slane %v4550_v63, %v6257_v28 }
 0xbb3   : > { %v4636_v7 = vadd.bf16 %v5362_v45, %v4364_v3 }
 0xbb4   : > { %v4651_v36 = vmax.bf16 %v5719_v6, %v4635_v5  ;;  %v5366_v58 = vcombine.low %v4546_v2, %v4558_v37 }
 0xbb5   : > { %v4310_v4 = vpop.f32.mrb[124].mxu0  ;;  %v4652_v29 = vmax.bf16 %v5719_v6, %v4636_v7 }
 0xbb6   : > { %v4312_v30 = vpop.f32.mrb[125].mxu0 }
 0xbb7   : > { %v4314_v14 = vpop.f32.mrb[126].mxu0  ;;  %4707 = vmatprep.subr.bf16.mxu0 %v4652_v29  ;;  %5385 = vmatprep.subr.bf16.mxu1 %v4652_v29  ;;  %v4574_v29 = vpop.permute.xlu1 %4573 }
 0xbb8   : > { %v4365_v34 = vpack.c.bf16 %v4314_v14, %v4310_v4  ;;  %v4316_v56 = vpop.f32.mrb[127].mxu0  ;;  %4708 = vmatpush1.bf16.msra.mxu0 %v4651_v36  ;;  %5393 = vmatpush1.bf16.msra.mxu1 %v4651_v36  ;;  %v4562_v36 = vpop.permute.xlu0 %4561 }
 0xbb9   : > { %v4366_v19 = vpack.c.bf16 %v4316_v56, %v4312_v30  ;;  %v4570_v56 = vrot.slane %v4562_v36, %v6257_v28 }
 0xbba   : > { %v4637_v26 = vadd.bf16 %v5363_v25, %v4365_v34  ;;  %v4582_v34 = vrot.slane %v4574_v29, %v6257_v28 }
 0xbbb   : > { %v4638_v60 = vadd.bf16 %v5363_v25, %v4366_v19 }
 0xbbc   : > { %v4653_v22 = vmax.bf16 %v5719_v6, %v4637_v26  ;;  %v5367_v33 = vcombine.low %v4570_v56, %v4582_v34  ;;  %v4674_v9 = vpop.permute.xlu0 %4673 }
 0xbbd   : > { %v4320_v11 = vpop.f32.mrb[128].mxu0  ;;  %v4654_v12 = vmax.bf16 %v5719_v6, %v4638_v60 }
 0xbbe   : > { %v4322_v24 = vpop.f32.mrb[129].mxu0 }
 0xbbf   : > { %v4324_v62 = vpop.f32.mrb[130].mxu0  ;;  %4709 = vmatprep.subr.bf16.mxu0 %v4654_v12  ;;  %5386 = vmatprep.subr.bf16.mxu1 %v4654_v12 }
 0xbc0   : > { %v4367_v44 = vpack.c.bf16 %v4324_v62, %v4320_v11  ;;  %v4326_v54 = vpop.f32.mrb[131].mxu0  ;;  %4710 = vmatpush1.bf16.msra.mxu0 %v4653_v22  ;;  %5394 = vmatpush1.bf16.msra.mxu1 %v4653_v22 }
 0xbc1   : > { %v4368_v32 = vpack.c.bf16 %v4326_v54, %v4322_v24  ;;  %v4679_v54 = vpop.permute.xlu1 %4678 }
 0xbc2   : > { %v4639_v8 = vadd.bf16 %v5364_v50, %v4367_v44  ;;  %v5522_v44 = vld [vmem:[%s7197_s5 + $0x8] sm:$0xff]  }
 0xbc3   : > { %v4640_v52 = vadd.bf16 %v5364_v50, %v4368_v32  ;;  %v5521_v50 = vld [vmem:[%s7197_s5] sm:$0xff]  }
 0xbc4   : > { %v4655_v43 = vmax.bf16 %v5719_v6, %v4639_v8 }
 0xbc5   : > { %v4330_v41 = vpop.f32.mrb[132].mxu0  ;;  %v4656_v0 = vmax.bf16 %v5719_v6, %v4640_v52 }
 0xbc6   : > { %v4332_v38 = vpop.f32.mrb[133].mxu0 }
 0xbc7   : > { %v4334_v46 = vpop.f32.mrb[134].mxu0  ;;  %4711 = vmatprep.subr.bf16.mxu0 %v4656_v0  ;;  %5387 = vmatprep.subr.bf16.mxu1 %v4656_v0 }
 0xbc8   : > { %v4369_v16 = vpack.c.bf16 %v4334_v46, %v4330_v41  ;;  %v4336_v10 = vpop.f32.mrb[135].mxu0  ;;  %4712 = vmatpush1.bf16.msra.mxu0 %v4655_v43  ;;  %5395 = vmatpush1.bf16.msra.mxu1 %v4655_v43 }
 0xbc9   : > { %v4370_v27 = vpack.c.bf16 %v4336_v10, %v4332_v38  ;;  %v4689_v10 = vpop.permute.xlu1 %4688 }
 0xbca   : > { %v4641_v51 = vadd.bf16 %v5365_v53, %v4369_v16 }
 0xbcb   : > { %v4642_v45 = vadd.bf16 %v5365_v53, %v4370_v27  ;;  %v4684_v53 = vpop.permute.xlu0 %4683 }
 0xbcc   : > { %v4657_v3 = vmax.bf16 %v5719_v6, %v4641_v51 }
 0xbcd   : > { %v4340_v40 = vpop.f32.mrb[136].mxu0  ;;  %v4658_v48 = vmax.bf16 %v5719_v6, %v4642_v45 }
 0xbce   : > { %v4342_v5 = vpop.f32.mrb[137].mxu0 }
 0xbcf   : > { %v4344_v7 = vpop.f32.mrb[138].mxu0  ;;  %4713 = vmatprep.subr.bf16.mxu0 %v4658_v48  ;;  %5388 = vmatprep.subr.bf16.mxu1 %v4658_v48 }
 0xbd0   : > { %v4371_v61 = vpack.c.bf16 %v4344_v7, %v4340_v40  ;;  %v4346_v4 = vpop.f32.mrb[139].mxu0  ;;  %4714 = vmatpush1.bf16.msra.mxu0 %v4657_v3  ;;  %5396 = vmatpush1.bf16.msra.mxu1 %v4657_v3 }
 0xbd1   : > { %v4372_v30 = vpack.c.bf16 %v4346_v4, %v4342_v5 }
 0xbd2   : > { %v4643_v14 = vadd.bf16 %v5366_v58, %v4371_v61 }
 0xbd3   : > { %v4644_v25 = vadd.bf16 %v5366_v58, %v4372_v30 }
 0xbd4   : > { %v4659_v19 = vmax.bf16 %v5719_v6, %v4643_v14 }
 0xbd5   : > { %v4350_v13 = vpop.f32.mrb[140].mxu0  ;;  %v4660_v15 = vmax.bf16 %v5719_v6, %v4644_v25 }
 0xbd6   : > { %v4352_v26 = vpop.f32.mrb[141].mxu0 }
 0xbd7   : > { %v4354_v60 = vpop.f32.mrb[142].mxu0  ;;  %4715 = vmatprep.subr.bf16.mxu0 %v4660_v15  ;;  %5389 = vmatprep.subr.bf16.mxu1 %v4660_v15 }
 0xbd8   : > { %v4373_v39 = vpack.c.bf16 %v4354_v60, %v4350_v13  ;;  %v4356_v11 = vpop.f32.mrb[143].mxu0  ;;  %4716 = vmatpush1.bf16.msra.mxu0 %v4659_v19  ;;  %5397 = vmatpush1.bf16.msra.mxu1 %v4659_v19 }
 0xbd9   : > { %v4374_v12 = vpack.c.bf16 %v4356_v11, %v4352_v26 }
 0xbda   : > { %v4645_v22 = vadd.bf16 %v5367_v33, %v4373_v39 }
 0xbdb   : > { %v4646_v24 = vadd.bf16 %v5367_v33, %v4374_v12 }
 0xbdc   : > { %v4661_v28 = vmax.bf16 %v5719_v6, %v4645_v22 }
 0xbdd   : > { %v4662_v62 = vmax.bf16 %v5719_v6, %v4646_v24 }
 0xbdf   : > { %4717 = vmatprep.subr.bf16.mxu0 %v4662_v62  ;;  %5390 = vmatprep.subr.bf16.mxu1 %v4662_v62 }
 0xbe0   : > { %4718 = vmatpush1.bf16.msra.mxu0 %v4661_v28  ;;  %5398 = vmatpush1.bf16.msra.mxu1 %v4661_v28 }
 0xbe3   : > { %4736 = vmatmul.mubr.bf16.vlgmr.msra.gmra.mrb[144].mxu0 %v5521_v50  ;;  %4746 = vmatmul.mubr.bf16.vlgmr.msra.gmra.mrb[136].mxu1 %v5522_v44 }
 0xcb6   : > { %v4737_v20 = vpop.f32.mrb[144].mxu0  ;;  %v4747_v32 = vpop.f32.mrb[136].mxu1 }
 0xcb7   : > { %v4738_v8 = vadd.f32 %v4737_v20, %v4674_v9  ;;  %v4739_v6 = vpop.f32.mrb[145].mxu0  ;;  %v4749_v52 = vpop.f32.mrb[137].mxu1  ;;  %v4748_v16 = vadd.f32 %v4747_v32, %v4684_v53 }
 0xcb8   : > { %v4740_v21 = vadd.f32 %v4739_v6, %v4674_v9  ;;  %v4741_v55 = vpop.f32.mrb[146].mxu0  ;;  %v4751_v41 = vpop.f32.mrb[138].mxu1  ;;  %v4750_v63 = vadd.f32 %v4749_v52, %v4684_v53 }
 0xcb9   : > { %5595 = vtanh.f32 %v4738_v8  ;;  %v4742_v0 = vadd.f32 %v4741_v55, %v4679_v54  ;;  %v4743_v43 = vpop.f32.mrb[147].mxu0  ;;  %v4753_v38 = vpop.f32.mrb[139].mxu1  ;;  %v4752_v27 = vadd.f32 %v4751_v41, %v4689_v10 }
 0xcba   : > { %5597 = vtanh.f32 %v4740_v21  ;;  %v4744_v46 = vadd.f32 %v4743_v43, %v4679_v54  ;;  %v4754_v2 = vadd.f32 %v4753_v38, %v4689_v10 }
 0xcbb   : > { %5599 = vtanh.f32 %v4742_v0 }
 0xcbc   : > { %5601 = vtanh.f32 %v4744_v46 }
 0xcbd   : > { %5603 = vtanh.f32 %v4748_v16 }
 0xcbe   : > { %5605 = vtanh.f32 %v4750_v63 }
 0xcbf   : > { %5607 = vtanh.f32 %v4752_v27 }
 0xcc3   : > { %v5596_v35 = vpop.eup %5595 }
 0xcc4   : > { %v4768_v51 = vsub.f32 0.0, %v5596_v35  ;;  %v7088_v45 = vadd.f32 %v5596_v35, %v6919_v31  ;;  %v5598_v37 = vpop.eup %5597 }
 0xcc5   : > { %v4769_v48 = vsub.f32 0.0, %v5598_v37  ;;  %v7091_v3 = vadd.f32 %v5598_v37, %v6923_v59  ;;  %v5600_v5 = vpop.eup %5599 }
 0xcc6   : > { %v4772_v40 = vmul.f32 1.442695, %v4768_v51  ;;  %v4770_v58 = vsub.f32 0.0, %v5600_v5  ;;  %v7094_v61 = vadd.f32 %v5600_v5, %v6925_v49  ;;  %v5602_v4 = vpop.eup %5601 }
 0xcc7   : > { %v4774_v7 = vmul.f32 1.442695, %v4769_v48  ;;  %v4771_v29 = vsub.f32 0.0, %v5602_v4  ;;  %v7097_v36 = vadd.f32 %v5602_v4, %v6927_v57  ;;  %v5604_v30 = vpop.eup %5603 }
 0xcc8   : > { %5609 = vpow2.f32 %v4772_v40  ;;  %v4776_v31 = vmul.f32 1.442695, %v4770_v58  ;;  %v5606_v14 = vpop.eup %5605  ;;  %v4764_v34 = vsub.f32 %v6932_v1, %v5604_v30 }
 0xcc9   : > { %5611 = vtanh.f32 %v4754_v2  ;;  %v4778_v59 = vmul.f32 1.442695, %v4771_v29  ;;  %v5608_v25 = vpop.eup %5607  ;;  %v4765_v15 = vsub.f32 %v6935_v42, %v5606_v14 }
 0xcca   : > { %5613 = vpow2.f32 %v4774_v7  ;;  %v4766_v60 = vsub.f32 %v6937_v18, %v5608_v25 }
 0xccb   : > { %5615 = vpow2.f32 %v4776_v31 }
 0xccc   : > { %5617 = vpow2.f32 %v4778_v59 }
 0xcd2   : > { %v5610_v49 = vpop.eup %5609 }
 0xcd3   : > { %v5612_v56 = vpop.eup %5611  ;;  %v4780_v13 = vmul.f32 %v5610_v49, %v4764_v34 }
 0xcd4   : > { %v5614_v19 = vpop.eup %5613  ;;  %v4767_v11 = vsub.f32 %v6939_v47, %v5612_v56 }
 0xcd5   : > { %4788 = vst [vmem:[%s333_s26] sm:$0xff] %v4780_v13  ;;  %v4792_v57 = vmul.f32 -0.5, %v4780_v13  ;;  %v4781_v26 = vmul.f32 %v5614_v19, %v4765_v15  ;;  %v5616_v33 = vpop.eup %5615 }
 0xcd6   : > { %v4782_v42 = vmul.f32 %v5616_v33, %v4766_v60  ;;  %v5618_v12 = vpop.eup %5617 }
 0xcd7   : > { %v4796_v39 = vmul.f32 %v4792_v57, %v4780_v13  ;;  %4789 = vst [vmem:[%s333_s26 + $0x8] sm:$0xff] %v4781_v26  ;;  %v4793_v1 = vmul.f32 -0.5, %v4781_v26  ;;  %v4783_v62 = vmul.f32 %v5618_v12, %v4767_v11 }
 0xcd8   : > { %4790 = vst [vmem:[%s333_s26 + $0x10] sm:$0xff] %v4782_v42  ;;  %v4794_v24 = vmul.f32 -0.5, %v4782_v42 }
 0xcd9   : > { %v4800_v18 = vsub.f32 %v4796_v39, %v7088_v45  ;;  %v4797_v22 = vmul.f32 %v4793_v1, %v4781_v26  ;;  %4791 = vst [vmem:[%s333_s26 + $0x18] sm:$0xff] %v4783_v62  ;;  %v4795_v44 = vmul.f32 -0.5, %v4783_v62 }
 0xcda   : > { %v4798_v50 = vmul.f32 %v4794_v24, %v4782_v42 }
 0xcdb   : > { %v4801_v28 = vsub.f32 %v4797_v22, %v7091_v3 }
 0xcdc   : > { %5636 = shalt.err (!%p5633_p5)
}
 0xcdd   : > { %s5637_s25 = scalar_lea.hbm %s7111_s21, 512  ;;  %s5641_s13 = scalar_lea.hbm %s7199_s7, 1024 }
 0xcde   : > { %p5638_p7 = scmp.ne.s32.totalorder %s7111_s21, %s5637_s25  ;;  %p5642_p12 = scmp.lt.u32.totalorder %s7111_s21, %s7199_s7 }
 0xcdf   : > { %p5643_p13 = scmp.lt.u32.totalorder %s5641_s13, %s5637_s25  ;;  %p5645_p1 = scmp.lt.u32.totalorder %s5637_s25, %s7111_s21 }
 0xce0   : > { %p5639_p10 = pnand %p5638_p7, %p5811_p6 }
 0xce1   : > { %p5644_p0 = por %p5643_p13, %p5642_p12 }
 0xce2   : > { %p5640_p11 = pneg %p5639_p10 }
 0xce3   : > { %p5646_p2 = por %p5645_p1, %p5644_p0 }
 0xce5   : > { %p5647_p3 = pnand %p5646_p2, %p5640_p11 }
 0xce7   : > { %5650 = shalt.err (!%p5647_p3)
}
 0xce8   : > { %s5722_s20 = smov 256   ;;  %s5723_s23 = smov 512   ;;  %v4802_v47 = vsub.f32 %v4798_v50, %v7094_v61  ;;  %v4799_v54 = vmul.f32 %v4795_v44, %v4783_v62  ;;  %v5725_v43 = vmov 1966171168   ;;  %vm4840_vm1 = vcmp.lt.s32.totalorder %v587_v17, 256 }
 0xce9   : > { %s5724_s24 = smov 16   ;;  %v4824_v38 = vunpack.c.l.s4 %v5725_v43  ;;  %s4849_s18 = scalar_lea.sflag [#allocation6], %s5836_s12 }
 0xcea   : > { %5399 = dma.vmem_to_hbm [thread:$0]  (%p5811_p6), %s7105_s10, 512, %s7111_s21, %s4844_s19, %s5722_s20, %s5723_s23, %s5724_s24   ;;  %v4803_v9 = vsub.f32 %v4799_v54, %v7097_v36  ;;  %v4804_v20 = vadd.f32 %v4802_v47, %v4800_v18 }
 0xceb   : > { %v4825_v63 = vunpack.c.0.s8 %v4824_v38  ;;  %s4985_s10 = sshll.u32 %s5836_s12, 1  ;;  %s5382_s21 = sshll.u32 %s5793_s9, 5 }
 0xcec   : > { %v4805_v32 = vrot.slane %v4804_v20, 4  ;;  %v4811_v8 = vadd.f32 %v4803_v9, %v4801_v28  ;;  %s340_s19 = scalar_lea.vmem [#allocation5], %s4985_s10  ;;  %s7148_s13 = scalar_lea.hbm %s7200_s8, %s5382_s21 }
 0xced   : > { %v4828_v45 = vsub.s32 %v4825_v63, %v6244_v23  ;;  %s4879_s25 = sshll.u32 %s340_s19, 4  ;;  %s5726_s9 = smov [#allocation5]   ;;  %s7150_s25 = int_to_ptr.vmem [resolvable:$true] %s4879_s25 }
 0xcee   : > { %v4806_v6 = vadd.f32 %v4805_v32, %v4804_v20  ;;  %v4812_v52 = vrot.slane %v4811_v8, 4  ;;  %s5651_s22 = scalar_lea.vmem %s7150_s25, 32  ;;  %s5655_s20 = sshll.u32 %s5726_s9, 4  ;;  %s5656_s20 = int_to_ptr.vmem [resolvable:$false] %s5655_s20 }
 0xcef   : > { %p5652_p4 = scmp.ne.s32.totalorder %s7150_s25, %s5651_s22  ;;  %s5657_s23 = scalar_lea.vmem %s5656_s20, 64 }
 0xcf0   : > { %v4807_v21 = vrot.slane %v4806_v6, 2  ;;  %v4813_v55 = vadd.f32 %v4812_v52, %v4811_v8  ;;  %p5658_p10 = scmp.lt.s32.totalorder %s7150_s25, %s5656_s20  ;;  %p5659_p11 = scmp.lt.s32.totalorder %s5657_s23, %s5651_s22 }
 0xcf1   : > { %p5653_p5 = pnand %p5652_p4, %p5811_p6 }
 0xcf2   : > { %v4808_v41 = vadd.f32 %v4807_v21, %v4806_v6  ;;  %v4814_v0 = vrot.slane %v4813_v55, 2  ;;  %p5660_p12 = por %p5659_p11, %p5658_p10 }
 0xcf3   : > { %p5654_p7 = pneg %p5653_p5 }
 0xcf4   : > { %v4809_v46 = vrot.slane %v4808_v41, 1  ;;  %v4815_v53 = vadd.f32 %v4814_v0, %v4813_v55 }
 0xcf5   : > { %p5661_p13 = pnand %p5660_p12, %p5654_p7 }
 0xcf6   : > { %v4810_v16 = vadd.f32 %v4809_v46, %v4808_v41  ;;  %v4816_v10 = vrot.slane %v4815_v53, 1 }
 0xcf8   : > { %v4817_v35 = vadd.f32 %v4816_v10, %v4815_v53  ;;  %v5370_v27 = vadd.f32 -14.703016, %v4810_v16 }
 0xcfa   : > { %v5371_v51 = vadd.f32 -14.703016, %v4817_v35 }
 0xcfc   : > { %v4822_v37 = vcombine.low %v5370_v27, %v5371_v51 }
 0xcfe   : > { %v4829_v2 = vrot.slane %v4822_v37, %v4828_v45 }
 0xd00   : > { %v4836_v40 = vrot.slane %v4829_v2, %v4828_v45 }
 0xd02   : > { %4842 = vst.msk [vmem:[%s340_s19] sm:$0x3] %vm4840_vm1, %v4836_v40 }
 0xd03   : > { %5664 = shalt.err (!%p5661_p13)
}
 0xd04   : > { %s5665_s12 = scalar_lea.hbm %s7148_s13, 32  ;;  %s5669_s21 = scalar_lea.hbm %s7200_s8, 64 }
 0xd05   : > { %p5666_p0 = scmp.ne.s32.totalorder %s7148_s13, %s5665_s12  ;;  %p5670_p3 = scmp.lt.u32.totalorder %s7148_s13, %s7200_s8 }
 0xd06   : > { %p5671_p4 = scmp.lt.u32.totalorder %s5669_s21, %s5665_s12  ;;  %p5673_p7 = scmp.lt.u32.totalorder %s5665_s12, %s7148_s13 }
 0xd07   : > { %p5667_p1 = pnand %p5666_p0, %p5811_p6 }
 0xd08   : > { %p5672_p5 = por %p5671_p4, %p5670_p3 }
 0xd09   : > { %p5668_p2 = pneg %p5667_p1 }
 0xd0a   : > { %p5674_p10 = por %p5673_p7, %p5672_p5 }
 0xd0c   : > { %p5675_p11 = pnand %p5674_p10, %p5668_p2 }
 0xd0e   : > { %5678 = shalt.err (!%p5675_p11)
}
 0xd0f   : > { %5400 = dma.vmem_to_hbm [thread:$0]  (%p5811_p6), %s7150_s25, 32, %s7148_s13, %s4849_s18  }
 0xd10 PF: > { %s4891_s17 = sand.u32 1, %s5705_s27   ;;  %p5404_p12 = pnand %p4978_p9, %p5815_p8 }
 0xd11   : > { %s4892_s22 = scalar_lea.sflag [#allocation4], %s4891_s17 }
 0xd12   : > { %5696 = dma.done.wait (!%p5404_p12), %s4892_s22, 512  }
 0xd13   : > { %5698 = vsyncadd (!%p5404_p12), %s4892_s22, 4294966784  ;;  %s4901_s9 = scalar_lea.sflag [#allocation6], %s4891_s17 }
 0xd14   : > { %5700 = dma.done.wait (!%p5404_p12), %s4901_s9, 32  }
 0xd15   : > { %5702 = vsyncadd (!%p5404_p12), %s4901_s9, 4294967264  ;;  %p22_p6 = scmp.ge.s32.totalorder %s5797_s11, 4   ;;  %s7203_s27 = smov %s5709_s28 }
 0xd16   : > { %s7204_s28 = smov %s5713_s29  ;;  %s7205_s29 = smov %s5809_s14 }
 0xd17   : > { %s7206_s30 = smov %s5797_s11  ;;  %24 = sbr.rel (!%p22_p6) target bundleno = 5 (0x5), region = 146 }
 0xd1e   :  { %4906 = vsyncpa [#allocation4], 1 }
 0xd1f   :  { %4908 = vsyncpa [#allocation4 + $0x1], 1 }
 0xd20   :  { %4909 = vsyncpa [#allocation6], 1 }
 0xd21   :  { %4911 = vsyncpa [#allocation6 + $0x1], 1 }

</bundles_post_ra>
